<compile_context>
chip_gen: v7x
topology: tpu7x:2x2x1
jax: 0.10.0
libtpu: 0.0.40
codegen_flags: <defaults>
</compile_context>

<pallas_src>
import math

import jax
import jax.numpy as jnp
from jax import lax
from jax.experimental import pallas as pl
from jax.experimental.pallas import tpu as pltpu


_BLOCK_KEYS = ("w1r", "b1", "w1t", "w2r", "b2", "w2t", "wla", "wlb", "bl")
_NB = len(_BLOCK_KEYS)
_LANE = 128
_SUBLANE = 8


def _round_up(v, m):
    return ((v + m - 1) // m) * m


# --------------------------------------------------------------------------
# Weight packing: many tiny 2D tensors -> one lane-aligned f32 slab
# --------------------------------------------------------------------------
def _pack_params(flat_params):
    """Pack all 2-D f32 weights/biases into one (rows, 128k) slab.

    Each tensor occupies rows [off, off+r) (off a multiple of 8) and columns
    [0, c), so in-kernel static slices stay aligned to the (8, 128) vreg tiling
    and the whole parameter set moves HBM->VMEM with a single DMA.
    Returns (slab, metas) with metas = tuple of (row_offset, rows, cols).
    """
    lane = max(_LANE, _round_up(max(int(p.shape[1]) for p in flat_params), _LANE))
    metas = []
    rows = 0
    for p in flat_params:
        r, c = int(p.shape[0]), int(p.shape[1])
        metas.append((rows, r, c))
        rows += _round_up(r, _SUBLANE)
    rows = _round_up(max(rows, _SUBLANE), _SUBLANE)
    slab = jnp.zeros((rows, lane), jnp.float32)
    for p, (off, r, c) in zip(flat_params, metas):
        slab = slab.at[off:off + r, :c].set(p.astype(jnp.float32))
    return slab, tuple(metas)


# --------------------------------------------------------------------------
# Fused whole-forward Pallas kernel (G graphs per grid step)
# --------------------------------------------------------------------------
def _make_forward_kernel(num_levels, graphs_per_step, metas):
    def kernel(x_ref, adj_ref, mask_ref, w_ref, out_ref):
        # Load every packed parameter once (static, tile-aligned slab slices);
        # hoisted out of the per-graph loop.
        P = [w_ref[pl.ds(off, r), pl.ds(0, c)] for (off, r, c) in metas]

        def sage_block(h, adj, agg1, deg_inv, maskf, base):
            # One `Block`: DenseSAGEConv -> relu -> DenseSAGEConv -> relu ->
            # Linear(cat([x1, x2])).  agg1 = (adj @ h) * deg_inv is precomputed
            # once per level and shared between pool and embed blocks.
            w1r, b1, w1t, w2r, b2, w2t, wla, wlb, bl = P[base:base + _NB]
            x1 = (jnp.dot(agg1, w1r, preferred_element_type=jnp.float32) + b1
                  + jnp.dot(h, w1t, preferred_element_type=jnp.float32))
            if maskf is not None:
                x1 = x1 * maskf
            x1 = jnp.maximum(x1, 0.0)
            agg2 = jnp.dot(adj, x1, preferred_element_type=jnp.float32) * deg_inv
            x2 = (jnp.dot(agg2, w2r, preferred_element_type=jnp.float32) + b2
                  + jnp.dot(x1, w2t, preferred_element_type=jnp.float32))
            if maskf is not None:
                x2 = x2 * maskf
            x2 = jnp.maximum(x2, 0.0)
            # lin(cat([x1, x2], -1)) == x1 @ Wl[:H] + x2 @ Wl[H:] + bl
            return (jnp.dot(x1, wla, preferred_element_type=jnp.float32)
                    + jnp.dot(x2, wlb, preferred_element_type=jnp.float32) + bl)

        # Contract the node axis (dim 0 of both operands) == a^T @ b without
        # materializing the transpose (no XLU vxpose / vreg copy).
        contract_node = (((0,), (0,)), ((), ()))

        for g in range(graphs_per_step):
            h = x_ref[g]            # (N, Fin)
            adj = adj_ref[g]        # (N, N)
            maskf = mask_ref[g]     # (N, 1)

            idx = 0
            readouts = []
            for lvl in range(num_levels):
                # The module discards the pooled x/adj of the last level, so
                # its pool block and diff_pool are never computed.
                has_pool = lvl + 1 < num_levels
                pool_base = None
                if has_pool:
                    pool_base = idx
                    idx += _NB
                embed_base = idx
                idx += _NB
                m = maskf if lvl == 0 else None   # no mask after pooling

                # Hoisted degree normalization (shared by all 4 SAGE layers of
                # the level); adj@h shared by both pool and embed blocks.
                deg = jnp.maximum(jnp.sum(adj, axis=-1, keepdims=True), 1.0)
                deg_inv = pl.reciprocal(deg)      # exact (approx=False)
                agg1 = jnp.dot(adj, h, preferred_element_type=jnp.float32) * deg_inv

                xe = jnp.maximum(sage_block(h, adj, agg1, deg_inv, m, embed_base), 0.0)
                readouts.append(jnp.mean(xe, axis=0, keepdims=True))   # (1, H)

                if has_pool:
                    s = sage_block(h, adj, agg1, deg_inv, m, pool_base)
                    s = s - jnp.max(s, axis=-1, keepdims=True)         # softmax
                    e = jnp.exp(s)
                    s = e * pl.reciprocal(jnp.sum(e, axis=-1, keepdims=True))
                    if m is not None:
                        xe_p = xe * m
                        s = s * m
                    else:
                        xe_p = xe
                    # dense_diff_pool: x' = s^T x, adj' = s^T adj s (no s.T)
                    h = lax.dot_general(s, xe_p, contract_node,
                                        preferred_element_type=jnp.float32)   # (C, H)
                    sta = lax.dot_general(s, adj, contract_node,
                                          preferred_element_type=jnp.float32)  # (C, N)
                    adj = jnp.dot(sta, s, preferred_element_type=jnp.float32)  # (C, C)

            # Head: lin1 -> relu -> (dropout: eval no-op) -> lin2 -> log_softmax.
            # lin1 arrives pre-split per readout chunk (no in-kernel concat).
            head = idx
            acc = P[head + num_levels]                                  # b1 (1, H)
            for lvl in range(num_levels):
                acc = acc + jnp.dot(readouts[lvl], P[head + lvl],
                                    preferred_element_type=jnp.float32)
            hh = jnp.maximum(acc, 0.0)
            # TODO(synk): F.dropout(p=0.5) is a no-op in eval mode; training-mode
            # RNG dropout is not reproduced here.
            logits = (jnp.dot(hh, P[head + num_levels + 1],
                              preferred_element_type=jnp.float32)
                      + P[head + num_levels + 2])
            z = logits - jnp.max(logits, axis=-1, keepdims=True)
            lse = jnp.log(jnp.sum(jnp.exp(z), axis=-1, keepdims=True))
            out_ref[g] = (z - lse).astype(out_ref.dtype)                # log_softmax

    return kernel


# --------------------------------------------------------------------------
# Wrapper (pallas_call plumbing)
# --------------------------------------------------------------------------
def _num_grid_steps(batch):
    """Use >=2 'parallel' grid steps only where there are 2 TensorCores (v7x
    megacore); on single-TC v5e/v6e extra grid steps are pure per-step
    overhead, so collapse the batch into a single step."""
    kind = ""
    try:
        kind = jax.devices()[0].device_kind.lower()
    except Exception:
        pass
    n_tc = 2 if "v7" in kind else 1
    steps = max(1, min(batch, n_tc))
    while steps > 1 and batch % steps:
        steps -= 1
    return steps


def diffpool_forward(params, x, adj, mask):
    B, N, Fin = x.shape
    dtype = x.dtype
    maskf = mask.astype(dtype)[..., None]                            # (B, N, 1)

    pool_blocks = [params["pool_block1"]] + list(params["pool_blocks"])
    embed_blocks = [params["embed_block1"]] + list(params["embed_blocks"])
    num_levels = len(embed_blocks)

    w1, b1 = params["lin1"]
    w2, b2 = params["lin2"]
    H = embed_blocks[0]["wla"].shape[1]                              # hidden
    num_classes = w2.shape[1]

    flat_params = []
    for lvl in range(num_levels):
        if lvl + 1 < num_levels:          # last-level pool block output is discarded
            flat_params += [pool_blocks[lvl][k] for k in _BLOCK_KEYS]
        flat_params += [embed_blocks[lvl][k] for k in _BLOCK_KEYS]
    flat_params += [w1[l * H:(l + 1) * H] for l in range(num_levels)]  # lin1 pre-split
    flat_params += [b1, w2, b2]

    wslab, metas = _pack_params(flat_params)

    steps = _num_grid_steps(B)
    G = B // steps                         # graphs per grid step

    kernel = _make_forward_kernel(num_levels, G, metas)
    data_specs = [pl.BlockSpec((G, N, Fin), lambda b: (b, 0, 0)),
                  pl.BlockSpec((G, N, N), lambda b: (b, 0, 0)),
                  pl.BlockSpec((G, N, 1), lambda b: (b, 0, 0))]
    out_spec = pl.BlockSpec((G, 1, num_classes), lambda b: (b, 0, 0))
    out_shape = jax.ShapeDtypeStruct((B, 1, num_classes), dtype)
    cparams = pltpu.CompilerParams(dimension_semantics=("parallel",))
    # TODO(synk): for very large N, the double-buffered (G,N,N) adj block can
    # exceed the scoped VMEM limit (notably on v7x, 64 MiB physical); raise
    # vmem_limit_bytes / tile adj over a K axis if this kernel is ever scaled up.

    def run(single_buffer_weights):
        if single_buffer_weights:
            # Grid-invariant slab: fetched once; no dead second pipeline buffer.
            w_spec = pl.BlockSpec(wslab.shape, lambda b: (0, 0),
                                  pipeline_mode=pl.Buffered(1))
        else:
            w_spec = pl.BlockSpec(wslab.shape, lambda b: (0, 0))
        return pl.pallas_call(
            kernel,
            out_shape=out_shape,
            grid=(steps,),
            in_specs=data_specs + [w_spec],
            out_specs=out_spec,
            compiler_params=cparams,
        )(x, adj, maskf, wslab)

    try:
        out = run(True)
    except Exception:
        # Fallback if this Pallas build rejects single-buffering the weight slab.
        out = run(False)
    return out[:, 0, :]


# --------------------------------------------------------------------------
# Parameter initialization (deterministic, torch.nn.Linear-style uniform)
# --------------------------------------------------------------------------
def _init_linear(key, fan_in, fan_out, bias=True):
    kw, kb = jax.random.split(key)
    bound = 1.0 / math.sqrt(fan_in)
    w = jax.random.uniform(kw, (fan_in, fan_out), jnp.float32, -bound, bound)
    if not bias:
        return w
    b = jax.random.uniform(kb, (1, fan_out), jnp.float32, -bound, bound)
    return w, b


def _init_block(key, cin, chid, cout):
    k = jax.random.split(key, 5)
    w1r, b1 = _init_linear(k[0], cin, chid)            # conv1.lin_rel
    w1t = _init_linear(k[1], cin, chid, bias=False)    # conv1.lin_root
    w2r, b2 = _init_linear(k[2], chid, cout)           # conv2.lin_rel
    w2t = _init_linear(k[3], chid, cout, bias=False)   # conv2.lin_root
    wl, bl = _init_linear(k[4], chid + cout, cout)     # Block.lin
    return dict(w1r=w1r, b1=b1, w1t=w1t, w2r=w2r, b2=b2, w2t=w2t,
                wla=wl[:chid], wlb=wl[chid:], bl=bl)


def init_diffpool(key, num_features, num_nodes, num_layers, hidden, num_classes):
    keys = jax.random.split(key, 2 * (num_layers // 2) + 2)
    n = math.ceil(0.25 * num_nodes)
    params = {
        "embed_block1": _init_block(keys[0], num_features, hidden, hidden),
        "pool_block1": _init_block(keys[1], num_features, hidden, n),
        "embed_blocks": [],
        "pool_blocks": [],
    }
    ki = 2
    for _ in range(num_layers // 2 - 1):
        n = math.ceil(0.25 * n)
        params["embed_blocks"].append(_init_block(keys[ki], hidden, hidden, hidden)); ki += 1
        params["pool_blocks"].append(_init_block(keys[ki], hidden, hidden, n)); ki += 1
    num_readouts = len(params["embed_blocks"]) + 1
    params["lin1"] = _init_linear(keys[ki], num_readouts * hidden, hidden); ki += 1
    params["lin2"] = _init_linear(keys[ki], hidden, num_classes)
    return params


# --------------------------------------------------------------------------
# Pure-JAX reference (for correctness cross-check)
# --------------------------------------------------------------------------
def _sage_ref(h, adj, maskf, wr, b, wt):
    agg = adj @ h
    deg = jnp.maximum(jnp.sum(adj, -1, keepdims=True), 1.0)
    return ((agg / deg) @ wr + b + h @ wt) * maskf


def _block_ref(bp, x, adj, maskf):
    x1 = jax.nn.relu(_sage_ref(x, adj, maskf, bp["w1r"], bp["b1"], bp["w1t"]))
    x2 = jax.nn.relu(_sage_ref(x1, adj, maskf, bp["w2r"], bp["b2"], bp["w2t"]))
    return x1 @ bp["wla"] + x2 @ bp["wlb"] + bp["bl"]


def _diff_pool_ref(x, adj, s, maskf):
    s = jax.nn.softmax(s, axis=-1)
    x = x * maskf
    s = s * maskf
    st = jnp.swapaxes(s, 1, 2)
    return st @ x, st @ adj @ s


def diffpool_forward_ref(params, x, adj, mask):
    B = x.shape[0]
    maskf = mask.astype(x.dtype)[..., None]
    s = _block_ref(params["pool_block1"], x, adj, maskf)
    xe = jax.nn.relu(_block_ref(params["embed_block1"], x, adj, maskf))
    xs = [jnp.mean(xe, axis=1)]
    x_p, adj_p = _diff_pool_ref(xe, adj, s, maskf)
    for embed_p, pool_p in zip(params["embed_blocks"], params["pool_blocks"]):
        ones = jnp.ones((B, x_p.shape[1], 1), x.dtype)
        s = _block_ref(pool_p, x_p, adj_p, ones)
        xe = jax.nn.relu(_block_ref(embed_p, x_p, adj_p, ones))
        xs.append(jnp.mean(xe, axis=1))
        x_p, adj_p = _diff_pool_ref(xe, adj_p, s, ones)
    xcat = jnp.concatenate(xs, axis=1)
    h = jax.nn.relu(xcat @ params["lin1"][0] + params["lin1"][1])
    logits = h @ params["lin2"][0] + params["lin2"][1]
    return jax.nn.log_softmax(logits, axis=-1)


# --------------------------------------------------------------------------
# Main
# --------------------------------------------------------------------------
if __name__ == "__main__":
    B, N, F_IN, HIDDEN, NUM_LAYERS, NUM_CLASSES = 2, 16, 8, 32, 4, 4

    key = jax.random.PRNGKey(0)
    kx, kadj, kp = jax.random.split(key, 3)

    # Node features.
    x = jax.random.normal(kx, (B, N, F_IN), jnp.float32)

    # Node mask: graph 0 full (16 nodes), graph 1 has 12 valid nodes.
    valid = jnp.array([N, 12], jnp.int32)
    mask = (jnp.arange(N)[None, :] < valid[:, None])         # (B, N) bool

    # Symmetric 0/1 dense adjacency restricted to valid nodes.
    a = (jax.random.uniform(kadj, (B, N, N)) < 0.3).astype(jnp.float32)
    adj = jnp.maximum(a, jnp.swapaxes(a, 1, 2))
    mf = mask.astype(jnp.float32)
    adj = adj * mf[:, :, None] * mf[:, None, :]

    params = init_diffpool(kp, F_IN, N, NUM_LAYERS, HIDDEN, NUM_CLASSES)

    out = diffpool_forward(params, x, adj, mask)
    out = jax.block_until_ready(out)

    ref = diffpool_forward_ref(params, x, adj, mask)
    assert out.shape == (B, NUM_CLASSES), out.shape
    assert jnp.allclose(out, ref, rtol=1e-4, atol=1e-4), (out, ref)

    print("KERNEL_OK")
</pallas_src>

<mosaic_0001>
module attributes {stable_mosaic.version = 11 : i64} {
  func.func @kernel(%arg0: i32, %arg1: memref<2x16x8xf32, #tpu.memory_space<vmem>>, %arg2: memref<2x16x16xf32, #tpu.memory_space<vmem>>, %arg3: memref<2x16x1xf32, #tpu.memory_space<vmem>>, %arg4: memref<640x128xf32, #tpu.memory_space<vmem>>, %arg5: memref<2x1x4xf32, #tpu.memory_space<vmem>>) attributes {dimension_semantics = [#tpu.dimension_semantics<parallel>], iteration_bounds = array<i64: 1>, scalar_prefetch = 0 : i64, scratch_operands = 0 : i64, tpu.core_type = #tpu.core_type<tc>, window_params = [{transform_indices = @transform_0, window_bounds = array<i64: 2, 16, 8>}, {transform_indices = @transform_1, window_bounds = array<i64: 2, 16, 16>}, {transform_indices = @transform_2, window_bounds = array<i64: 2, 16, 1>}, {pipeline_mode = #tpu.pipeline_mode<synchronous>, transform_indices = @transform_3, window_bounds = array<i64: 640, 128>}, {transform_indices = @transform_4, window_bounds = array<i64: 2, 1, 4>}]} {
    %c0 = arith.constant 0 : index
    %c0_0 = arith.constant 0 : index
    %0 = vector.load %arg4[%c0, %c0_0] : memref<640x128xf32, #tpu.memory_space<vmem>>, vector<8x32xf32>
    %c8 = arith.constant 8 : index
    %c0_1 = arith.constant 0 : index
    %1 = vector.load %arg4[%c8, %c0_1] : memref<640x128xf32, #tpu.memory_space<vmem>>, vector<1x32xf32>
    %c16 = arith.constant 16 : index
    %c0_2 = arith.constant 0 : index
    %2 = vector.load %arg4[%c16, %c0_2] : memref<640x128xf32, #tpu.memory_space<vmem>>, vector<8x32xf32>
    %c24 = arith.constant 24 : index
    %c0_3 = arith.constant 0 : index
    %3 = vector.load %arg4[%c24, %c0_3] : memref<640x128xf32, #tpu.memory_space<vmem>>, vector<32x4xf32>
    %c56 = arith.constant 56 : index
    %c0_4 = arith.constant 0 : index
    %4 = vector.load %arg4[%c56, %c0_4] : memref<640x128xf32, #tpu.memory_space<vmem>>, vector<1x4xf32>
    %c64 = arith.constant 64 : index
    %c0_5 = arith.constant 0 : index
    %5 = vector.load %arg4[%c64, %c0_5] : memref<640x128xf32, #tpu.memory_space<vmem>>, vector<32x4xf32>
    %c96 = arith.constant 96 : index
    %c0_6 = arith.constant 0 : index
    %6 = vector.load %arg4[%c96, %c0_6] : memref<640x128xf32, #tpu.memory_space<vmem>>, vector<32x4xf32>
    %c128 = arith.constant 128 : index
    %c0_7 = arith.constant 0 : index
    %7 = vector.load %arg4[%c128, %c0_7] : memref<640x128xf32, #tpu.memory_space<vmem>>, vector<4x4xf32>
    %c136 = arith.constant 136 : index
    %c0_8 = arith.constant 0 : index
    %8 = vector.load %arg4[%c136, %c0_8] : memref<640x128xf32, #tpu.memory_space<vmem>>, vector<1x4xf32>
    %c144 = arith.constant 144 : index
    %c0_9 = arith.constant 0 : index
    %9 = vector.load %arg4[%c144, %c0_9] : memref<640x128xf32, #tpu.memory_space<vmem>>, vector<8x32xf32>
    %c152 = arith.constant 152 : index
    %c0_10 = arith.constant 0 : index
    %10 = vector.load %arg4[%c152, %c0_10] : memref<640x128xf32, #tpu.memory_space<vmem>>, vector<1x32xf32>
    %c160 = arith.constant 160 : index
    %c0_11 = arith.constant 0 : index
    %11 = vector.load %arg4[%c160, %c0_11] : memref<640x128xf32, #tpu.memory_space<vmem>>, vector<8x32xf32>
    %c168 = arith.constant 168 : index
    %c0_12 = arith.constant 0 : index
    %12 = vector.load %arg4[%c168, %c0_12] : memref<640x128xf32, #tpu.memory_space<vmem>>, vector<32x32xf32>
    %c200 = arith.constant 200 : index
    %c0_13 = arith.constant 0 : index
    %13 = vector.load %arg4[%c200, %c0_13] : memref<640x128xf32, #tpu.memory_space<vmem>>, vector<1x32xf32>
    %c208 = arith.constant 208 : index
    %c0_14 = arith.constant 0 : index
    %14 = vector.load %arg4[%c208, %c0_14] : memref<640x128xf32, #tpu.memory_space<vmem>>, vector<32x32xf32>
    %c240 = arith.constant 240 : index
    %c0_15 = arith.constant 0 : index
    %15 = vector.load %arg4[%c240, %c0_15] : memref<640x128xf32, #tpu.memory_space<vmem>>, vector<32x32xf32>
    %c272 = arith.constant 272 : index
    %c0_16 = arith.constant 0 : index
    %16 = vector.load %arg4[%c272, %c0_16] : memref<640x128xf32, #tpu.memory_space<vmem>>, vector<32x32xf32>
    %c304 = arith.constant 304 : index
    %c0_17 = arith.constant 0 : index
    %17 = vector.load %arg4[%c304, %c0_17] : memref<640x128xf32, #tpu.memory_space<vmem>>, vector<1x32xf32>
    %c312 = arith.constant 312 : index
    %c0_18 = arith.constant 0 : index
    %18 = vector.load %arg4[%c312, %c0_18] : memref<640x128xf32, #tpu.memory_space<vmem>>, vector<32x32xf32>
    %c344 = arith.constant 344 : index
    %c0_19 = arith.constant 0 : index
    %19 = vector.load %arg4[%c344, %c0_19] : memref<640x128xf32, #tpu.memory_space<vmem>>, vector<1x32xf32>
    %c352 = arith.constant 352 : index
    %c0_20 = arith.constant 0 : index
    %20 = vector.load %arg4[%c352, %c0_20] : memref<640x128xf32, #tpu.memory_space<vmem>>, vector<32x32xf32>
    %c384 = arith.constant 384 : index
    %c0_21 = arith.constant 0 : index
    %21 = vector.load %arg4[%c384, %c0_21] : memref<640x128xf32, #tpu.memory_space<vmem>>, vector<32x32xf32>
    %c416 = arith.constant 416 : index
    %c0_22 = arith.constant 0 : index
    %22 = vector.load %arg4[%c416, %c0_22] : memref<640x128xf32, #tpu.memory_space<vmem>>, vector<1x32xf32>
    %c424 = arith.constant 424 : index
    %c0_23 = arith.constant 0 : index
    %23 = vector.load %arg4[%c424, %c0_23] : memref<640x128xf32, #tpu.memory_space<vmem>>, vector<32x32xf32>
    %c456 = arith.constant 456 : index
    %c0_24 = arith.constant 0 : index
    %24 = vector.load %arg4[%c456, %c0_24] : memref<640x128xf32, #tpu.memory_space<vmem>>, vector<32x32xf32>
    %c488 = arith.constant 488 : index
    %c0_25 = arith.constant 0 : index
    %25 = vector.load %arg4[%c488, %c0_25] : memref<640x128xf32, #tpu.memory_space<vmem>>, vector<32x32xf32>
    %c520 = arith.constant 520 : index
    %c0_26 = arith.constant 0 : index
    %26 = vector.load %arg4[%c520, %c0_26] : memref<640x128xf32, #tpu.memory_space<vmem>>, vector<1x32xf32>
    %c528 = arith.constant 528 : index
    %c0_27 = arith.constant 0 : index
    %27 = vector.load %arg4[%c528, %c0_27] : memref<640x128xf32, #tpu.memory_space<vmem>>, vector<32x32xf32>
    %c560 = arith.constant 560 : index
    %c0_28 = arith.constant 0 : index
    %28 = vector.load %arg4[%c560, %c0_28] : memref<640x128xf32, #tpu.memory_space<vmem>>, vector<32x32xf32>
    %c592 = arith.constant 592 : index
    %c0_29 = arith.constant 0 : index
    %29 = vector.load %arg4[%c592, %c0_29] : memref<640x128xf32, #tpu.memory_space<vmem>>, vector<1x32xf32>
    %c600 = arith.constant 600 : index
    %c0_30 = arith.constant 0 : index
    %30 = vector.load %arg4[%c600, %c0_30] : memref<640x128xf32, #tpu.memory_space<vmem>>, vector<32x4xf32>
    %c632 = arith.constant 632 : index
    %c0_31 = arith.constant 0 : index
    %31 = vector.load %arg4[%c632, %c0_31] : memref<640x128xf32, #tpu.memory_space<vmem>>, vector<1x4xf32>
    %c0_32 = arith.constant 0 : index
    %c0_33 = arith.constant 0 : index
    %c0_34 = arith.constant 0 : index
    %32 = vector.load %arg1[%c0_32, %c0_33, %c0_34] : memref<2x16x8xf32, #tpu.memory_space<vmem>>, vector<1x16x8xf32>
    %33 = vector.shape_cast %32 : vector<1x16x8xf32> to vector<16x8xf32>
    %c0_35 = arith.constant 0 : index
    %c0_36 = arith.constant 0 : index
    %c0_37 = arith.constant 0 : index
    %34 = vector.load %arg2[%c0_35, %c0_36, %c0_37] : memref<2x16x16xf32, #tpu.memory_space<vmem>>, vector<1x16x16xf32>
    %35 = vector.shape_cast %34 : vector<1x16x16xf32> to vector<16x16xf32>
    %c0_38 = arith.constant 0 : index
    %c0_39 = arith.constant 0 : index
    %c0_40 = arith.constant 0 : index
    %36 = vector.load %arg3[%c0_38, %c0_39, %c0_40] : memref<2x16x1xf32, #tpu.memory_space<vmem>>, vector<1x16x1xf32>
    %37 = vector.shape_cast %36 : vector<1x16x1xf32> to vector<16x1xf32>
    %cst = arith.constant dense<0.000000e+00> : vector<16xf32>
    %38 = vector.multi_reduction <add>, %35, %cst [1] : vector<16x16xf32> to vector<16xf32>
    %39 = vector.shape_cast %38 : vector<16xf32> to vector<16x1xf32>
    %cst_41 = arith.constant 1.000000e+00 : f32
    %40 = vector.broadcast %cst_41 : f32 to vector<16x1xf32>
    %41 = arith.maximumf %39, %40 : vector<16x1xf32>
    %42 = tpu.reciprocal %41 : vector<16x1xf32> -> vector<16x1xf32>
    %cst_42 = arith.constant dense<0.000000e+00> : vector<16x8xf32>
    %43 = tpu.matmul %35, %33, %cst_42 {dimension_numbers = #tpu.dot_dimension_numbers<[1], [0], [0], [1], [0, 0, 1, 1], [], []>} : vector<16x16xf32>, vector<16x8xf32>, vector<16x8xf32> -> vector<16x8xf32>
    %44 = vector.broadcast %42 : vector<16x1xf32> to vector<16x8xf32>
    %45 = arith.mulf %43, %44 : vector<16x8xf32>
    %cst_43 = arith.constant dense<0.000000e+00> : vector<16x32xf32>
    %46 = tpu.matmul %45, %9, %cst_43 {dimension_numbers = #tpu.dot_dimension_numbers<[1], [0], [0], [1], [0, 0, 1, 1], [], []>} : vector<16x8xf32>, vector<8x32xf32>, vector<16x32xf32> -> vector<16x32xf32>
    %47 = vector.broadcast %10 : vector<1x32xf32> to vector<16x32xf32>
    %48 = arith.addf %46, %47 : vector<16x32xf32>
    %cst_44 = arith.constant dense<0.000000e+00> : vector<16x32xf32>
    %49 = tpu.matmul %33, %11, %cst_44 {dimension_numbers = #tpu.dot_dimension_numbers<[1], [0], [0], [1], [0, 0, 1, 1], [], []>} : vector<16x8xf32>, vector<8x32xf32>, vector<16x32xf32> -> vector<16x32xf32>
    %50 = arith.addf %48, %49 : vector<16x32xf32>
    %51 = vector.broadcast %37 : vector<16x1xf32> to vector<16x32xf32>
    %52 = arith.mulf %50, %51 : vector<16x32xf32>
    %cst_45 = arith.constant 0.000000e+00 : f32
    %53 = vector.broadcast %cst_45 : f32 to vector<16x32xf32>
    %54 = arith.maximumf %52, %53 : vector<16x32xf32>
    %cst_46 = arith.constant dense<0.000000e+00> : vector<16x32xf32>
    %55 = tpu.matmul %35, %54, %cst_46 {dimension_numbers = #tpu.dot_dimension_numbers<[1], [0], [0], [1], [0, 0, 1, 1], [], []>} : vector<16x16xf32>, vector<16x32xf32>, vector<16x32xf32> -> vector<16x32xf32>
    %56 = vector.broadcast %42 : vector<16x1xf32> to vector<16x32xf32>
    %57 = arith.mulf %55, %56 : vector<16x32xf32>
    %cst_47 = arith.constant dense<0.000000e+00> : vector<16x32xf32>
    %58 = tpu.matmul %57, %12, %cst_47 {dimension_numbers = #tpu.dot_dimension_numbers<[1], [0], [0], [1], [0, 0, 1, 1], [], []>} : vector<16x32xf32>, vector<32x32xf32>, vector<16x32xf32> -> vector<16x32xf32>
    %59 = vector.broadcast %13 : vector<1x32xf32> to vector<16x32xf32>
    %60 = arith.addf %58, %59 : vector<16x32xf32>
    %cst_48 = arith.constant dense<0.000000e+00> : vector<16x32xf32>
    %61 = tpu.matmul %54, %14, %cst_48 {dimension_numbers = #tpu.dot_dimension_numbers<[1], [0], [0], [1], [0, 0, 1, 1], [], []>} : vector<16x32xf32>, vector<32x32xf32>, vector<16x32xf32> -> vector<16x32xf32>
    %62 = arith.addf %60, %61 : vector<16x32xf32>
    %63 = vector.broadcast %37 : vector<16x1xf32> to vector<16x32xf32>
    %64 = arith.mulf %62, %63 : vector<16x32xf32>
    %cst_49 = arith.constant 0.000000e+00 : f32
    %65 = vector.broadcast %cst_49 : f32 to vector<16x32xf32>
    %66 = arith.maximumf %64, %65 : vector<16x32xf32>
    %cst_50 = arith.constant dense<0.000000e+00> : vector<16x32xf32>
    %67 = tpu.matmul %54, %15, %cst_50 {dimension_numbers = #tpu.dot_dimension_numbers<[1], [0], [0], [1], [0, 0, 1, 1], [], []>} : vector<16x32xf32>, vector<32x32xf32>, vector<16x32xf32> -> vector<16x32xf32>
    %cst_51 = arith.constant dense<0.000000e+00> : vector<16x32xf32>
    %68 = tpu.matmul %66, %16, %cst_51 {dimension_numbers = #tpu.dot_dimension_numbers<[1], [0], [0], [1], [0, 0, 1, 1], [], []>} : vector<16x32xf32>, vector<32x32xf32>, vector<16x32xf32> -> vector<16x32xf32>
    %69 = arith.addf %67, %68 : vector<16x32xf32>
    %70 = vector.broadcast %17 : vector<1x32xf32> to vector<16x32xf32>
    %71 = arith.addf %69, %70 : vector<16x32xf32>
    %cst_52 = arith.constant 0.000000e+00 : f32
    %72 = vector.broadcast %cst_52 : f32 to vector<16x32xf32>
    %73 = arith.maximumf %71, %72 : vector<16x32xf32>
    %cst_53 = arith.constant dense<0.000000e+00> : vector<32xf32>
    %74 = vector.multi_reduction <add>, %73, %cst_53 [0] : vector<16x32xf32> to vector<32xf32>
    %75 = vector.shape_cast %74 : vector<32xf32> to vector<1x32xf32>
    %cst_54 = arith.constant 1.600000e+01 : f32
    %76 = vector.broadcast %cst_54 : f32 to vector<1x32xf32>
    %77 = arith.divf %75, %76 : vector<1x32xf32>
    %cst_55 = arith.constant dense<0.000000e+00> : vector<16x32xf32>
    %78 = tpu.matmul %45, %0, %cst_55 {dimension_numbers = #tpu.dot_dimension_numbers<[1], [0], [0], [1], [0, 0, 1, 1], [], []>} : vector<16x8xf32>, vector<8x32xf32>, vector<16x32xf32> -> vector<16x32xf32>
    %79 = vector.broadcast %1 : vector<1x32xf32> to vector<16x32xf32>
    %80 = arith.addf %78, %79 : vector<16x32xf32>
    %cst_56 = arith.constant dense<0.000000e+00> : vector<16x32xf32>
    %81 = tpu.matmul %33, %2, %cst_56 {dimension_numbers = #tpu.dot_dimension_numbers<[1], [0], [0], [1], [0, 0, 1, 1], [], []>} : vector<16x8xf32>, vector<8x32xf32>, vector<16x32xf32> -> vector<16x32xf32>
    %82 = arith.addf %80, %81 : vector<16x32xf32>
    %83 = vector.broadcast %37 : vector<16x1xf32> to vector<16x32xf32>
    %84 = arith.mulf %82, %83 : vector<16x32xf32>
    %cst_57 = arith.constant 0.000000e+00 : f32
    %85 = vector.broadcast %cst_57 : f32 to vector<16x32xf32>
    %86 = arith.maximumf %84, %85 : vector<16x32xf32>
    %cst_58 = arith.constant dense<0.000000e+00> : vector<16x32xf32>
    %87 = tpu.matmul %35, %86, %cst_58 {dimension_numbers = #tpu.dot_dimension_numbers<[1], [0], [0], [1], [0, 0, 1, 1], [], []>} : vector<16x16xf32>, vector<16x32xf32>, vector<16x32xf32> -> vector<16x32xf32>
    %88 = vector.broadcast %42 : vector<16x1xf32> to vector<16x32xf32>
    %89 = arith.mulf %87, %88 : vector<16x32xf32>
    %cst_59 = arith.constant dense<0.000000e+00> : vector<16x4xf32>
    %90 = tpu.matmul %89, %3, %cst_59 {dimension_numbers = #tpu.dot_dimension_numbers<[1], [0], [0], [1], [0, 0, 1, 1], [], []>} : vector<16x32xf32>, vector<32x4xf32>, vector<16x4xf32> -> vector<16x4xf32>
    %91 = vector.broadcast %4 : vector<1x4xf32> to vector<16x4xf32>
    %92 = arith.addf %90, %91 : vector<16x4xf32>
    %cst_60 = arith.constant dense<0.000000e+00> : vector<16x4xf32>
    %93 = tpu.matmul %86, %5, %cst_60 {dimension_numbers = #tpu.dot_dimension_numbers<[1], [0], [0], [1], [0, 0, 1, 1], [], []>} : vector<16x32xf32>, vector<32x4xf32>, vector<16x4xf32> -> vector<16x4xf32>
    %94 = arith.addf %92, %93 : vector<16x4xf32>
    %95 = vector.broadcast %37 : vector<16x1xf32> to vector<16x4xf32>
    %96 = arith.mulf %94, %95 : vector<16x4xf32>
    %cst_61 = arith.constant 0.000000e+00 : f32
    %97 = vector.broadcast %cst_61 : f32 to vector<16x4xf32>
    %98 = arith.maximumf %96, %97 : vector<16x4xf32>
    %cst_62 = arith.constant dense<0.000000e+00> : vector<16x4xf32>
    %99 = tpu.matmul %86, %6, %cst_62 {dimension_numbers = #tpu.dot_dimension_numbers<[1], [0], [0], [1], [0, 0, 1, 1], [], []>} : vector<16x32xf32>, vector<32x4xf32>, vector<16x4xf32> -> vector<16x4xf32>
    %cst_63 = arith.constant dense<0.000000e+00> : vector<16x4xf32>
    %100 = tpu.matmul %98, %7, %cst_63 {dimension_numbers = #tpu.dot_dimension_numbers<[1], [0], [0], [1], [0, 0, 1, 1], [], []>} : vector<16x4xf32>, vector<4x4xf32>, vector<16x4xf32> -> vector<16x4xf32>
    %101 = arith.addf %99, %100 : vector<16x4xf32>
    %102 = vector.broadcast %8 : vector<1x4xf32> to vector<16x4xf32>
    %103 = arith.addf %101, %102 : vector<16x4xf32>
    %cst_64 = arith.constant dense<0xFF800000> : vector<16xf32>
    %104 = vector.multi_reduction <maximumf>, %103, %cst_64 [1] : vector<16x4xf32> to vector<16xf32>
    %105 = vector.shape_cast %104 : vector<16xf32> to vector<16x1xf32>
    %106 = vector.broadcast %105 : vector<16x1xf32> to vector<16x4xf32>
    %107 = arith.subf %103, %106 : vector<16x4xf32>
    %108 = math.exp %107 : vector<16x4xf32>
    %cst_65 = arith.constant dense<0.000000e+00> : vector<16xf32>
    %109 = vector.multi_reduction <add>, %108, %cst_65 [1] : vector<16x4xf32> to vector<16xf32>
    %110 = vector.shape_cast %109 : vector<16xf32> to vector<16x1xf32>
    %111 = tpu.reciprocal %110 : vector<16x1xf32> -> vector<16x1xf32>
    %112 = vector.broadcast %111 : vector<16x1xf32> to vector<16x4xf32>
    %113 = arith.mulf %108, %112 : vector<16x4xf32>
    %114 = vector.broadcast %37 : vector<16x1xf32> to vector<16x32xf32>
    %115 = arith.mulf %73, %114 : vector<16x32xf32>
    %116 = vector.broadcast %37 : vector<16x1xf32> to vector<16x4xf32>
    %117 = arith.mulf %113, %116 : vector<16x4xf32>
    %cst_66 = arith.constant dense<0.000000e+00> : vector<4x32xf32>
    %118 = tpu.matmul %117, %115, %cst_66 {dimension_numbers = #tpu.dot_dimension_numbers<[0], [0], [1], [1], [0, 1, 1, 1], [], []>} : vector<16x4xf32>, vector<16x32xf32>, vector<4x32xf32> -> vector<4x32xf32>
    %cst_67 = arith.constant dense<0.000000e+00> : vector<4x16xf32>
    %119 = tpu.matmul %117, %35, %cst_67 {dimension_numbers = #tpu.dot_dimension_numbers<[0], [0], [1], [1], [0, 1, 1, 1], [], []>} : vector<16x4xf32>, vector<16x16xf32>, vector<4x16xf32> -> vector<4x16xf32>
    %cst_68 = arith.constant dense<0.000000e+00> : vector<4x4xf32>
    %120 = tpu.matmul %119, %117, %cst_68 {dimension_numbers = #tpu.dot_dimension_numbers<[1], [0], [0], [1], [0, 0, 1, 1], [], []>} : vector<4x16xf32>, vector<16x4xf32>, vector<4x4xf32> -> vector<4x4xf32>
    %cst_69 = arith.constant dense<0.000000e+00> : vector<4xf32>
    %121 = vector.multi_reduction <add>, %120, %cst_69 [1] : vector<4x4xf32> to vector<4xf32>
    %122 = vector.shape_cast %121 : vector<4xf32> to vector<4x1xf32>
    %cst_70 = arith.constant 1.000000e+00 : f32
    %123 = vector.broadcast %cst_70 : f32 to vector<4x1xf32>
    %124 = arith.maximumf %122, %123 : vector<4x1xf32>
    %125 = tpu.reciprocal %124 : vector<4x1xf32> -> vector<4x1xf32>
    %cst_71 = arith.constant dense<0.000000e+00> : vector<4x32xf32>
    %126 = tpu.matmul %120, %118, %cst_71 {dimension_numbers = #tpu.dot_dimension_numbers<[1], [0], [0], [1], [0, 0, 1, 1], [], []>} : vector<4x4xf32>, vector<4x32xf32>, vector<4x32xf32> -> vector<4x32xf32>
    %127 = vector.broadcast %125 : vector<4x1xf32> to vector<4x32xf32>
    %128 = arith.mulf %126, %127 : vector<4x32xf32>
    %cst_72 = arith.constant dense<0.000000e+00> : vector<4x32xf32>
    %129 = tpu.matmul %128, %18, %cst_72 {dimension_numbers = #tpu.dot_dimension_numbers<[1], [0], [0], [1], [0, 0, 1, 1], [], []>} : vector<4x32xf32>, vector<32x32xf32>, vector<4x32xf32> -> vector<4x32xf32>
    %130 = vector.broadcast %19 : vector<1x32xf32> to vector<4x32xf32>
    %131 = arith.addf %129, %130 : vector<4x32xf32>
    %cst_73 = arith.constant dense<0.000000e+00> : vector<4x32xf32>
    %132 = tpu.matmul %118, %20, %cst_73 {dimension_numbers = #tpu.dot_dimension_numbers<[1], [0], [0], [1], [0, 0, 1, 1], [], []>} : vector<4x32xf32>, vector<32x32xf32>, vector<4x32xf32> -> vector<4x32xf32>
    %133 = arith.addf %131, %132 : vector<4x32xf32>
    %cst_74 = arith.constant 0.000000e+00 : f32
    %134 = vector.broadcast %cst_74 : f32 to vector<4x32xf32>
    %135 = arith.maximumf %133, %134 : vector<4x32xf32>
    %cst_75 = arith.constant dense<0.000000e+00> : vector<4x32xf32>
    %136 = tpu.matmul %120, %135, %cst_75 {dimension_numbers = #tpu.dot_dimension_numbers<[1], [0], [0], [1], [0, 0, 1, 1], [], []>} : vector<4x4xf32>, vector<4x32xf32>, vector<4x32xf32> -> vector<4x32xf32>
    %137 = vector.broadcast %125 : vector<4x1xf32> to vector<4x32xf32>
    %138 = arith.mulf %136, %137 : vector<4x32xf32>
    %cst_76 = arith.constant dense<0.000000e+00> : vector<4x32xf32>
    %139 = tpu.matmul %138, %21, %cst_76 {dimension_numbers = #tpu.dot_dimension_numbers<[1], [0], [0], [1], [0, 0, 1, 1], [], []>} : vector<4x32xf32>, vector<32x32xf32>, vector<4x32xf32> -> vector<4x32xf32>
    %140 = vector.broadcast %22 : vector<1x32xf32> to vector<4x32xf32>
    %141 = arith.addf %139, %140 : vector<4x32xf32>
    %cst_77 = arith.constant dense<0.000000e+00> : vector<4x32xf32>
    %142 = tpu.matmul %135, %23, %cst_77 {dimension_numbers = #tpu.dot_dimension_numbers<[1], [0], [0], [1], [0, 0, 1, 1], [], []>} : vector<4x32xf32>, vector<32x32xf32>, vector<4x32xf32> -> vector<4x32xf32>
    %143 = arith.addf %141, %142 : vector<4x32xf32>
    %cst_78 = arith.constant 0.000000e+00 : f32
    %144 = vector.broadcast %cst_78 : f32 to vector<4x32xf32>
    %145 = arith.maximumf %143, %144 : vector<4x32xf32>
    %cst_79 = arith.constant dense<0.000000e+00> : vector<4x32xf32>
    %146 = tpu.matmul %135, %24, %cst_79 {dimension_numbers = #tpu.dot_dimension_numbers<[1], [0], [0], [1], [0, 0, 1, 1], [], []>} : vector<4x32xf32>, vector<32x32xf32>, vector<4x32xf32> -> vector<4x32xf32>
    %cst_80 = arith.constant dense<0.000000e+00> : vector<4x32xf32>
    %147 = tpu.matmul %145, %25, %cst_80 {dimension_numbers = #tpu.dot_dimension_numbers<[1], [0], [0], [1], [0, 0, 1, 1], [], []>} : vector<4x32xf32>, vector<32x32xf32>, vector<4x32xf32> -> vector<4x32xf32>
    %148 = arith.addf %146, %147 : vector<4x32xf32>
    %149 = vector.broadcast %26 : vector<1x32xf32> to vector<4x32xf32>
    %150 = arith.addf %148, %149 : vector<4x32xf32>
    %cst_81 = arith.constant 0.000000e+00 : f32
    %151 = vector.broadcast %cst_81 : f32 to vector<4x32xf32>
    %152 = arith.maximumf %150, %151 : vector<4x32xf32>
    %cst_82 = arith.constant dense<0.000000e+00> : vector<32xf32>
    %153 = vector.multi_reduction <add>, %152, %cst_82 [0] : vector<4x32xf32> to vector<32xf32>
    %154 = vector.shape_cast %153 : vector<32xf32> to vector<1x32xf32>
    %cst_83 = arith.constant 4.000000e+00 : f32
    %155 = vector.broadcast %cst_83 : f32 to vector<1x32xf32>
    %156 = arith.divf %154, %155 : vector<1x32xf32>
    %cst_84 = arith.constant dense<0.000000e+00> : vector<1x32xf32>
    %157 = tpu.matmul %77, %27, %cst_84 {dimension_numbers = #tpu.dot_dimension_numbers<[1], [0], [0], [1], [0, 0, 1, 1], [], []>} : vector<1x32xf32>, vector<32x32xf32>, vector<1x32xf32> -> vector<1x32xf32>
    %158 = arith.addf %29, %157 : vector<1x32xf32>
    %cst_85 = arith.constant dense<0.000000e+00> : vector<1x32xf32>
    %159 = tpu.matmul %156, %28, %cst_85 {dimension_numbers = #tpu.dot_dimension_numbers<[1], [0], [0], [1], [0, 0, 1, 1], [], []>} : vector<1x32xf32>, vector<32x32xf32>, vector<1x32xf32> -> vector<1x32xf32>
    %160 = arith.addf %158, %159 : vector<1x32xf32>
    %cst_86 = arith.constant 0.000000e+00 : f32
    %161 = vector.broadcast %cst_86 : f32 to vector<1x32xf32>
    %162 = arith.maximumf %160, %161 : vector<1x32xf32>
    %cst_87 = arith.constant dense<0.000000e+00> : vector<1x4xf32>
    %163 = tpu.matmul %162, %30, %cst_87 {dimension_numbers = #tpu.dot_dimension_numbers<[1], [0], [0], [1], [0, 0, 1, 1], [], []>} : vector<1x32xf32>, vector<32x4xf32>, vector<1x4xf32> -> vector<1x4xf32>
    %164 = arith.addf %163, %31 : vector<1x4xf32>
    %cst_88 = arith.constant dense<0xFF800000> : vector<1xf32>
    %165 = vector.multi_reduction <maximumf>, %164, %cst_88 [1] : vector<1x4xf32> to vector<1xf32>
    %166 = vector.shape_cast %165 : vector<1xf32> to vector<1x1xf32>
    %167 = vector.broadcast %166 : vector<1x1xf32> to vector<1x4xf32>
    %168 = arith.subf %164, %167 : vector<1x4xf32>
    %169 = math.exp %168 : vector<1x4xf32>
    %cst_89 = arith.constant dense<0.000000e+00> : vector<1xf32>
    %170 = vector.multi_reduction <add>, %169, %cst_89 [1] : vector<1x4xf32> to vector<1xf32>
    %171 = vector.shape_cast %170 : vector<1xf32> to vector<1x1xf32>
    %172 = math.log %171 : vector<1x1xf32>
    %173 = vector.broadcast %172 : vector<1x1xf32> to vector<1x4xf32>
    %174 = arith.subf %168, %173 : vector<1x4xf32>
    %c0_90 = arith.constant 0 : index
    %c0_91 = arith.constant 0 : index
    %c0_92 = arith.constant 0 : index
    %175 = vector.load %arg5[%c0_90, %c0_91, %c0_92] : memref<2x1x4xf32, #tpu.memory_space<vmem>>, vector<1x1x4xf32>
    %176 = vector.shape_cast %175 : vector<1x1x4xf32> to vector<1x4xf32>
    %177 = vector.shape_cast %174 : vector<1x4xf32> to vector<1x1x4xf32>
    tpu.vector_store %arg5[%c0_90, %c0_91, %c0_92], %177 {strides = array<i32>} : memref<2x1x4xf32, #tpu.memory_space<vmem>>, vector<1x1x4xf32>,
    %c1 = arith.constant 1 : index
    %c0_93 = arith.constant 0 : index
    %c0_94 = arith.constant 0 : index
    %178 = vector.load %arg1[%c1, %c0_93, %c0_94] : memref<2x16x8xf32, #tpu.memory_space<vmem>>, vector<1x16x8xf32>
    %179 = vector.shape_cast %178 : vector<1x16x8xf32> to vector<16x8xf32>
    %c1_95 = arith.constant 1 : index
    %c0_96 = arith.constant 0 : index
    %c0_97 = arith.constant 0 : index
    %180 = vector.load %arg2[%c1_95, %c0_96, %c0_97] : memref<2x16x16xf32, #tpu.memory_space<vmem>>, vector<1x16x16xf32>
    %181 = vector.shape_cast %180 : vector<1x16x16xf32> to vector<16x16xf32>
    %c1_98 = arith.constant 1 : index
    %c0_99 = arith.constant 0 : index
    %c0_100 = arith.constant 0 : index
    %182 = vector.load %arg3[%c1_98, %c0_99, %c0_100] : memref<2x16x1xf32, #tpu.memory_space<vmem>>, vector<1x16x1xf32>
    %183 = vector.shape_cast %182 : vector<1x16x1xf32> to vector<16x1xf32>
    %cst_101 = arith.constant dense<0.000000e+00> : vector<16xf32>
    %184 = vector.multi_reduction <add>, %181, %cst_101 [1] : vector<16x16xf32> to vector<16xf32>
    %185 = vector.shape_cast %184 : vector<16xf32> to vector<16x1xf32>
    %cst_102 = arith.constant 1.000000e+00 : f32
    %186 = vector.broadcast %cst_102 : f32 to vector<16x1xf32>
    %187 = arith.maximumf %185, %186 : vector<16x1xf32>
    %188 = tpu.reciprocal %187 : vector<16x1xf32> -> vector<16x1xf32>
    %cst_103 = arith.constant dense<0.000000e+00> : vector<16x8xf32>
    %189 = tpu.matmul %181, %179, %cst_103 {dimension_numbers = #tpu.dot_dimension_numbers<[1], [0], [0], [1], [0, 0, 1, 1], [], []>} : vector<16x16xf32>, vector<16x8xf32>, vector<16x8xf32> -> vector<16x8xf32>
    %190 = vector.broadcast %188 : vector<16x1xf32> to vector<16x8xf32>
    %191 = arith.mulf %189, %190 : vector<16x8xf32>
    %cst_104 = arith.constant dense<0.000000e+00> : vector<16x32xf32>
    %192 = tpu.matmul %191, %9, %cst_104 {dimension_numbers = #tpu.dot_dimension_numbers<[1], [0], [0], [1], [0, 0, 1, 1], [], []>} : vector<16x8xf32>, vector<8x32xf32>, vector<16x32xf32> -> vector<16x32xf32>
    %193 = vector.broadcast %10 : vector<1x32xf32> to vector<16x32xf32>
    %194 = arith.addf %192, %193 : vector<16x32xf32>
    %cst_105 = arith.constant dense<0.000000e+00> : vector<16x32xf32>
    %195 = tpu.matmul %179, %11, %cst_105 {dimension_numbers = #tpu.dot_dimension_numbers<[1], [0], [0], [1], [0, 0, 1, 1], [], []>} : vector<16x8xf32>, vector<8x32xf32>, vector<16x32xf32> -> vector<16x32xf32>
    %196 = arith.addf %194, %195 : vector<16x32xf32>
    %197 = vector.broadcast %183 : vector<16x1xf32> to vector<16x32xf32>
    %198 = arith.mulf %196, %197 : vector<16x32xf32>
    %cst_106 = arith.constant 0.000000e+00 : f32
    %199 = vector.broadcast %cst_106 : f32 to vector<16x32xf32>
    %200 = arith.maximumf %198, %199 : vector<16x32xf32>
    %cst_107 = arith.constant dense<0.000000e+00> : vector<16x32xf32>
    %201 = tpu.matmul %181, %200, %cst_107 {dimension_numbers = #tpu.dot_dimension_numbers<[1], [0], [0], [1], [0, 0, 1, 1], [], []>} : vector<16x16xf32>, vector<16x32xf32>, vector<16x32xf32> -> vector<16x32xf32>
    %202 = vector.broadcast %188 : vector<16x1xf32> to vector<16x32xf32>
    %203 = arith.mulf %201, %202 : vector<16x32xf32>
    %cst_108 = arith.constant dense<0.000000e+00> : vector<16x32xf32>
    %204 = tpu.matmul %203, %12, %cst_108 {dimension_numbers = #tpu.dot_dimension_numbers<[1], [0], [0], [1], [0, 0, 1, 1], [], []>} : vector<16x32xf32>, vector<32x32xf32>, vector<16x32xf32> -> vector<16x32xf32>
    %205 = vector.broadcast %13 : vector<1x32xf32> to vector<16x32xf32>
    %206 = arith.addf %204, %205 : vector<16x32xf32>
    %cst_109 = arith.constant dense<0.000000e+00> : vector<16x32xf32>
    %207 = tpu.matmul %200, %14, %cst_109 {dimension_numbers = #tpu.dot_dimension_numbers<[1], [0], [0], [1], [0, 0, 1, 1], [], []>} : vector<16x32xf32>, vector<32x32xf32>, vector<16x32xf32> -> vector<16x32xf32>
    %208 = arith.addf %206, %207 : vector<16x32xf32>
    %209 = vector.broadcast %183 : vector<16x1xf32> to vector<16x32xf32>
    %210 = arith.mulf %208, %209 : vector<16x32xf32>
    %cst_110 = arith.constant 0.000000e+00 : f32
    %211 = vector.broadcast %cst_110 : f32 to vector<16x32xf32>
    %212 = arith.maximumf %210, %211 : vector<16x32xf32>
    %cst_111 = arith.constant dense<0.000000e+00> : vector<16x32xf32>
    %213 = tpu.matmul %200, %15, %cst_111 {dimension_numbers = #tpu.dot_dimension_numbers<[1], [0], [0], [1], [0, 0, 1, 1], [], []>} : vector<16x32xf32>, vector<32x32xf32>, vector<16x32xf32> -> vector<16x32xf32>
    %cst_112 = arith.constant dense<0.000000e+00> : vector<16x32xf32>
    %214 = tpu.matmul %212, %16, %cst_112 {dimension_numbers = #tpu.dot_dimension_numbers<[1], [0], [0], [1], [0, 0, 1, 1], [], []>} : vector<16x32xf32>, vector<32x32xf32>, vector<16x32xf32> -> vector<16x32xf32>
    %215 = arith.addf %213, %214 : vector<16x32xf32>
    %216 = vector.broadcast %17 : vector<1x32xf32> to vector<16x32xf32>
    %217 = arith.addf %215, %216 : vector<16x32xf32>
    %cst_113 = arith.constant 0.000000e+00 : f32
    %218 = vector.broadcast %cst_113 : f32 to vector<16x32xf32>
    %219 = arith.maximumf %217, %218 : vector<16x32xf32>
    %cst_114 = arith.constant dense<0.000000e+00> : vector<32xf32>
    %220 = vector.multi_reduction <add>, %219, %cst_114 [0] : vector<16x32xf32> to vector<32xf32>
    %221 = vector.shape_cast %220 : vector<32xf32> to vector<1x32xf32>
    %cst_115 = arith.constant 1.600000e+01 : f32
    %222 = vector.broadcast %cst_115 : f32 to vector<1x32xf32>
    %223 = arith.divf %221, %222 : vector<1x32xf32>
    %cst_116 = arith.constant dense<0.000000e+00> : vector<16x32xf32>
    %224 = tpu.matmul %191, %0, %cst_116 {dimension_numbers = #tpu.dot_dimension_numbers<[1], [0], [0], [1], [0, 0, 1, 1], [], []>} : vector<16x8xf32>, vector<8x32xf32>, vector<16x32xf32> -> vector<16x32xf32>
    %225 = vector.broadcast %1 : vector<1x32xf32> to vector<16x32xf32>
    %226 = arith.addf %224, %225 : vector<16x32xf32>
    %cst_117 = arith.constant dense<0.000000e+00> : vector<16x32xf32>
    %227 = tpu.matmul %179, %2, %cst_117 {dimension_numbers = #tpu.dot_dimension_numbers<[1], [0], [0], [1], [0, 0, 1, 1], [], []>} : vector<16x8xf32>, vector<8x32xf32>, vector<16x32xf32> -> vector<16x32xf32>
    %228 = arith.addf %226, %227 : vector<16x32xf32>
    %229 = vector.broadcast %183 : vector<16x1xf32> to vector<16x32xf32>
    %230 = arith.mulf %228, %229 : vector<16x32xf32>
    %cst_118 = arith.constant 0.000000e+00 : f32
    %231 = vector.broadcast %cst_118 : f32 to vector<16x32xf32>
    %232 = arith.maximumf %230, %231 : vector<16x32xf32>
    %cst_119 = arith.constant dense<0.000000e+00> : vector<16x32xf32>
    %233 = tpu.matmul %181, %232, %cst_119 {dimension_numbers = #tpu.dot_dimension_numbers<[1], [0], [0], [1], [0, 0, 1, 1], [], []>} : vector<16x16xf32>, vector<16x32xf32>, vector<16x32xf32> -> vector<16x32xf32>
    %234 = vector.broadcast %188 : vector<16x1xf32> to vector<16x32xf32>
    %235 = arith.mulf %233, %234 : vector<16x32xf32>
    %cst_120 = arith.constant dense<0.000000e+00> : vector<16x4xf32>
    %236 = tpu.matmul %235, %3, %cst_120 {dimension_numbers = #tpu.dot_dimension_numbers<[1], [0], [0], [1], [0, 0, 1, 1], [], []>} : vector<16x32xf32>, vector<32x4xf32>, vector<16x4xf32> -> vector<16x4xf32>
    %237 = vector.broadcast %4 : vector<1x4xf32> to vector<16x4xf32>
    %238 = arith.addf %236, %237 : vector<16x4xf32>
    %cst_121 = arith.constant dense<0.000000e+00> : vector<16x4xf32>
    %239 = tpu.matmul %232, %5, %cst_121 {dimension_numbers = #tpu.dot_dimension_numbers<[1], [0], [0], [1], [0, 0, 1, 1], [], []>} : vector<16x32xf32>, vector<32x4xf32>, vector<16x4xf32> -> vector<16x4xf32>
    %240 = arith.addf %238, %239 : vector<16x4xf32>
    %241 = vector.broadcast %183 : vector<16x1xf32> to vector<16x4xf32>
    %242 = arith.mulf %240, %241 : vector<16x4xf32>
    %cst_122 = arith.constant 0.000000e+00 : f32
    %243 = vector.broadcast %cst_122 : f32 to vector<16x4xf32>
    %244 = arith.maximumf %242, %243 : vector<16x4xf32>
    %cst_123 = arith.constant dense<0.000000e+00> : vector<16x4xf32>
    %245 = tpu.matmul %232, %6, %cst_123 {dimension_numbers = #tpu.dot_dimension_numbers<[1], [0], [0], [1], [0, 0, 1, 1], [], []>} : vector<16x32xf32>, vector<32x4xf32>, vector<16x4xf32> -> vector<16x4xf32>
    %cst_124 = arith.constant dense<0.000000e+00> : vector<16x4xf32>
    %246 = tpu.matmul %244, %7, %cst_124 {dimension_numbers = #tpu.dot_dimension_numbers<[1], [0], [0], [1], [0, 0, 1, 1], [], []>} : vector<16x4xf32>, vector<4x4xf32>, vector<16x4xf32> -> vector<16x4xf32>
    %247 = arith.addf %245, %246 : vector<16x4xf32>
    %248 = vector.broadcast %8 : vector<1x4xf32> to vector<16x4xf32>
    %249 = arith.addf %247, %248 : vector<16x4xf32>
    %cst_125 = arith.constant dense<0xFF800000> : vector<16xf32>
    %250 = vector.multi_reduction <maximumf>, %249, %cst_125 [1] : vector<16x4xf32> to vector<16xf32>
    %251 = vector.shape_cast %250 : vector<16xf32> to vector<16x1xf32>
    %252 = vector.broadcast %251 : vector<16x1xf32> to vector<16x4xf32>
    %253 = arith.subf %249, %252 : vector<16x4xf32>
    %254 = math.exp %253 : vector<16x4xf32>
    %cst_126 = arith.constant dense<0.000000e+00> : vector<16xf32>
    %255 = vector.multi_reduction <add>, %254, %cst_126 [1] : vector<16x4xf32> to vector<16xf32>
    %256 = vector.shape_cast %255 : vector<16xf32> to vector<16x1xf32>
    %257 = tpu.reciprocal %256 : vector<16x1xf32> -> vector<16x1xf32>
    %258 = vector.broadcast %257 : vector<16x1xf32> to vector<16x4xf32>
    %259 = arith.mulf %254, %258 : vector<16x4xf32>
    %260 = vector.broadcast %183 : vector<16x1xf32> to vector<16x32xf32>
    %261 = arith.mulf %219, %260 : vector<16x32xf32>
    %262 = vector.broadcast %183 : vector<16x1xf32> to vector<16x4xf32>
    %263 = arith.mulf %259, %262 : vector<16x4xf32>
    %cst_127 = arith.constant dense<0.000000e+00> : vector<4x32xf32>
    %264 = tpu.matmul %263, %261, %cst_127 {dimension_numbers = #tpu.dot_dimension_numbers<[0], [0], [1], [1], [0, 1, 1, 1], [], []>} : vector<16x4xf32>, vector<16x32xf32>, vector<4x32xf32> -> vector<4x32xf32>
    %cst_128 = arith.constant dense<0.000000e+00> : vector<4x16xf32>
    %265 = tpu.matmul %263, %181, %cst_128 {dimension_numbers = #tpu.dot_dimension_numbers<[0], [0], [1], [1], [0, 1, 1, 1], [], []>} : vector<16x4xf32>, vector<16x16xf32>, vector<4x16xf32> -> vector<4x16xf32>
    %cst_129 = arith.constant dense<0.000000e+00> : vector<4x4xf32>
    %266 = tpu.matmul %265, %263, %cst_129 {dimension_numbers = #tpu.dot_dimension_numbers<[1], [0], [0], [1], [0, 0, 1, 1], [], []>} : vector<4x16xf32>, vector<16x4xf32>, vector<4x4xf32> -> vector<4x4xf32>
    %cst_130 = arith.constant dense<0.000000e+00> : vector<4xf32>
    %267 = vector.multi_reduction <add>, %266, %cst_130 [1] : vector<4x4xf32> to vector<4xf32>
    %268 = vector.shape_cast %267 : vector<4xf32> to vector<4x1xf32>
    %cst_131 = arith.constant 1.000000e+00 : f32
    %269 = vector.broadcast %cst_131 : f32 to vector<4x1xf32>
    %270 = arith.maximumf %268, %269 : vector<4x1xf32>
    %271 = tpu.reciprocal %270 : vector<4x1xf32> -> vector<4x1xf32>
    %cst_132 = arith.constant dense<0.000000e+00> : vector<4x32xf32>
    %272 = tpu.matmul %266, %264, %cst_132 {dimension_numbers = #tpu.dot_dimension_numbers<[1], [0], [0], [1], [0, 0, 1, 1], [], []>} : vector<4x4xf32>, vector<4x32xf32>, vector<4x32xf32> -> vector<4x32xf32>
    %273 = vector.broadcast %271 : vector<4x1xf32> to vector<4x32xf32>
    %274 = arith.mulf %272, %273 : vector<4x32xf32>
    %cst_133 = arith.constant dense<0.000000e+00> : vector<4x32xf32>
    %275 = tpu.matmul %274, %18, %cst_133 {dimension_numbers = #tpu.dot_dimension_numbers<[1], [0], [0], [1], [0, 0, 1, 1], [], []>} : vector<4x32xf32>, vector<32x32xf32>, vector<4x32xf32> -> vector<4x32xf32>
    %276 = vector.broadcast %19 : vector<1x32xf32> to vector<4x32xf32>
    %277 = arith.addf %275, %276 : vector<4x32xf32>
    %cst_134 = arith.constant dense<0.000000e+00> : vector<4x32xf32>
    %278 = tpu.matmul %264, %20, %cst_134 {dimension_numbers = #tpu.dot_dimension_numbers<[1], [0], [0], [1], [0, 0, 1, 1], [], []>} : vector<4x32xf32>, vector<32x32xf32>, vector<4x32xf32> -> vector<4x32xf32>
    %279 = arith.addf %277, %278 : vector<4x32xf32>
    %cst_135 = arith.constant 0.000000e+00 : f32
    %280 = vector.broadcast %cst_135 : f32 to vector<4x32xf32>
    %281 = arith.maximumf %279, %280 : vector<4x32xf32>
    %cst_136 = arith.constant dense<0.000000e+00> : vector<4x32xf32>
    %282 = tpu.matmul %266, %281, %cst_136 {dimension_numbers = #tpu.dot_dimension_numbers<[1], [0], [0], [1], [0, 0, 1, 1], [], []>} : vector<4x4xf32>, vector<4x32xf32>, vector<4x32xf32> -> vector<4x32xf32>
    %283 = vector.broadcast %271 : vector<4x1xf32> to vector<4x32xf32>
    %284 = arith.mulf %282, %283 : vector<4x32xf32>
    %cst_137 = arith.constant dense<0.000000e+00> : vector<4x32xf32>
    %285 = tpu.matmul %284, %21, %cst_137 {dimension_numbers = #tpu.dot_dimension_numbers<[1], [0], [0], [1], [0, 0, 1, 1], [], []>} : vector<4x32xf32>, vector<32x32xf32>, vector<4x32xf32> -> vector<4x32xf32>
    %286 = vector.broadcast %22 : vector<1x32xf32> to vector<4x32xf32>
    %287 = arith.addf %285, %286 : vector<4x32xf32>
    %cst_138 = arith.constant dense<0.000000e+00> : vector<4x32xf32>
    %288 = tpu.matmul %281, %23, %cst_138 {dimension_numbers = #tpu.dot_dimension_numbers<[1], [0], [0], [1], [0, 0, 1, 1], [], []>} : vector<4x32xf32>, vector<32x32xf32>, vector<4x32xf32> -> vector<4x32xf32>
    %289 = arith.addf %287, %288 : vector<4x32xf32>
    %cst_139 = arith.constant 0.000000e+00 : f32
    %290 = vector.broadcast %cst_139 : f32 to vector<4x32xf32>
    %291 = arith.maximumf %289, %290 : vector<4x32xf32>
    %cst_140 = arith.constant dense<0.000000e+00> : vector<4x32xf32>
    %292 = tpu.matmul %281, %24, %cst_140 {dimension_numbers = #tpu.dot_dimension_numbers<[1], [0], [0], [1], [0, 0, 1, 1], [], []>} : vector<4x32xf32>, vector<32x32xf32>, vector<4x32xf32> -> vector<4x32xf32>
    %cst_141 = arith.constant dense<0.000000e+00> : vector<4x32xf32>
    %293 = tpu.matmul %291, %25, %cst_141 {dimension_numbers = #tpu.dot_dimension_numbers<[1], [0], [0], [1], [0, 0, 1, 1], [], []>} : vector<4x32xf32>, vector<32x32xf32>, vector<4x32xf32> -> vector<4x32xf32>
    %294 = arith.addf %292, %293 : vector<4x32xf32>
    %295 = vector.broadcast %26 : vector<1x32xf32> to vector<4x32xf32>
    %296 = arith.addf %294, %295 : vector<4x32xf32>
    %cst_142 = arith.constant 0.000000e+00 : f32
    %297 = vector.broadcast %cst_142 : f32 to vector<4x32xf32>
    %298 = arith.maximumf %296, %297 : vector<4x32xf32>
    %cst_143 = arith.constant dense<0.000000e+00> : vector<32xf32>
    %299 = vector.multi_reduction <add>, %298, %cst_143 [0] : vector<4x32xf32> to vector<32xf32>
    %300 = vector.shape_cast %299 : vector<32xf32> to vector<1x32xf32>
    %cst_144 = arith.constant 4.000000e+00 : f32
    %301 = vector.broadcast %cst_144 : f32 to vector<1x32xf32>
    %302 = arith.divf %300, %301 : vector<1x32xf32>
    %cst_145 = arith.constant dense<0.000000e+00> : vector<1x32xf32>
    %303 = tpu.matmul %223, %27, %cst_145 {dimension_numbers = #tpu.dot_dimension_numbers<[1], [0], [0], [1], [0, 0, 1, 1], [], []>} : vector<1x32xf32>, vector<32x32xf32>, vector<1x32xf32> -> vector<1x32xf32>
    %304 = arith.addf %29, %303 : vector<1x32xf32>
    %cst_146 = arith.constant dense<0.000000e+00> : vector<1x32xf32>
    %305 = tpu.matmul %302, %28, %cst_146 {dimension_numbers = #tpu.dot_dimension_numbers<[1], [0], [0], [1], [0, 0, 1, 1], [], []>} : vector<1x32xf32>, vector<32x32xf32>, vector<1x32xf32> -> vector<1x32xf32>
    %306 = arith.addf %304, %305 : vector<1x32xf32>
    %cst_147 = arith.constant 0.000000e+00 : f32
    %307 = vector.broadcast %cst_147 : f32 to vector<1x32xf32>
    %308 = arith.maximumf %306, %307 : vector<1x32xf32>
    %cst_148 = arith.constant dense<0.000000e+00> : vector<1x4xf32>
    %309 = tpu.matmul %308, %30, %cst_148 {dimension_numbers = #tpu.dot_dimension_numbers<[1], [0], [0], [1], [0, 0, 1, 1], [], []>} : vector<1x32xf32>, vector<32x4xf32>, vector<1x4xf32> -> vector<1x4xf32>
    %310 = arith.addf %309, %31 : vector<1x4xf32>
    %cst_149 = arith.constant dense<0xFF800000> : vector<1xf32>
    %311 = vector.multi_reduction <maximumf>, %310, %cst_149 [1] : vector<1x4xf32> to vector<1xf32>
    %312 = vector.shape_cast %311 : vector<1xf32> to vector<1x1xf32>
    %313 = vector.broadcast %312 : vector<1x1xf32> to vector<1x4xf32>
    %314 = arith.subf %310, %313 : vector<1x4xf32>
    %315 = math.exp %314 : vector<1x4xf32>
    %cst_150 = arith.constant dense<0.000000e+00> : vector<1xf32>
    %316 = vector.multi_reduction <add>, %315, %cst_150 [1] : vector<1x4xf32> to vector<1xf32>
    %317 = vector.shape_cast %316 : vector<1xf32> to vector<1x1xf32>
    %318 = math.log %317 : vector<1x1xf32>
    %319 = vector.broadcast %318 : vector<1x1xf32> to vector<1x4xf32>
    %320 = arith.subf %314, %319 : vector<1x4xf32>
    %c1_151 = arith.constant 1 : index
    %c0_152 = arith.constant 0 : index
    %c0_153 = arith.constant 0 : index
    %321 = vector.load %arg5[%c1_151, %c0_152, %c0_153] : memref<2x1x4xf32, #tpu.memory_space<vmem>>, vector<1x1x4xf32>
    %322 = vector.shape_cast %321 : vector<1x1x4xf32> to vector<1x4xf32>
    %323 = vector.shape_cast %320 : vector<1x4xf32> to vector<1x1x4xf32>
    tpu.vector_store %arg5[%c1_151, %c0_152, %c0_153], %323 {strides = array<i32>} : memref<2x1x4xf32, #tpu.memory_space<vmem>>, vector<1x1x4xf32>,
    return
  }
  func.func @transform_0(%arg0: i32) -> (i32, i32, i32) {
    %c0_i32 = arith.constant 0 : i32
    %c0_i32_0 = arith.constant 0 : i32
    %c0_i32_1 = arith.constant 0 : i32
    return %arg0, %c0_i32, %c0_i32_0 : i32, i32, i32
  }
  func.func @transform_1(%arg0: i32) -> (i32, i32, i32) {
    %c0_i32 = arith.constant 0 : i32
    %c0_i32_0 = arith.constant 0 : i32
    %c0_i32_1 = arith.constant 0 : i32
    return %arg0, %c0_i32, %c0_i32_0 : i32, i32, i32
  }
  func.func @transform_2(%arg0: i32) -> (i32, i32, i32) {
    %c0_i32 = arith.constant 0 : i32
    %c0_i32_0 = arith.constant 0 : i32
    %c0_i32_1 = arith.constant 0 : i32
    return %arg0, %c0_i32, %c0_i32_0 : i32, i32, i32
  }
  func.func @transform_3(%arg0: i32) -> (i32, i32) {
    %c0_i32 = arith.constant 0 : i32
    %c0_i32_0 = arith.constant 0 : i32
    %c0_i32_1 = arith.constant 0 : i32
    return %c0_i32, %c0_i32_0 : i32, i32
  }
  func.func @transform_4(%arg0: i32) -> (i32, i32, i32) {
    %c0_i32 = arith.constant 0 : i32
    %c0_i32_0 = arith.constant 0 : i32
    %c0_i32_1 = arith.constant 0 : i32
    return %arg0, %c0_i32, %c0_i32_0 : i32, i32, i32
  }
}

module attributes {stable_mosaic.version = 11 : i64} {
  func.func @kernel(%arg0: i32, %arg1: memref<2x16x8xf32, #tpu.memory_space<vmem>>, %arg2: memref<2x16x16xf32, #tpu.memory_space<vmem>>, %arg3: memref<2x16x1xf32, #tpu.memory_space<vmem>>, %arg4: memref<640x128xf32, #tpu.memory_space<vmem>>, %arg5: memref<2x1x4xf32, #tpu.memory_space<vmem>>) attributes {dimension_semantics = [#tpu.dimension_semantics<parallel>], iteration_bounds = array<i64: 1>, scalar_prefetch = 0 : i64, scratch_operands = 0 : i64, tpu.core_type = #tpu.core_type<tc>, window_params = [{transform_indices = @transform_0, window_bounds = array<i64: 2, 16, 8>}, {transform_indices = @transform_1, window_bounds = array<i64: 2, 16, 16>}, {transform_indices = @transform_2, window_bounds = array<i64: 2, 16, 1>}, {pipeline_mode = #tpu.pipeline_mode<synchronous>, transform_indices = @transform_3, window_bounds = array<i64: 640, 128>}, {transform_indices = @transform_4, window_bounds = array<i64: 2, 1, 4>}]} {
    %c0 = arith.constant 0 : index
    %c0_0 = arith.constant 0 : index
    %0 = vector.load %arg4[%c0, %c0_0] : memref<640x128xf32, #tpu.memory_space<vmem>>, vector<8x32xf32>
    %c8 = arith.constant 8 : index
    %c0_1 = arith.constant 0 : index
    %1 = vector.load %arg4[%c8, %c0_1] : memref<640x128xf32, #tpu.memory_space<vmem>>, vector<1x32xf32>
    %c16 = arith.constant 16 : index
    %c0_2 = arith.constant 0 : index
    %2 = vector.load %arg4[%c16, %c0_2] : memref<640x128xf32, #tpu.memory_space<vmem>>, vector<8x32xf32>
    %c24 = arith.constant 24 : index
    %c0_3 = arith.constant 0 : index
    %3 = vector.load %arg4[%c24, %c0_3] : memref<640x128xf32, #tpu.memory_space<vmem>>, vector<32x4xf32>
    %c56 = arith.constant 56 : index
    %c0_4 = arith.constant 0 : index
    %4 = vector.load %arg4[%c56, %c0_4] : memref<640x128xf32, #tpu.memory_space<vmem>>, vector<1x4xf32>
    %c64 = arith.constant 64 : index
    %c0_5 = arith.constant 0 : index
    %5 = vector.load %arg4[%c64, %c0_5] : memref<640x128xf32, #tpu.memory_space<vmem>>, vector<32x4xf32>
    %c96 = arith.constant 96 : index
    %c0_6 = arith.constant 0 : index
    %6 = vector.load %arg4[%c96, %c0_6] : memref<640x128xf32, #tpu.memory_space<vmem>>, vector<32x4xf32>
    %c128 = arith.constant 128 : index
    %c0_7 = arith.constant 0 : index
    %7 = vector.load %arg4[%c128, %c0_7] : memref<640x128xf32, #tpu.memory_space<vmem>>, vector<4x4xf32>
    %c136 = arith.constant 136 : index
    %c0_8 = arith.constant 0 : index
    %8 = vector.load %arg4[%c136, %c0_8] : memref<640x128xf32, #tpu.memory_space<vmem>>, vector<1x4xf32>
    %c144 = arith.constant 144 : index
    %c0_9 = arith.constant 0 : index
    %9 = vector.load %arg4[%c144, %c0_9] : memref<640x128xf32, #tpu.memory_space<vmem>>, vector<8x32xf32>
    %c152 = arith.constant 152 : index
    %c0_10 = arith.constant 0 : index
    %10 = vector.load %arg4[%c152, %c0_10] : memref<640x128xf32, #tpu.memory_space<vmem>>, vector<1x32xf32>
    %c160 = arith.constant 160 : index
    %c0_11 = arith.constant 0 : index
    %11 = vector.load %arg4[%c160, %c0_11] : memref<640x128xf32, #tpu.memory_space<vmem>>, vector<8x32xf32>
    %c168 = arith.constant 168 : index
    %c0_12 = arith.constant 0 : index
    %12 = vector.load %arg4[%c168, %c0_12] : memref<640x128xf32, #tpu.memory_space<vmem>>, vector<32x32xf32>
    %c200 = arith.constant 200 : index
    %c0_13 = arith.constant 0 : index
    %13 = vector.load %arg4[%c200, %c0_13] : memref<640x128xf32, #tpu.memory_space<vmem>>, vector<1x32xf32>
    %c208 = arith.constant 208 : index
    %c0_14 = arith.constant 0 : index
    %14 = vector.load %arg4[%c208, %c0_14] : memref<640x128xf32, #tpu.memory_space<vmem>>, vector<32x32xf32>
    %c240 = arith.constant 240 : index
    %c0_15 = arith.constant 0 : index
    %15 = vector.load %arg4[%c240, %c0_15] : memref<640x128xf32, #tpu.memory_space<vmem>>, vector<32x32xf32>
    %c272 = arith.constant 272 : index
    %c0_16 = arith.constant 0 : index
    %16 = vector.load %arg4[%c272, %c0_16] : memref<640x128xf32, #tpu.memory_space<vmem>>, vector<32x32xf32>
    %c304 = arith.constant 304 : index
    %c0_17 = arith.constant 0 : index
    %17 = vector.load %arg4[%c304, %c0_17] : memref<640x128xf32, #tpu.memory_space<vmem>>, vector<1x32xf32>
    %c312 = arith.constant 312 : index
    %c0_18 = arith.constant 0 : index
    %18 = vector.load %arg4[%c312, %c0_18] : memref<640x128xf32, #tpu.memory_space<vmem>>, vector<32x32xf32>
    %c344 = arith.constant 344 : index
    %c0_19 = arith.constant 0 : index
    %19 = vector.load %arg4[%c344, %c0_19] : memref<640x128xf32, #tpu.memory_space<vmem>>, vector<1x32xf32>
    %c352 = arith.constant 352 : index
    %c0_20 = arith.constant 0 : index
    %20 = vector.load %arg4[%c352, %c0_20] : memref<640x128xf32, #tpu.memory_space<vmem>>, vector<32x32xf32>
    %c384 = arith.constant 384 : index
    %c0_21 = arith.constant 0 : index
    %21 = vector.load %arg4[%c384, %c0_21] : memref<640x128xf32, #tpu.memory_space<vmem>>, vector<32x32xf32>
    %c416 = arith.constant 416 : index
    %c0_22 = arith.constant 0 : index
    %22 = vector.load %arg4[%c416, %c0_22] : memref<640x128xf32, #tpu.memory_space<vmem>>, vector<1x32xf32>
    %c424 = arith.constant 424 : index
    %c0_23 = arith.constant 0 : index
    %23 = vector.load %arg4[%c424, %c0_23] : memref<640x128xf32, #tpu.memory_space<vmem>>, vector<32x32xf32>
    %c456 = arith.constant 456 : index
    %c0_24 = arith.constant 0 : index
    %24 = vector.load %arg4[%c456, %c0_24] : memref<640x128xf32, #tpu.memory_space<vmem>>, vector<32x32xf32>
    %c488 = arith.constant 488 : index
    %c0_25 = arith.constant 0 : index
    %25 = vector.load %arg4[%c488, %c0_25] : memref<640x128xf32, #tpu.memory_space<vmem>>, vector<32x32xf32>
    %c520 = arith.constant 520 : index
    %c0_26 = arith.constant 0 : index
    %26 = vector.load %arg4[%c520, %c0_26] : memref<640x128xf32, #tpu.memory_space<vmem>>, vector<1x32xf32>
    %c528 = arith.constant 528 : index
    %c0_27 = arith.constant 0 : index
    %27 = vector.load %arg4[%c528, %c0_27] : memref<640x128xf32, #tpu.memory_space<vmem>>, vector<32x32xf32>
    %c560 = arith.constant 560 : index
    %c0_28 = arith.constant 0 : index
    %28 = vector.load %arg4[%c560, %c0_28] : memref<640x128xf32, #tpu.memory_space<vmem>>, vector<32x32xf32>
    %c592 = arith.constant 592 : index
    %c0_29 = arith.constant 0 : index
    %29 = vector.load %arg4[%c592, %c0_29] : memref<640x128xf32, #tpu.memory_space<vmem>>, vector<1x32xf32>
    %c600 = arith.constant 600 : index
    %c0_30 = arith.constant 0 : index
    %30 = vector.load %arg4[%c600, %c0_30] : memref<640x128xf32, #tpu.memory_space<vmem>>, vector<32x4xf32>
    %c632 = arith.constant 632 : index
    %c0_31 = arith.constant 0 : index
    %31 = vector.load %arg4[%c632, %c0_31] : memref<640x128xf32, #tpu.memory_space<vmem>>, vector<1x4xf32>
    %c0_32 = arith.constant 0 : index
    %c0_33 = arith.constant 0 : index
    %c0_34 = arith.constant 0 : index
    %32 = vector.load %arg1[%c0_32, %c0_33, %c0_34] : memref<2x16x8xf32, #tpu.memory_space<vmem>>, vector<1x16x8xf32>
    %33 = vector.shape_cast %32 : vector<1x16x8xf32> to vector<16x8xf32>
    %c0_35 = arith.constant 0 : index
    %c0_36 = arith.constant 0 : index
    %c0_37 = arith.constant 0 : index
    %34 = vector.load %arg2[%c0_35, %c0_36, %c0_37] : memref<2x16x16xf32, #tpu.memory_space<vmem>>, vector<1x16x16xf32>
    %35 = vector.shape_cast %34 : vector<1x16x16xf32> to vector<16x16xf32>
    %c0_38 = arith.constant 0 : index
    %c0_39 = arith.constant 0 : index
    %c0_40 = arith.constant 0 : index
    %36 = vector.load %arg3[%c0_38, %c0_39, %c0_40] : memref<2x16x1xf32, #tpu.memory_space<vmem>>, vector<1x16x1xf32>
    %37 = vector.shape_cast %36 : vector<1x16x1xf32> to vector<16x1xf32>
    %cst = arith.constant dense<0.000000e+00> : vector<16xf32>
    %38 = vector.multi_reduction <add>, %35, %cst [1] : vector<16x16xf32> to vector<16xf32>
    %39 = vector.shape_cast %38 : vector<16xf32> to vector<16x1xf32>
    %cst_41 = arith.constant 1.000000e+00 : f32
    %40 = vector.broadcast %cst_41 : f32 to vector<16x1xf32>
    %41 = arith.maximumf %39, %40 : vector<16x1xf32>
    %42 = tpu.reciprocal %41 : vector<16x1xf32> -> vector<16x1xf32>
    %cst_42 = arith.constant dense<0.000000e+00> : vector<16x8xf32>
    %43 = tpu.matmul %35, %33, %cst_42 {dimension_numbers = #tpu.dot_dimension_numbers<[1], [0], [0], [1], [0, 0, 1, 1], [], []>} : vector<16x16xf32>, vector<16x8xf32>, vector<16x8xf32> -> vector<16x8xf32>
    %44 = vector.broadcast %42 : vector<16x1xf32> to vector<16x8xf32>
    %45 = arith.mulf %43, %44 : vector<16x8xf32>
    %cst_43 = arith.constant dense<0.000000e+00> : vector<16x32xf32>
    %46 = tpu.matmul %45, %9, %cst_43 {dimension_numbers = #tpu.dot_dimension_numbers<[1], [0], [0], [1], [0, 0, 1, 1], [], []>} : vector<16x8xf32>, vector<8x32xf32>, vector<16x32xf32> -> vector<16x32xf32>
    %47 = vector.broadcast %10 : vector<1x32xf32> to vector<16x32xf32>
    %48 = arith.addf %46, %47 : vector<16x32xf32>
    %cst_44 = arith.constant dense<0.000000e+00> : vector<16x32xf32>
    %49 = tpu.matmul %33, %11, %cst_44 {dimension_numbers = #tpu.dot_dimension_numbers<[1], [0], [0], [1], [0, 0, 1, 1], [], []>} : vector<16x8xf32>, vector<8x32xf32>, vector<16x32xf32> -> vector<16x32xf32>
    %50 = arith.addf %48, %49 : vector<16x32xf32>
    %51 = vector.broadcast %37 : vector<16x1xf32> to vector<16x32xf32>
    %52 = arith.mulf %50, %51 : vector<16x32xf32>
    %cst_45 = arith.constant 0.000000e+00 : f32
    %53 = vector.broadcast %cst_45 : f32 to vector<16x32xf32>
    %54 = arith.maximumf %52, %53 : vector<16x32xf32>
    %cst_46 = arith.constant dense<0.000000e+00> : vector<16x32xf32>
    %55 = tpu.matmul %35, %54, %cst_46 {dimension_numbers = #tpu.dot_dimension_numbers<[1], [0], [0], [1], [0, 0, 1, 1], [], []>} : vector<16x16xf32>, vector<16x32xf32>, vector<16x32xf32> -> vector<16x32xf32>
    %56 = vector.broadcast %42 : vector<16x1xf32> to vector<16x32xf32>
    %57 = arith.mulf %55, %56 : vector<16x32xf32>
    %cst_47 = arith.constant dense<0.000000e+00> : vector<16x32xf32>
    %58 = tpu.matmul %57, %12, %cst_47 {dimension_numbers = #tpu.dot_dimension_numbers<[1], [0], [0], [1], [0, 0, 1, 1], [], []>} : vector<16x32xf32>, vector<32x32xf32>, vector<16x32xf32> -> vector<16x32xf32>
    %59 = vector.broadcast %13 : vector<1x32xf32> to vector<16x32xf32>
    %60 = arith.addf %58, %59 : vector<16x32xf32>
    %cst_48 = arith.constant dense<0.000000e+00> : vector<16x32xf32>
    %61 = tpu.matmul %54, %14, %cst_48 {dimension_numbers = #tpu.dot_dimension_numbers<[1], [0], [0], [1], [0, 0, 1, 1], [], []>} : vector<16x32xf32>, vector<32x32xf32>, vector<16x32xf32> -> vector<16x32xf32>
    %62 = arith.addf %60, %61 : vector<16x32xf32>
    %63 = vector.broadcast %37 : vector<16x1xf32> to vector<16x32xf32>
    %64 = arith.mulf %62, %63 : vector<16x32xf32>
    %cst_49 = arith.constant 0.000000e+00 : f32
    %65 = vector.broadcast %cst_49 : f32 to vector<16x32xf32>
    %66 = arith.maximumf %64, %65 : vector<16x32xf32>
    %cst_50 = arith.constant dense<0.000000e+00> : vector<16x32xf32>
    %67 = tpu.matmul %54, %15, %cst_50 {dimension_numbers = #tpu.dot_dimension_numbers<[1], [0], [0], [1], [0, 0, 1, 1], [], []>} : vector<16x32xf32>, vector<32x32xf32>, vector<16x32xf32> -> vector<16x32xf32>
    %cst_51 = arith.constant dense<0.000000e+00> : vector<16x32xf32>
    %68 = tpu.matmul %66, %16, %cst_51 {dimension_numbers = #tpu.dot_dimension_numbers<[1], [0], [0], [1], [0, 0, 1, 1], [], []>} : vector<16x32xf32>, vector<32x32xf32>, vector<16x32xf32> -> vector<16x32xf32>
    %69 = arith.addf %67, %68 : vector<16x32xf32>
    %70 = vector.broadcast %17 : vector<1x32xf32> to vector<16x32xf32>
    %71 = arith.addf %69, %70 : vector<16x32xf32>
    %cst_52 = arith.constant 0.000000e+00 : f32
    %72 = vector.broadcast %cst_52 : f32 to vector<16x32xf32>
    %73 = arith.maximumf %71, %72 : vector<16x32xf32>
    %cst_53 = arith.constant dense<0.000000e+00> : vector<32xf32>
    %74 = vector.multi_reduction <add>, %73, %cst_53 [0] : vector<16x32xf32> to vector<32xf32>
    %75 = vector.shape_cast %74 : vector<32xf32> to vector<1x32xf32>
    %cst_54 = arith.constant 1.600000e+01 : f32
    %76 = vector.broadcast %cst_54 : f32 to vector<1x32xf32>
    %77 = arith.divf %75, %76 : vector<1x32xf32>
    %cst_55 = arith.constant dense<0.000000e+00> : vector<16x32xf32>
    %78 = tpu.matmul %45, %0, %cst_55 {dimension_numbers = #tpu.dot_dimension_numbers<[1], [0], [0], [1], [0, 0, 1, 1], [], []>} : vector<16x8xf32>, vector<8x32xf32>, vector<16x32xf32> -> vector<16x32xf32>
    %79 = vector.broadcast %1 : vector<1x32xf32> to vector<16x32xf32>
    %80 = arith.addf %78, %79 : vector<16x32xf32>
    %cst_56 = arith.constant dense<0.000000e+00> : vector<16x32xf32>
    %81 = tpu.matmul %33, %2, %cst_56 {dimension_numbers = #tpu.dot_dimension_numbers<[1], [0], [0], [1], [0, 0, 1, 1], [], []>} : vector<16x8xf32>, vector<8x32xf32>, vector<16x32xf32> -> vector<16x32xf32>
    %82 = arith.addf %80, %81 : vector<16x32xf32>
    %83 = vector.broadcast %37 : vector<16x1xf32> to vector<16x32xf32>
    %84 = arith.mulf %82, %83 : vector<16x32xf32>
    %cst_57 = arith.constant 0.000000e+00 : f32
    %85 = vector.broadcast %cst_57 : f32 to vector<16x32xf32>
    %86 = arith.maximumf %84, %85 : vector<16x32xf32>
    %cst_58 = arith.constant dense<0.000000e+00> : vector<16x32xf32>
    %87 = tpu.matmul %35, %86, %cst_58 {dimension_numbers = #tpu.dot_dimension_numbers<[1], [0], [0], [1], [0, 0, 1, 1], [], []>} : vector<16x16xf32>, vector<16x32xf32>, vector<16x32xf32> -> vector<16x32xf32>
    %88 = vector.broadcast %42 : vector<16x1xf32> to vector<16x32xf32>
    %89 = arith.mulf %87, %88 : vector<16x32xf32>
    %cst_59 = arith.constant dense<0.000000e+00> : vector<16x4xf32>
    %90 = tpu.matmul %89, %3, %cst_59 {dimension_numbers = #tpu.dot_dimension_numbers<[1], [0], [0], [1], [0, 0, 1, 1], [], []>} : vector<16x32xf32>, vector<32x4xf32>, vector<16x4xf32> -> vector<16x4xf32>
    %91 = vector.broadcast %4 : vector<1x4xf32> to vector<16x4xf32>
    %92 = arith.addf %90, %91 : vector<16x4xf32>
    %cst_60 = arith.constant dense<0.000000e+00> : vector<16x4xf32>
    %93 = tpu.matmul %86, %5, %cst_60 {dimension_numbers = #tpu.dot_dimension_numbers<[1], [0], [0], [1], [0, 0, 1, 1], [], []>} : vector<16x32xf32>, vector<32x4xf32>, vector<16x4xf32> -> vector<16x4xf32>
    %94 = arith.addf %92, %93 : vector<16x4xf32>
    %95 = vector.broadcast %37 : vector<16x1xf32> to vector<16x4xf32>
    %96 = arith.mulf %94, %95 : vector<16x4xf32>
    %cst_61 = arith.constant 0.000000e+00 : f32
    %97 = vector.broadcast %cst_61 : f32 to vector<16x4xf32>
    %98 = arith.maximumf %96, %97 : vector<16x4xf32>
    %cst_62 = arith.constant dense<0.000000e+00> : vector<16x4xf32>
    %99 = tpu.matmul %86, %6, %cst_62 {dimension_numbers = #tpu.dot_dimension_numbers<[1], [0], [0], [1], [0, 0, 1, 1], [], []>} : vector<16x32xf32>, vector<32x4xf32>, vector<16x4xf32> -> vector<16x4xf32>
    %cst_63 = arith.constant dense<0.000000e+00> : vector<16x4xf32>
    %100 = tpu.matmul %98, %7, %cst_63 {dimension_numbers = #tpu.dot_dimension_numbers<[1], [0], [0], [1], [0, 0, 1, 1], [], []>} : vector<16x4xf32>, vector<4x4xf32>, vector<16x4xf32> -> vector<16x4xf32>
    %101 = arith.addf %99, %100 : vector<16x4xf32>
    %102 = vector.broadcast %8 : vector<1x4xf32> to vector<16x4xf32>
    %103 = arith.addf %101, %102 : vector<16x4xf32>
    %cst_64 = arith.constant dense<0xFF800000> : vector<16xf32>
    %104 = vector.multi_reduction <maximumf>, %103, %cst_64 [1] : vector<16x4xf32> to vector<16xf32>
    %105 = vector.shape_cast %104 : vector<16xf32> to vector<16x1xf32>
    %106 = vector.broadcast %105 : vector<16x1xf32> to vector<16x4xf32>
    %107 = arith.subf %103, %106 : vector<16x4xf32>
    %108 = math.exp %107 : vector<16x4xf32>
    %cst_65 = arith.constant dense<0.000000e+00> : vector<16xf32>
    %109 = vector.multi_reduction <add>, %108, %cst_65 [1] : vector<16x4xf32> to vector<16xf32>
    %110 = vector.shape_cast %109 : vector<16xf32> to vector<16x1xf32>
    %111 = tpu.reciprocal %110 : vector<16x1xf32> -> vector<16x1xf32>
    %112 = vector.broadcast %111 : vector<16x1xf32> to vector<16x4xf32>
    %113 = arith.mulf %108, %112 : vector<16x4xf32>
    %114 = vector.broadcast %37 : vector<16x1xf32> to vector<16x32xf32>
    %115 = arith.mulf %73, %114 : vector<16x32xf32>
    %116 = vector.broadcast %37 : vector<16x1xf32> to vector<16x4xf32>
    %117 = arith.mulf %113, %116 : vector<16x4xf32>
    %cst_66 = arith.constant dense<0.000000e+00> : vector<4x32xf32>
    %118 = tpu.matmul %117, %115, %cst_66 {dimension_numbers = #tpu.dot_dimension_numbers<[0], [0], [1], [1], [0, 1, 1, 1], [], []>} : vector<16x4xf32>, vector<16x32xf32>, vector<4x32xf32> -> vector<4x32xf32>
    %cst_67 = arith.constant dense<0.000000e+00> : vector<4x16xf32>
    %119 = tpu.matmul %117, %35, %cst_67 {dimension_numbers = #tpu.dot_dimension_numbers<[0], [0], [1], [1], [0, 1, 1, 1], [], []>} : vector<16x4xf32>, vector<16x16xf32>, vector<4x16xf32> -> vector<4x16xf32>
    %cst_68 = arith.constant dense<0.000000e+00> : vector<4x4xf32>
    %120 = tpu.matmul %119, %117, %cst_68 {dimension_numbers = #tpu.dot_dimension_numbers<[1], [0], [0], [1], [0, 0, 1, 1], [], []>} : vector<4x16xf32>, vector<16x4xf32>, vector<4x4xf32> -> vector<4x4xf32>
    %cst_69 = arith.constant dense<0.000000e+00> : vector<4xf32>
    %121 = vector.multi_reduction <add>, %120, %cst_69 [1] : vector<4x4xf32> to vector<4xf32>
    %122 = vector.shape_cast %121 : vector<4xf32> to vector<4x1xf32>
    %cst_70 = arith.constant 1.000000e+00 : f32
    %123 = vector.broadcast %cst_70 : f32 to vector<4x1xf32>
    %124 = arith.maximumf %122, %123 : vector<4x1xf32>
    %125 = tpu.reciprocal %124 : vector<4x1xf32> -> vector<4x1xf32>
    %cst_71 = arith.constant dense<0.000000e+00> : vector<4x32xf32>
    %126 = tpu.matmul %120, %118, %cst_71 {dimension_numbers = #tpu.dot_dimension_numbers<[1], [0], [0], [1], [0, 0, 1, 1], [], []>} : vector<4x4xf32>, vector<4x32xf32>, vector<4x32xf32> -> vector<4x32xf32>
    %127 = vector.broadcast %125 : vector<4x1xf32> to vector<4x32xf32>
    %128 = arith.mulf %126, %127 : vector<4x32xf32>
    %cst_72 = arith.constant dense<0.000000e+00> : vector<4x32xf32>
    %129 = tpu.matmul %128, %18, %cst_72 {dimension_numbers = #tpu.dot_dimension_numbers<[1], [0], [0], [1], [0, 0, 1, 1], [], []>} : vector<4x32xf32>, vector<32x32xf32>, vector<4x32xf32> -> vector<4x32xf32>
    %130 = vector.broadcast %19 : vector<1x32xf32> to vector<4x32xf32>
    %131 = arith.addf %129, %130 : vector<4x32xf32>
    %cst_73 = arith.constant dense<0.000000e+00> : vector<4x32xf32>
    %132 = tpu.matmul %118, %20, %cst_73 {dimension_numbers = #tpu.dot_dimension_numbers<[1], [0], [0], [1], [0, 0, 1, 1], [], []>} : vector<4x32xf32>, vector<32x32xf32>, vector<4x32xf32> -> vector<4x32xf32>
    %133 = arith.addf %131, %132 : vector<4x32xf32>
    %cst_74 = arith.constant 0.000000e+00 : f32
    %134 = vector.broadcast %cst_74 : f32 to vector<4x32xf32>
    %135 = arith.maximumf %133, %134 : vector<4x32xf32>
    %cst_75 = arith.constant dense<0.000000e+00> : vector<4x32xf32>
    %136 = tpu.matmul %120, %135, %cst_75 {dimension_numbers = #tpu.dot_dimension_numbers<[1], [0], [0], [1], [0, 0, 1, 1], [], []>} : vector<4x4xf32>, vector<4x32xf32>, vector<4x32xf32> -> vector<4x32xf32>
    %137 = vector.broadcast %125 : vector<4x1xf32> to vector<4x32xf32>
    %138 = arith.mulf %136, %137 : vector<4x32xf32>
    %cst_76 = arith.constant dense<0.000000e+00> : vector<4x32xf32>
    %139 = tpu.matmul %138, %21, %cst_76 {dimension_numbers = #tpu.dot_dimension_numbers<[1], [0], [0], [1], [0, 0, 1, 1], [], []>} : vector<4x32xf32>, vector<32x32xf32>, vector<4x32xf32> -> vector<4x32xf32>
    %140 = vector.broadcast %22 : vector<1x32xf32> to vector<4x32xf32>
    %141 = arith.addf %139, %140 : vector<4x32xf32>
    %cst_77 = arith.constant dense<0.000000e+00> : vector<4x32xf32>
    %142 = tpu.matmul %135, %23, %cst_77 {dimension_numbers = #tpu.dot_dimension_numbers<[1], [0], [0], [1], [0, 0, 1, 1], [], []>} : vector<4x32xf32>, vector<32x32xf32>, vector<4x32xf32> -> vector<4x32xf32>
    %143 = arith.addf %141, %142 : vector<4x32xf32>
    %cst_78 = arith.constant 0.000000e+00 : f32
    %144 = vector.broadcast %cst_78 : f32 to vector<4x32xf32>
    %145 = arith.maximumf %143, %144 : vector<4x32xf32>
    %cst_79 = arith.constant dense<0.000000e+00> : vector<4x32xf32>
    %146 = tpu.matmul %135, %24, %cst_79 {dimension_numbers = #tpu.dot_dimension_numbers<[1], [0], [0], [1], [0, 0, 1, 1], [], []>} : vector<4x32xf32>, vector<32x32xf32>, vector<4x32xf32> -> vector<4x32xf32>
    %cst_80 = arith.constant dense<0.000000e+00> : vector<4x32xf32>
    %147 = tpu.matmul %145, %25, %cst_80 {dimension_numbers = #tpu.dot_dimension_numbers<[1], [0], [0], [1], [0, 0, 1, 1], [], []>} : vector<4x32xf32>, vector<32x32xf32>, vector<4x32xf32> -> vector<4x32xf32>
    %148 = arith.addf %146, %147 : vector<4x32xf32>
    %149 = vector.broadcast %26 : vector<1x32xf32> to vector<4x32xf32>
    %150 = arith.addf %148, %149 : vector<4x32xf32>
    %cst_81 = arith.constant 0.000000e+00 : f32
    %151 = vector.broadcast %cst_81 : f32 to vector<4x32xf32>
    %152 = arith.maximumf %150, %151 : vector<4x32xf32>
    %cst_82 = arith.constant dense<0.000000e+00> : vector<32xf32>
    %153 = vector.multi_reduction <add>, %152, %cst_82 [0] : vector<4x32xf32> to vector<32xf32>
    %154 = vector.shape_cast %153 : vector<32xf32> to vector<1x32xf32>
    %cst_83 = arith.constant 4.000000e+00 : f32
    %155 = vector.broadcast %cst_83 : f32 to vector<1x32xf32>
    %156 = arith.divf %154, %155 : vector<1x32xf32>
    %cst_84 = arith.constant dense<0.000000e+00> : vector<1x32xf32>
    %157 = tpu.matmul %77, %27, %cst_84 {dimension_numbers = #tpu.dot_dimension_numbers<[1], [0], [0], [1], [0, 0, 1, 1], [], []>} : vector<1x32xf32>, vector<32x32xf32>, vector<1x32xf32> -> vector<1x32xf32>
    %158 = arith.addf %29, %157 : vector<1x32xf32>
    %cst_85 = arith.constant dense<0.000000e+00> : vector<1x32xf32>
    %159 = tpu.matmul %156, %28, %cst_85 {dimension_numbers = #tpu.dot_dimension_numbers<[1], [0], [0], [1], [0, 0, 1, 1], [], []>} : vector<1x32xf32>, vector<32x32xf32>, vector<1x32xf32> -> vector<1x32xf32>
    %160 = arith.addf %158, %159 : vector<1x32xf32>
    %cst_86 = arith.constant 0.000000e+00 : f32
    %161 = vector.broadcast %cst_86 : f32 to vector<1x32xf32>
    %162 = arith.maximumf %160, %161 : vector<1x32xf32>
    %cst_87 = arith.constant dense<0.000000e+00> : vector<1x4xf32>
    %163 = tpu.matmul %162, %30, %cst_87 {dimension_numbers = #tpu.dot_dimension_numbers<[1], [0], [0], [1], [0, 0, 1, 1], [], []>} : vector<1x32xf32>, vector<32x4xf32>, vector<1x4xf32> -> vector<1x4xf32>
    %164 = arith.addf %163, %31 : vector<1x4xf32>
    %cst_88 = arith.constant dense<0xFF800000> : vector<1xf32>
    %165 = vector.multi_reduction <maximumf>, %164, %cst_88 [1] : vector<1x4xf32> to vector<1xf32>
    %166 = vector.shape_cast %165 : vector<1xf32> to vector<1x1xf32>
    %167 = vector.broadcast %166 : vector<1x1xf32> to vector<1x4xf32>
    %168 = arith.subf %164, %167 : vector<1x4xf32>
    %169 = math.exp %168 : vector<1x4xf32>
    %cst_89 = arith.constant dense<0.000000e+00> : vector<1xf32>
    %170 = vector.multi_reduction <add>, %169, %cst_89 [1] : vector<1x4xf32> to vector<1xf32>
    %171 = vector.shape_cast %170 : vector<1xf32> to vector<1x1xf32>
    %172 = math.log %171 : vector<1x1xf32>
    %173 = vector.broadcast %172 : vector<1x1xf32> to vector<1x4xf32>
    %174 = arith.subf %168, %173 : vector<1x4xf32>
    %c0_90 = arith.constant 0 : index
    %c0_91 = arith.constant 0 : index
    %c0_92 = arith.constant 0 : index
    %175 = vector.load %arg5[%c0_90, %c0_91, %c0_92] : memref<2x1x4xf32, #tpu.memory_space<vmem>>, vector<1x1x4xf32>
    %176 = vector.shape_cast %175 : vector<1x1x4xf32> to vector<1x4xf32>
    %177 = vector.shape_cast %174 : vector<1x4xf32> to vector<1x1x4xf32>
    tpu.vector_store %arg5[%c0_90, %c0_91, %c0_92], %177 {strides = array<i32>} : memref<2x1x4xf32, #tpu.memory_space<vmem>>, vector<1x1x4xf32>,
    %c1 = arith.constant 1 : index
    %c0_93 = arith.constant 0 : index
    %c0_94 = arith.constant 0 : index
    %178 = vector.load %arg1[%c1, %c0_93, %c0_94] : memref<2x16x8xf32, #tpu.memory_space<vmem>>, vector<1x16x8xf32>
    %179 = vector.shape_cast %178 : vector<1x16x8xf32> to vector<16x8xf32>
    %c1_95 = arith.constant 1 : index
    %c0_96 = arith.constant 0 : index
    %c0_97 = arith.constant 0 : index
    %180 = vector.load %arg2[%c1_95, %c0_96, %c0_97] : memref<2x16x16xf32, #tpu.memory_space<vmem>>, vector<1x16x16xf32>
    %181 = vector.shape_cast %180 : vector<1x16x16xf32> to vector<16x16xf32>
    %c1_98 = arith.constant 1 : index
    %c0_99 = arith.constant 0 : index
    %c0_100 = arith.constant 0 : index
    %182 = vector.load %arg3[%c1_98, %c0_99, %c0_100] : memref<2x16x1xf32, #tpu.memory_space<vmem>>, vector<1x16x1xf32>
    %183 = vector.shape_cast %182 : vector<1x16x1xf32> to vector<16x1xf32>
    %cst_101 = arith.constant dense<0.000000e+00> : vector<16xf32>
    %184 = vector.multi_reduction <add>, %181, %cst_101 [1] : vector<16x16xf32> to vector<16xf32>
    %185 = vector.shape_cast %184 : vector<16xf32> to vector<16x1xf32>
    %cst_102 = arith.constant 1.000000e+00 : f32
    %186 = vector.broadcast %cst_102 : f32 to vector<16x1xf32>
    %187 = arith.maximumf %185, %186 : vector<16x1xf32>
    %188 = tpu.reciprocal %187 : vector<16x1xf32> -> vector<16x1xf32>
    %cst_103 = arith.constant dense<0.000000e+00> : vector<16x8xf32>
    %189 = tpu.matmul %181, %179, %cst_103 {dimension_numbers = #tpu.dot_dimension_numbers<[1], [0], [0], [1], [0, 0, 1, 1], [], []>} : vector<16x16xf32>, vector<16x8xf32>, vector<16x8xf32> -> vector<16x8xf32>
    %190 = vector.broadcast %188 : vector<16x1xf32> to vector<16x8xf32>
    %191 = arith.mulf %189, %190 : vector<16x8xf32>
    %cst_104 = arith.constant dense<0.000000e+00> : vector<16x32xf32>
    %192 = tpu.matmul %191, %9, %cst_104 {dimension_numbers = #tpu.dot_dimension_numbers<[1], [0], [0], [1], [0, 0, 1, 1], [], []>} : vector<16x8xf32>, vector<8x32xf32>, vector<16x32xf32> -> vector<16x32xf32>
    %193 = vector.broadcast %10 : vector<1x32xf32> to vector<16x32xf32>
    %194 = arith.addf %192, %193 : vector<16x32xf32>
    %cst_105 = arith.constant dense<0.000000e+00> : vector<16x32xf32>
    %195 = tpu.matmul %179, %11, %cst_105 {dimension_numbers = #tpu.dot_dimension_numbers<[1], [0], [0], [1], [0, 0, 1, 1], [], []>} : vector<16x8xf32>, vector<8x32xf32>, vector<16x32xf32> -> vector<16x32xf32>
    %196 = arith.addf %194, %195 : vector<16x32xf32>
    %197 = vector.broadcast %183 : vector<16x1xf32> to vector<16x32xf32>
    %198 = arith.mulf %196, %197 : vector<16x32xf32>
    %cst_106 = arith.constant 0.000000e+00 : f32
    %199 = vector.broadcast %cst_106 : f32 to vector<16x32xf32>
    %200 = arith.maximumf %198, %199 : vector<16x32xf32>
    %cst_107 = arith.constant dense<0.000000e+00> : vector<16x32xf32>
    %201 = tpu.matmul %181, %200, %cst_107 {dimension_numbers = #tpu.dot_dimension_numbers<[1], [0], [0], [1], [0, 0, 1, 1], [], []>} : vector<16x16xf32>, vector<16x32xf32>, vector<16x32xf32> -> vector<16x32xf32>
    %202 = vector.broadcast %188 : vector<16x1xf32> to vector<16x32xf32>
    %203 = arith.mulf %201, %202 : vector<16x32xf32>
    %cst_108 = arith.constant dense<0.000000e+00> : vector<16x32xf32>
    %204 = tpu.matmul %203, %12, %cst_108 {dimension_numbers = #tpu.dot_dimension_numbers<[1], [0], [0], [1], [0, 0, 1, 1], [], []>} : vector<16x32xf32>, vector<32x32xf32>, vector<16x32xf32> -> vector<16x32xf32>
    %205 = vector.broadcast %13 : vector<1x32xf32> to vector<16x32xf32>
    %206 = arith.addf %204, %205 : vector<16x32xf32>
    %cst_109 = arith.constant dense<0.000000e+00> : vector<16x32xf32>
    %207 = tpu.matmul %200, %14, %cst_109 {dimension_numbers = #tpu.dot_dimension_numbers<[1], [0], [0], [1], [0, 0, 1, 1], [], []>} : vector<16x32xf32>, vector<32x32xf32>, vector<16x32xf32> -> vector<16x32xf32>
    %208 = arith.addf %206, %207 : vector<16x32xf32>
    %209 = vector.broadcast %183 : vector<16x1xf32> to vector<16x32xf32>
    %210 = arith.mulf %208, %209 : vector<16x32xf32>
    %cst_110 = arith.constant 0.000000e+00 : f32
    %211 = vector.broadcast %cst_110 : f32 to vector<16x32xf32>
    %212 = arith.maximumf %210, %211 : vector<16x32xf32>
    %cst_111 = arith.constant dense<0.000000e+00> : vector<16x32xf32>
    %213 = tpu.matmul %200, %15, %cst_111 {dimension_numbers = #tpu.dot_dimension_numbers<[1], [0], [0], [1], [0, 0, 1, 1], [], []>} : vector<16x32xf32>, vector<32x32xf32>, vector<16x32xf32> -> vector<16x32xf32>
    %cst_112 = arith.constant dense<0.000000e+00> : vector<16x32xf32>
    %214 = tpu.matmul %212, %16, %cst_112 {dimension_numbers = #tpu.dot_dimension_numbers<[1], [0], [0], [1], [0, 0, 1, 1], [], []>} : vector<16x32xf32>, vector<32x32xf32>, vector<16x32xf32> -> vector<16x32xf32>
    %215 = arith.addf %213, %214 : vector<16x32xf32>
    %216 = vector.broadcast %17 : vector<1x32xf32> to vector<16x32xf32>
    %217 = arith.addf %215, %216 : vector<16x32xf32>
    %cst_113 = arith.constant 0.000000e+00 : f32
    %218 = vector.broadcast %cst_113 : f32 to vector<16x32xf32>
    %219 = arith.maximumf %217, %218 : vector<16x32xf32>
    %cst_114 = arith.constant dense<0.000000e+00> : vector<32xf32>
    %220 = vector.multi_reduction <add>, %219, %cst_114 [0] : vector<16x32xf32> to vector<32xf32>
    %221 = vector.shape_cast %220 : vector<32xf32> to vector<1x32xf32>
    %cst_115 = arith.constant 1.600000e+01 : f32
    %222 = vector.broadcast %cst_115 : f32 to vector<1x32xf32>
    %223 = arith.divf %221, %222 : vector<1x32xf32>
    %cst_116 = arith.constant dense<0.000000e+00> : vector<16x32xf32>
    %224 = tpu.matmul %191, %0, %cst_116 {dimension_numbers = #tpu.dot_dimension_numbers<[1], [0], [0], [1], [0, 0, 1, 1], [], []>} : vector<16x8xf32>, vector<8x32xf32>, vector<16x32xf32> -> vector<16x32xf32>
    %225 = vector.broadcast %1 : vector<1x32xf32> to vector<16x32xf32>
    %226 = arith.addf %224, %225 : vector<16x32xf32>
    %cst_117 = arith.constant dense<0.000000e+00> : vector<16x32xf32>
    %227 = tpu.matmul %179, %2, %cst_117 {dimension_numbers = #tpu.dot_dimension_numbers<[1], [0], [0], [1], [0, 0, 1, 1], [], []>} : vector<16x8xf32>, vector<8x32xf32>, vector<16x32xf32> -> vector<16x32xf32>
    %228 = arith.addf %226, %227 : vector<16x32xf32>
    %229 = vector.broadcast %183 : vector<16x1xf32> to vector<16x32xf32>
    %230 = arith.mulf %228, %229 : vector<16x32xf32>
    %cst_118 = arith.constant 0.000000e+00 : f32
    %231 = vector.broadcast %cst_118 : f32 to vector<16x32xf32>
    %232 = arith.maximumf %230, %231 : vector<16x32xf32>
    %cst_119 = arith.constant dense<0.000000e+00> : vector<16x32xf32>
    %233 = tpu.matmul %181, %232, %cst_119 {dimension_numbers = #tpu.dot_dimension_numbers<[1], [0], [0], [1], [0, 0, 1, 1], [], []>} : vector<16x16xf32>, vector<16x32xf32>, vector<16x32xf32> -> vector<16x32xf32>
    %234 = vector.broadcast %188 : vector<16x1xf32> to vector<16x32xf32>
    %235 = arith.mulf %233, %234 : vector<16x32xf32>
    %cst_120 = arith.constant dense<0.000000e+00> : vector<16x4xf32>
    %236 = tpu.matmul %235, %3, %cst_120 {dimension_numbers = #tpu.dot_dimension_numbers<[1], [0], [0], [1], [0, 0, 1, 1], [], []>} : vector<16x32xf32>, vector<32x4xf32>, vector<16x4xf32> -> vector<16x4xf32>
    %237 = vector.broadcast %4 : vector<1x4xf32> to vector<16x4xf32>
    %238 = arith.addf %236, %237 : vector<16x4xf32>
    %cst_121 = arith.constant dense<0.000000e+00> : vector<16x4xf32>
    %239 = tpu.matmul %232, %5, %cst_121 {dimension_numbers = #tpu.dot_dimension_numbers<[1], [0], [0], [1], [0, 0, 1, 1], [], []>} : vector<16x32xf32>, vector<32x4xf32>, vector<16x4xf32> -> vector<16x4xf32>
    %240 = arith.addf %238, %239 : vector<16x4xf32>
    %241 = vector.broadcast %183 : vector<16x1xf32> to vector<16x4xf32>
    %242 = arith.mulf %240, %241 : vector<16x4xf32>
    %cst_122 = arith.constant 0.000000e+00 : f32
    %243 = vector.broadcast %cst_122 : f32 to vector<16x4xf32>
    %244 = arith.maximumf %242, %243 : vector<16x4xf32>
    %cst_123 = arith.constant dense<0.000000e+00> : vector<16x4xf32>
    %245 = tpu.matmul %232, %6, %cst_123 {dimension_numbers = #tpu.dot_dimension_numbers<[1], [0], [0], [1], [0, 0, 1, 1], [], []>} : vector<16x32xf32>, vector<32x4xf32>, vector<16x4xf32> -> vector<16x4xf32>
    %cst_124 = arith.constant dense<0.000000e+00> : vector<16x4xf32>
    %246 = tpu.matmul %244, %7, %cst_124 {dimension_numbers = #tpu.dot_dimension_numbers<[1], [0], [0], [1], [0, 0, 1, 1], [], []>} : vector<16x4xf32>, vector<4x4xf32>, vector<16x4xf32> -> vector<16x4xf32>
    %247 = arith.addf %245, %246 : vector<16x4xf32>
    %248 = vector.broadcast %8 : vector<1x4xf32> to vector<16x4xf32>
    %249 = arith.addf %247, %248 : vector<16x4xf32>
    %cst_125 = arith.constant dense<0xFF800000> : vector<16xf32>
    %250 = vector.multi_reduction <maximumf>, %249, %cst_125 [1] : vector<16x4xf32> to vector<16xf32>
    %251 = vector.shape_cast %250 : vector<16xf32> to vector<16x1xf32>
    %252 = vector.broadcast %251 : vector<16x1xf32> to vector<16x4xf32>
    %253 = arith.subf %249, %252 : vector<16x4xf32>
    %254 = math.exp %253 : vector<16x4xf32>
    %cst_126 = arith.constant dense<0.000000e+00> : vector<16xf32>
    %255 = vector.multi_reduction <add>, %254, %cst_126 [1] : vector<16x4xf32> to vector<16xf32>
    %256 = vector.shape_cast %255 : vector<16xf32> to vector<16x1xf32>
    %257 = tpu.reciprocal %256 : vector<16x1xf32> -> vector<16x1xf32>
    %258 = vector.broadcast %257 : vector<16x1xf32> to vector<16x4xf32>
    %259 = arith.mulf %254, %258 : vector<16x4xf32>
    %260 = vector.broadcast %183 : vector<16x1xf32> to vector<16x32xf32>
    %261 = arith.mulf %219, %260 : vector<16x32xf32>
    %262 = vector.broadcast %183 : vector<16x1xf32> to vector<16x4xf32>
    %263 = arith.mulf %259, %262 : vector<16x4xf32>
    %cst_127 = arith.constant dense<0.000000e+00> : vector<4x32xf32>
    %264 = tpu.matmul %263, %261, %cst_127 {dimension_numbers = #tpu.dot_dimension_numbers<[0], [0], [1], [1], [0, 1, 1, 1], [], []>} : vector<16x4xf32>, vector<16x32xf32>, vector<4x32xf32> -> vector<4x32xf32>
    %cst_128 = arith.constant dense<0.000000e+00> : vector<4x16xf32>
    %265 = tpu.matmul %263, %181, %cst_128 {dimension_numbers = #tpu.dot_dimension_numbers<[0], [0], [1], [1], [0, 1, 1, 1], [], []>} : vector<16x4xf32>, vector<16x16xf32>, vector<4x16xf32> -> vector<4x16xf32>
    %cst_129 = arith.constant dense<0.000000e+00> : vector<4x4xf32>
    %266 = tpu.matmul %265, %263, %cst_129 {dimension_numbers = #tpu.dot_dimension_numbers<[1], [0], [0], [1], [0, 0, 1, 1], [], []>} : vector<4x16xf32>, vector<16x4xf32>, vector<4x4xf32> -> vector<4x4xf32>
    %cst_130 = arith.constant dense<0.000000e+00> : vector<4xf32>
    %267 = vector.multi_reduction <add>, %266, %cst_130 [1] : vector<4x4xf32> to vector<4xf32>
    %268 = vector.shape_cast %267 : vector<4xf32> to vector<4x1xf32>
    %cst_131 = arith.constant 1.000000e+00 : f32
    %269 = vector.broadcast %cst_131 : f32 to vector<4x1xf32>
    %270 = arith.maximumf %268, %269 : vector<4x1xf32>
    %271 = tpu.reciprocal %270 : vector<4x1xf32> -> vector<4x1xf32>
    %cst_132 = arith.constant dense<0.000000e+00> : vector<4x32xf32>
    %272 = tpu.matmul %266, %264, %cst_132 {dimension_numbers = #tpu.dot_dimension_numbers<[1], [0], [0], [1], [0, 0, 1, 1], [], []>} : vector<4x4xf32>, vector<4x32xf32>, vector<4x32xf32> -> vector<4x32xf32>
    %273 = vector.broadcast %271 : vector<4x1xf32> to vector<4x32xf32>
    %274 = arith.mulf %272, %273 : vector<4x32xf32>
    %cst_133 = arith.constant dense<0.000000e+00> : vector<4x32xf32>
    %275 = tpu.matmul %274, %18, %cst_133 {dimension_numbers = #tpu.dot_dimension_numbers<[1], [0], [0], [1], [0, 0, 1, 1], [], []>} : vector<4x32xf32>, vector<32x32xf32>, vector<4x32xf32> -> vector<4x32xf32>
    %276 = vector.broadcast %19 : vector<1x32xf32> to vector<4x32xf32>
    %277 = arith.addf %275, %276 : vector<4x32xf32>
    %cst_134 = arith.constant dense<0.000000e+00> : vector<4x32xf32>
    %278 = tpu.matmul %264, %20, %cst_134 {dimension_numbers = #tpu.dot_dimension_numbers<[1], [0], [0], [1], [0, 0, 1, 1], [], []>} : vector<4x32xf32>, vector<32x32xf32>, vector<4x32xf32> -> vector<4x32xf32>
    %279 = arith.addf %277, %278 : vector<4x32xf32>
    %cst_135 = arith.constant 0.000000e+00 : f32
    %280 = vector.broadcast %cst_135 : f32 to vector<4x32xf32>
    %281 = arith.maximumf %279, %280 : vector<4x32xf32>
    %cst_136 = arith.constant dense<0.000000e+00> : vector<4x32xf32>
    %282 = tpu.matmul %266, %281, %cst_136 {dimension_numbers = #tpu.dot_dimension_numbers<[1], [0], [0], [1], [0, 0, 1, 1], [], []>} : vector<4x4xf32>, vector<4x32xf32>, vector<4x32xf32> -> vector<4x32xf32>
    %283 = vector.broadcast %271 : vector<4x1xf32> to vector<4x32xf32>
    %284 = arith.mulf %282, %283 : vector<4x32xf32>
    %cst_137 = arith.constant dense<0.000000e+00> : vector<4x32xf32>
    %285 = tpu.matmul %284, %21, %cst_137 {dimension_numbers = #tpu.dot_dimension_numbers<[1], [0], [0], [1], [0, 0, 1, 1], [], []>} : vector<4x32xf32>, vector<32x32xf32>, vector<4x32xf32> -> vector<4x32xf32>
    %286 = vector.broadcast %22 : vector<1x32xf32> to vector<4x32xf32>
    %287 = arith.addf %285, %286 : vector<4x32xf32>
    %cst_138 = arith.constant dense<0.000000e+00> : vector<4x32xf32>
    %288 = tpu.matmul %281, %23, %cst_138 {dimension_numbers = #tpu.dot_dimension_numbers<[1], [0], [0], [1], [0, 0, 1, 1], [], []>} : vector<4x32xf32>, vector<32x32xf32>, vector<4x32xf32> -> vector<4x32xf32>
    %289 = arith.addf %287, %288 : vector<4x32xf32>
    %cst_139 = arith.constant 0.000000e+00 : f32
    %290 = vector.broadcast %cst_139 : f32 to vector<4x32xf32>
    %291 = arith.maximumf %289, %290 : vector<4x32xf32>
    %cst_140 = arith.constant dense<0.000000e+00> : vector<4x32xf32>
    %292 = tpu.matmul %281, %24, %cst_140 {dimension_numbers = #tpu.dot_dimension_numbers<[1], [0], [0], [1], [0, 0, 1, 1], [], []>} : vector<4x32xf32>, vector<32x32xf32>, vector<4x32xf32> -> vector<4x32xf32>
    %cst_141 = arith.constant dense<0.000000e+00> : vector<4x32xf32>
    %293 = tpu.matmul %291, %25, %cst_141 {dimension_numbers = #tpu.dot_dimension_numbers<[1], [0], [0], [1], [0, 0, 1, 1], [], []>} : vector<4x32xf32>, vector<32x32xf32>, vector<4x32xf32> -> vector<4x32xf32>
    %294 = arith.addf %292, %293 : vector<4x32xf32>
    %295 = vector.broadcast %26 : vector<1x32xf32> to vector<4x32xf32>
    %296 = arith.addf %294, %295 : vector<4x32xf32>
    %cst_142 = arith.constant 0.000000e+00 : f32
    %297 = vector.broadcast %cst_142 : f32 to vector<4x32xf32>
    %298 = arith.maximumf %296, %297 : vector<4x32xf32>
    %cst_143 = arith.constant dense<0.000000e+00> : vector<32xf32>
    %299 = vector.multi_reduction <add>, %298, %cst_143 [0] : vector<4x32xf32> to vector<32xf32>
    %300 = vector.shape_cast %299 : vector<32xf32> to vector<1x32xf32>
    %cst_144 = arith.constant 4.000000e+00 : f32
    %301 = vector.broadcast %cst_144 : f32 to vector<1x32xf32>
    %302 = arith.divf %300, %301 : vector<1x32xf32>
    %cst_145 = arith.constant dense<0.000000e+00> : vector<1x32xf32>
    %303 = tpu.matmul %223, %27, %cst_145 {dimension_numbers = #tpu.dot_dimension_numbers<[1], [0], [0], [1], [0, 0, 1, 1], [], []>} : vector<1x32xf32>, vector<32x32xf32>, vector<1x32xf32> -> vector<1x32xf32>
    %304 = arith.addf %29, %303 : vector<1x32xf32>
    %cst_146 = arith.constant dense<0.000000e+00> : vector<1x32xf32>
    %305 = tpu.matmul %302, %28, %cst_146 {dimension_numbers = #tpu.dot_dimension_numbers<[1], [0], [0], [1], [0, 0, 1, 1], [], []>} : vector<1x32xf32>, vector<32x32xf32>, vector<1x32xf32> -> vector<1x32xf32>
    %306 = arith.addf %304, %305 : vector<1x32xf32>
    %cst_147 = arith.constant 0.000000e+00 : f32
    %307 = vector.broadcast %cst_147 : f32 to vector<1x32xf32>
    %308 = arith.maximumf %306, %307 : vector<1x32xf32>
    %cst_148 = arith.constant dense<0.000000e+00> : vector<1x4xf32>
    %309 = tpu.matmul %308, %30, %cst_148 {dimension_numbers = #tpu.dot_dimension_numbers<[1], [0], [0], [1], [0, 0, 1, 1], [], []>} : vector<1x32xf32>, vector<32x4xf32>, vector<1x4xf32> -> vector<1x4xf32>
    %310 = arith.addf %309, %31 : vector<1x4xf32>
    %cst_149 = arith.constant dense<0xFF800000> : vector<1xf32>
    %311 = vector.multi_reduction <maximumf>, %310, %cst_149 [1] : vector<1x4xf32> to vector<1xf32>
    %312 = vector.shape_cast %311 : vector<1xf32> to vector<1x1xf32>
    %313 = vector.broadcast %312 : vector<1x1xf32> to vector<1x4xf32>
    %314 = arith.subf %310, %313 : vector<1x4xf32>
    %315 = math.exp %314 : vector<1x4xf32>
    %cst_150 = arith.constant dense<0.000000e+00> : vector<1xf32>
    %316 = vector.multi_reduction <add>, %315, %cst_150 [1] : vector<1x4xf32> to vector<1xf32>
    %317 = vector.shape_cast %316 : vector<1xf32> to vector<1x1xf32>
    %318 = math.log %317 : vector<1x1xf32>
    %319 = vector.broadcast %318 : vector<1x1xf32> to vector<1x4xf32>
    %320 = arith.subf %314, %319 : vector<1x4xf32>
    %c1_151 = arith.constant 1 : index
    %c0_152 = arith.constant 0 : index
    %c0_153 = arith.constant 0 : index
    %321 = vector.load %arg5[%c1_151, %c0_152, %c0_153] : memref<2x1x4xf32, #tpu.memory_space<vmem>>, vector<1x1x4xf32>
    %322 = vector.shape_cast %321 : vector<1x1x4xf32> to vector<1x4xf32>
    %323 = vector.shape_cast %320 : vector<1x4xf32> to vector<1x1x4xf32>
    tpu.vector_store %arg5[%c1_151, %c0_152, %c0_153], %323 {strides = array<i32>} : memref<2x1x4xf32, #tpu.memory_space<vmem>>, vector<1x1x4xf32>,
    return
  }
  func.func @transform_0(%arg0: i32) -> (i32, i32, i32) {
    %c0_i32 = arith.constant 0 : i32
    %c0_i32_0 = arith.constant 0 : i32
    %c0_i32_1 = arith.constant 0 : i32
    return %arg0, %c0_i32, %c0_i32_0 : i32, i32, i32
  }
  func.func @transform_1(%arg0: i32) -> (i32, i32, i32) {
    %c0_i32 = arith.constant 0 : i32
    %c0_i32_0 = arith.constant 0 : i32
    %c0_i32_1 = arith.constant 0 : i32
    return %arg0, %c0_i32, %c0_i32_0 : i32, i32, i32
  }
  func.func @transform_2(%arg0: i32) -> (i32, i32, i32) {
    %c0_i32 = arith.constant 0 : i32
    %c0_i32_0 = arith.constant 0 : i32
    %c0_i32_1 = arith.constant 0 : i32
    return %arg0, %c0_i32, %c0_i32_0 : i32, i32, i32
  }
  func.func @transform_3(%arg0: i32) -> (i32, i32) {
    %c0_i32 = arith.constant 0 : i32
    %c0_i32_0 = arith.constant 0 : i32
    %c0_i32_1 = arith.constant 0 : i32
    return %c0_i32, %c0_i32_0 : i32, i32
  }
  func.func @transform_4(%arg0: i32) -> (i32, i32, i32) {
    %c0_i32 = arith.constant 0 : i32
    %c0_i32_0 = arith.constant 0 : i32
    %c0_i32_1 = arith.constant 0 : i32
    return %arg0, %c0_i32, %c0_i32_0 : i32, i32, i32
  }
}

</mosaic_0001>

<bundles_post_ra>
// kernel: tpu_custom_call.1
= control target key start
LH: loop header
LB: loop body
LE: loop exit
PB: predicated region body
PF: predicated region fallthrough
CT: control target
= control target key end

     0   :  { %9 = vsyncpa [#allocation3], 0  ;;  %s6891_s0 = inlined_call_operand.vmem [shape: f32[2,16,8], index: 0, kind: input, shape index: {}]   ;;  %s6892_s1 = inlined_call_operand.vmem [shape: f32[2,16,16], index: 1, kind: input, shape index: {}]   ;;  %s6893_s2 = inlined_call_operand.vmem [shape: f32[2,16,1], index: 2, kind: input, shape index: {}]   ;;  %s6894_s3 = inlined_call_operand.hbm [shape: f32[640,128], index: 3, kind: input, shape index: {}]   ;;  %s6895_s4 = inlined_call_operand.hbm [shape: f32[2,1,4], index: 4, kind: output, shape index: {}]  }
   0x1   :  { %10 = vsyncpa [#allocation4], 0  ;;  %s6193_s15 = smov [#allocation2]   ;;  %s6145_s19 = scalar_lea.hbm %s6894_s3, 10240 }
   0x2   :  { %s22_s16 = sshll.u32 %s6193_s15, 4  ;;  %p6146_p0 = scmp.ne.s32.totalorder %s6894_s3, %s6145_s19  ;;  %s23_s16 = int_to_ptr.vmem [resolvable:$true] %s22_s16 }
   0x3   :  { %p6149_p1 = scmp.lt.u32.totalorder %s6145_s19, %s6894_s3 }
   0x5   :  { %p6151_p2 = pnand %p6149_p1, %p6146_p0 }
   0x7   :  { %6154 = shalt.err (!%p6151_p2)
}
   0x8   :  { %s6155_s24 = scalar_lea.vmem %s23_s16, 10240  ;;  %p6160_p4 = scmp.lt.s32.totalorder %s23_s16, %s23_s16 }
   0x9   :  { %p6156_p3 = scmp.ne.s32.totalorder %s23_s16, %s6155_s24  ;;  %p6161_p5 = scmp.lt.s32.totalorder %s6155_s24, %s6155_s24 }
   0xb   :  { %p6162_p6 = por %p6161_p5, %p6160_p4 }
   0xd   :  { %p6163_p7 = pnand %p6162_p6, %p6156_p3 }
   0xf   :  { %6166 = shalt.err (!%p6163_p7)
}
  0x10   :  { %s6194_s25 = smov 128   ;;  %s6195_s26 = smov 8  }
  0x11   :  { %28 = dma.hbm_to_vmem [thread:$0]  %s6894_s3, 10240, %s23_s16, [#allocation3], %s6194_s25, %s6194_s25, %s6195_s26  }
  0x12   :  { %6189 = dma.done.wait [#allocation3], 10240  }
  0x13   :  { %6190 = vsyncadd [#allocation3], 4294957056  ;;  %vm118_vm0 = vcmask 130048   ;;  %v6243_v0 = vld [vmem:[%s6891_s0] sm:$0xff]  ;;  %v6248_v1 = vld [vmem:[%s6891_s0 + $0x8] sm:$0xff]  ;;  %v6196_v10 = vmov 0  }
  0x14   :  { %v6253_v2 = vld [vmem:[%s6892_s1] sm:$0xff]  ;;  %v5777_v3 = vpack.c.bf16 %v6248_v1, %v6243_v0  ;;  %v6264_v5 = vld [vmem:[%s6892_s1 + $0x8] sm:$0xff]  ;;  %v6272_v7 = vld [vmem:[#allocation2 + $0x90] sm:$0xff]  ;;  %6107 = vset.pattern.permute.xlu1 %v6196_v10  ;;  %vm216_vm1 = vcmask 64512   ;;  %vm476_vm2 = vcmask 261120   ;;  %vm1236_vm3 = vcmask 1043456  }
  0x15   :  { %5275 = vmatprep.mubr.msk.f32.mxu0 %vm118_vm0, %v6253_v2  ;;  %v119_v4 = vsel %vm118_vm0, %v6253_v2, 0.0  ;;  %v122_v6 = vsel %vm118_vm0, %v6264_v5, 0.0  ;;  %5278 = vmatprep.subr.mxu1 %v6272_v7  ;;  %v6276_v8 = vld [vmem:[#allocation2 + $0xa0] sm:$0xff]  ;;  %v117_v11 = vld [vmem:[%s6893_s2 + $0x8] sm:$0xff]  ;;  %v54_v23 = vld [vmem:[#allocation2 + $0xb0] sm:$0xff]  ;;  %vm1229_vm4 = vcmask 31744  }
  0x16   :  { %120 = vadd.xlane.f32.xlu0 %v119_v4  ;;  %5778 = vmatprep.subr.bf16.mxu0 %v5777_v3  ;;  %v116_v9 = vld [vmem:[%s6893_s2] sm:$0xff]  ;;  %v53_v22 = vld [vmem:[#allocation2 + $0xa8] sm:$0xff]  ;;  %v6305_v26 = vld [vmem:[#allocation2 + $0x98] ss:$0 sm:$0xff]  ;;  %vm6198_vm5 = vmmov 0   ;;  %vm1670_vm6 = vcmask 27648  }
  0x17   :  { %5780 = vmatpush3.bf16.msra.mxu0 %v5777_v3  ;;  %5279 = vmatpush3.msra.mxu1 %v6272_v7  ;;  %v6299_v24 = vpack.c.bf16 %v54_v23, %v53_v22  ;;  %v55_v37 = vld [vmem:[#allocation2 + $0xb8] sm:$0xff]  ;;  %v56_v38 = vld [vmem:[#allocation2 + $0xc0] sm:$0xff]  ;;  %v58_v40 = vld [vmem:[#allocation2 + $0xd0] sm:$0xff]  ;;  %vm2278_vm7 = vcmask 257024   ;;  %vm2510_vm8 = vcmask 24576  }
  0x18   :  { %5283 = vmatprep.subr.mxu1 %v6276_v8  ;;  %383 = vperm.xlu1 %6107, %v116_v9   ;;  %v6321_v39 = vpack.c.bf16 %v56_v38, %v55_v37  ;;  %v59_v41 = vld [vmem:[#allocation2 + $0xd8] sm:$0xff]  ;;  %v60_v44 = vld [vmem:[#allocation2 + $0xe0] sm:$0xff]  ;;  %v61_v45 = vld [vmem:[#allocation2 + $0xe8] sm:$0xff] }
  0x19   :  { %v6325_v42 = vpack.c.bf16 %v59_v41, %v58_v40  ;;  %v6330_v49 = vpack.c.bf16 %v61_v45, %v60_v44  ;;  %v6338_v50 = vld [vmem:[#allocation2] sm:$0xff]  ;;  %v6342_v51 = vld [vmem:[#allocation2 + $0x10] sm:$0xff]  ;;  %v67_v53 = vld [vmem:[#allocation2 + $0x118] sm:$0xff] }
  0x1a   :  { %123 = vadd.xlane.f32.xlu0 %v122_v6  ;;  %5276 = vmatmul.mubr.msk.f32.vlgmr.msra.gmra.mrb[0].mxu0 %vm118_vm0, %v6264_v5  ;;  %v66_v52 = vld [vmem:[#allocation2 + $0x110] sm:$0xff]  ;;  %v68_v55 = vld [vmem:[#allocation2 + $0x120] sm:$0xff]  ;;  %v69_v56 = vld [vmem:[#allocation2 + $0x128] sm:$0xff] }
  0x1b   :  { %5292 = vmatprep.mubr.msk.f32.mxu0 %vm118_vm0, %v6253_v2  ;;  %v6355_v54 = vpack.c.bf16 %v67_v53, %v66_v52  ;;  %v6359_v57 = vpack.c.bf16 %v69_v56, %v68_v55  ;;  %v62_v58 = vld [vmem:[#allocation2 + $0xf0] sm:$0xff]  ;;  %v63_v59 = vld [vmem:[#allocation2 + $0xf8] sm:$0xff]  ;;  %v6366_v61 = vld [vmem:[#allocation2 + $0xc8] ss:$0 sm:$0xff] }
  0x1c   :  { %388 = vperm.xlu1 %6107, %v117_v11   ;;  %v6363_v60 = vpack.c.bf16 %v63_v59, %v62_v58  ;;  %v64_v6 = vld [vmem:[#allocation2 + $0x100] sm:$0xff]  ;;  %v65_v9 = vld [vmem:[#allocation2 + $0x108] sm:$0xff]  ;;  %v6410_v40 = vld [vmem:[#allocation2 + $0x130] ss:$0 sm:$0xff] }
  0x1d   :  { %v41_v37 = vld [vmem:[#allocation2 + $0x48] sm:$0xff] }
  0x97   :  { %v6303_v25 = vpop.permute.xlu1 %383 }
  0x9b   :  { %v6308_v30 = vpop.permute.xlu1 %388 }
  0xa3   :  { %v121_v12 = vpop.xlane.xlu0 %120 }
  0xa4   :  { %v125_v15 = vmax.f32 %v121_v12, 1.0 }
  0xa7   :  { %v124_v13 = vpop.xlane.xlu0 %123 }
  0xa8   :  { %v126_v14 = vmax.f32 %v124_v13, 1.0  ;;  %v6372_v13 = vpack.c.bf16 %v65_v9, %v64_v6  ;;  %v45_v6 = vld [vmem:[#allocation2 + $0x68] sm:$0xff] }
  0xaa   :  { %6109 = vrcp.f32 %v126_v14  ;;  %v6379_v14 = vld [vmem:[#allocation2 + $0x8] ss:$0 sm:$0xff] }
  0xab   :  { %6111 = vrcp.f32 %v125_v15 }
  0xb4   :  { %v6286_v16 = vpop.eup %6109 }
  0xb5   :  { %v6288_v18 = vpop.eup %6111 }
  0xed   :  { %v5277_v17 = vpop.f32.mrb[0].mxu0 }
  0xee   :  { %v201_v19 = vpop.f32.mrb[1].mxu0  ;;  %v211_v21 = vmul.f32 %v6286_v16, %v5277_v17 }
  0xef   :  { %v210_v20 = vmul.f32 %v6288_v18, %v201_v19 }
  0xf1   :  { %5280 = vmatprep.mubr.msk.f32.mxu1 %vm216_vm1, %v210_v20 }
  0xf2   :  { %5281 = vmatmul.mubr.msk.f32.vlgmr.msra.gmra.mrb[0].mxu1 %vm216_vm1, %v211_v21 }
  0xf3   :  { %5284 = vmatpush3.msra.mxu1 %v6276_v8  ;;  %5285 = vmatprep.mubr.msk.f32.mxu1 %vm216_vm1, %v6243_v0 }
  0xf4   :  { %5786 = vmatprep.subr.bf16.mxu1 %v6299_v24 }
  0xfa   :  { %5286 = vmatmul.mubr.msk.f32.vlgmr.msra.gmra.mrb[0].mxu1 %vm216_vm1, %v6248_v1 }
  0xfb   :  { %5788 = vmatpush3.bf16.msra.mxu1 %v6299_v24 }
  0xfc   :  { %5790 = vmatprep.subr.bf16.mxu1 %v6321_v39 }
  0xff   :  { %5792 = vmatpush3.bf16.msra.mxu1 %v6321_v39 }
 0x100   :  { %5794 = vmatprep.subr.bf16.mxu1 %v6325_v42 }
 0x1cd   :  { %v5287_v27 = vpop.f32.mrb[0].mxu1 }
 0x1ce   :  { %v6039_v28 = vadd.f32 %v5287_v27, %v6305_v26  ;;  %v370_v29 = vpop.f32.mrb[1].mxu1 }
 0x1cf   :  { %v6040_v31 = vadd.f32 %v6305_v26, %v370_v29  ;;  %v35_v29 = vld [vmem:[#allocation2 + $0x18] sm:$0xff] }
 0x1d0   :  { %v392_v32 = vmul.f32 %v6039_v28, %v6308_v30 }
 0x1d1   :  { %v391_v33 = vmul.f32 %v6040_v31, %v6303_v25  ;;  %v36_v31 = vld [vmem:[#allocation2 + $0x20] sm:$0xff] }
 0x1d2   :  { %v6313_v34 = vmax.f32 %v392_v32, 0.0  ;;  %v6399_v32 = vpack.c.bf16 %v36_v31, %v35_v29  ;;  %v47_v29 = vld [vmem:[#allocation2 + $0x78] sm:$0xff] }
 0x1d3   :  { %v6315_v35 = vmax.f32 %v391_v33, 0.0  ;;  %v37_v33 = vld [vmem:[#allocation2 + $0x28] sm:$0xff] }
 0x1d5   :  { %v5781_v36 = vpack.c.bf16 %v6313_v34, %v6315_v35 }
 0x1d7   :  { %5782 = vmatprep.subr.bf16.mxu0 %v5781_v36 }
 0x1d8   :  { %5784 = vmatpush3.bf16.msra.mxu0 %v5781_v36  ;;  %v40_v36 = vld [vmem:[#allocation2 + $0x40] sm:$0xff] }
 0x1d9   :  { %5802 = vmatprep.subr.bf16.mxu0 %v6355_v54  ;;  %v6407_v38 = vpack.c.bf16 %v41_v37, %v40_v36  ;;  %v6462_v36 = vld [vmem:[#allocation2 + $0x88] ss:$0 sm:$0xff] }
 0x1db   :  { %5293 = vmatmul.mubr.msk.f32.vlgmr.msra.gmra.mrb[2].mxu0 %vm118_vm0, %v6264_v5 }
 0x1dc   :  { %5804 = vmatpush3.bf16.msra.mxu0 %v6355_v54 }
 0x1dd   :  { %5806 = vmatprep.subr.bf16.mxu0 %v6359_v57 }
 0x1e0   :  { %5808 = vmatpush3.bf16.msra.mxu0 %v6359_v57 }
 0x1e1   :  { %5810 = vmatprep.subr.bf16.mxu0 %v6363_v60 }
 0x2ae   :  { %v5294_v43 = vpop.f32.mrb[2].mxu0 }
 0x2af   :  { %v461_v46 = vpop.f32.mrb[3].mxu0  ;;  %v471_v48 = vmul.f32 %v6286_v16, %v5294_v43 }
 0x2b0   :  { %v470_v47 = vmul.f32 %v6288_v18, %v461_v46 }
 0x2b2   :  { %5303 = vmatprep.mubr.msk.f32.mxu1 %vm476_vm2, %v470_v47 }
 0x2b3   :  { %5304 = vmatmul.mubr.msk.f32.vlgmr.msra.gmra.mrb[2].mxu1 %vm476_vm2, %v471_v48 }
 0x2b4   :  { %5796 = vmatpush3.bf16.msra.mxu1 %v6325_v42  ;;  %5314 = vmatprep.mubr.msk.f32.mxu1 %vm476_vm2, %v6315_v35 }
 0x2b5   :  { %5798 = vmatprep.subr.bf16.mxu1 %v6330_v49 }
 0x2b8   :  { %5800 = vmatpush3.bf16.msra.mxu1 %v6330_v49 }
 0x2b9   :  { %5339 = vmatprep.subr.mxu1 %v6338_v50 }
 0x2bb   :  { %5315 = vmatmul.mubr.msk.f32.vlgmr.msra.gmra.mrb[2].mxu1 %vm476_vm2, %v6313_v34 }
 0x2bc   :  { %5341 = vmatprep.mubr.msk.f32.mxu1 %vm216_vm1, %v210_v20  ;;  %5340 = vmatpush3.msra.mxu1 %v6338_v50 }
 0x2bd   :  { %5344 = vmatprep.subr.mxu1 %v6342_v51 }
 0x2bf   :  { %5342 = vmatmul.mubr.msk.f32.vlgmr.msra.gmra.mrb[4].mxu1 %vm216_vm1, %v211_v21 }
 0x2c0   :  { %5345 = vmatpush3.msra.mxu1 %v6342_v51  ;;  %5346 = vmatprep.mubr.msk.f32.mxu1 %vm216_vm1, %v6243_v0 }
 0x2c7   :  { %5347 = vmatmul.mubr.msk.f32.vlgmr.msra.gmra.mrb[4].mxu1 %vm216_vm1, %v6248_v1 }
 0x38e   :  { %v5316_v62 = vpop.f32.mrb[2].mxu1 }
 0x38f   :  { %v6041_v63 = vadd.f32 %v5316_v62, %v6366_v61  ;;  %v630_v0 = vpop.f32.mrb[3].mxu1  ;;  %v42_v62 = vld [vmem:[#allocation2 + $0x50] sm:$0xff] }
 0x390   :  { %v6042_v1 = vadd.f32 %v6366_v61, %v630_v0 }
 0x391   :  { %v642_v3 = vmul.f32 %v6041_v63, %v6308_v30  ;;  %v43_v63 = vld [vmem:[#allocation2 + $0x58] sm:$0xff] }
 0x392   :  { %v641_v4 = vmul.f32 %v6042_v1, %v6303_v25 }
 0x393   :  { %v644_v12 = vmax.f32 %v642_v3, 0.0 }
 0x394   :  { %v643_v11 = vmax.f32 %v641_v4, 0.0  ;;  %v6422_v4 = vpack.c.bf16 %v43_v63, %v42_v62  ;;  %v5849_v63 = vpack.c.bf16 %v6264_v5, %v6253_v2 }
 0x396   :  { %5325 = vmatprep.mubr.msk.f32.mxu0 %vm476_vm2, %v643_v11  ;;  %v6898_v11 = vmov 0.0|0.0  }
 0x397   :  { %5326 = vmatmul.mubr.msk.f32.vlgmr.msra.gmra.mrb[4].mxu0 %vm476_vm2, %v644_v12  ;;  %v6443_v12 = vld [vmem:[#allocation2 + $0x38] ss:$0 sm:$0xff] }
 0x398   :  { %5812 = vmatpush3.bf16.msra.mxu0 %v6363_v60  ;;  %5336 = vmatprep.mubr.msk.f32.mxu0 %vm476_vm2, %v6315_v35 }
 0x399   :  { %5814 = vmatprep.subr.bf16.mxu0 %v6372_v13 }
 0x39a   :  { %v5348_v15 = vpop.f32.mrb[4].mxu1 }
 0x39b   :  { %v6043_v17 = vadd.f32 %v5348_v15, %v6379_v14  ;;  %v965_v19 = vpop.f32.mrb[5].mxu1 }
 0x39c   :  { %v6044_v20 = vadd.f32 %v6379_v14, %v965_v19  ;;  %5816 = vmatpush3.bf16.msra.mxu0 %v6372_v13 }
 0x39d   :  { %v977_v21 = vmul.f32 %v6043_v17, %v6308_v30 }
 0x39e   :  { %v976_v22 = vmul.f32 %v6044_v20, %v6303_v25 }
 0x39f   :  { %v6387_v23 = vmax.f32 %v977_v21, 0.0  ;;  %5337 = vmatmul.mubr.msk.f32.vlgmr.msra.gmra.mrb[4].mxu0 %vm476_vm2, %v6313_v34  ;;  %v38_v34 = vld [vmem:[#allocation2 + $0x30] sm:$0xff] }
 0x3a0   :  { %v6391_v27 = vmax.f32 %v976_v22, 0.0  ;;  %5353 = vmatprep.mubr.msk.f32.mxu0 %vm118_vm0, %v6253_v2  ;;  %v6403_v35 = vpack.c.bf16 %v38_v34, %v37_v33 }
 0x3a2   :  { %v5817_v28 = vpack.c.bf16 %v6387_v23, %v6391_v27 }
 0x3a4   :  { %5818 = vmatprep.subr.bf16.mxu0 %v5817_v28 }
 0x3a5   :  { %5820 = vmatpush3.bf16.msra.mxu0 %v5817_v28  ;;  %v46_v28 = vld [vmem:[#allocation2 + $0x70] sm:$0xff] }
 0x3a6   :  { %5822 = vmatprep.subr.bf16.mxu0 %v6399_v32  ;;  %v6449_v34 = vpack.c.bf16 %v47_v29, %v46_v28  ;;  %v6495_v28 = vld [vmem:[%s6892_s1 + $0x10] sm:$0xff] }
 0x3a8   :  { %5354 = vmatmul.mubr.msk.f32.vlgmr.msra.gmra.mrb[6].mxu0 %vm118_vm0, %v6264_v5 }
 0x3a9   :  { %5824 = vmatpush3.bf16.msra.mxu0 %v6399_v32 }
 0x3aa   :  { %5826 = vmatprep.subr.bf16.mxu0 %v6403_v35 }
 0x3ad   :  { %5828 = vmatpush3.bf16.msra.mxu0 %v6403_v35 }
 0x3ae   :  { %5830 = vmatprep.subr.bf16.mxu0 %v6407_v38 }
 0x472   :  { %v5338_v41 = vpop.f32.mrb[4].mxu0 }
 0x473   :  { %v806_v43 = vadd.f32 %v5338_v41, %v6410_v40  ;;  %v792_v44 = vpop.f32.mrb[5].mxu0 }
 0x474   :  { %v805_v45 = vadd.f32 %v6410_v40, %v792_v44 }
 0x475   :  { %v808_v46 = vmax.f32 %v806_v43, 0.0 }
 0x476   :  { %v807_v47 = vmax.f32 %v805_v45, 0.0 }
 0x477   :  { %v810_v48 = vsel %vm476_vm2, %v808_v46, 0.0  ;;  %v1419_v52 = vmul.f32 %v808_v46, %v6308_v30 }
 0x478   :  { %v809_v53 = vsel %vm476_vm2, %v807_v47, 0.0  ;;  %v1418_v55 = vmul.f32 %v807_v47, %v6303_v25 }
 0x479   :  { %v6418_v56 = vadd.f32 %v810_v48, %v809_v53 }
 0x47a   :  { %v5846_v58 = vpack.c.bf16 %v1419_v52, %v1418_v55 }
 0x47b   :  { %v5355_v59 = vpop.f32.mrb[6].mxu0 }
 0x47c   :  { %v1046_v0 = vpop.f32.mrb[7].mxu0  ;;  %v1056_v3 = vmul.f32 %v6286_v16, %v5355_v59  ;;  %v44_v16 = vld [vmem:[#allocation2 + $0x60] sm:$0xff] }
 0x47d   :  { %v1055_v1 = vmul.f32 %v6288_v18, %v1046_v0  ;;  %v6433_v18 = vld [vmem:[#allocation2 + $0x80] sm:$0xf]  ;;  %v6437_v9 = vpack.c.bf16 %v45_v6, %v44_v16  ;;  %v6896_v0 = vmov 0.0  }
 0x47e   :  { %5378 = vmatprep.subr.msk.mxu1 %vm1236_vm3, %v6433_v18 }
 0x47f   :  { %5364 = vmatprep.mubr.msk.f32.mxu0 %vm476_vm2, %v1055_v1  ;;  %5379 = vmatpush3.msk.msra.mxu1 %vm1236_vm3, %v6433_v18 }
 0x480   :  { %5365 = vmatmul.mubr.msk.f32.vlgmr.msra.gmra.mrb[8].mxu0 %vm476_vm2, %v1056_v3  ;;  %5838 = vmatprep.subr.bf16.mxu1 %v6437_v9 }
 0x481   :  { %5832 = vmatpush3.bf16.msra.mxu0 %v6407_v38  ;;  %5375 = vmatprep.mubr.msk.f32.mxu0 %vm476_vm2, %v6391_v27 }
 0x482   :  { %5834 = vmatprep.subr.bf16.mxu0 %v6422_v4 }
 0x485   :  { %5836 = vmatpush3.bf16.msra.mxu0 %v6422_v4 }
 0x486   :  { %5848 = vmatprep.subr.bf16.mxu0 %v6898_v11 }
 0x488   :  { %5376 = vmatmul.mubr.msk.f32.vlgmr.msra.gmra.mrb[8].mxu0 %vm476_vm2, %v6387_v23 }
 0x489   :  { %5405 = vmatprep.mubr.msk.f32.mxu0 %vm6198_vm5, %v6896_v0  ;;  %5850 = vmatpush3.bf16.msra.mxu0 %v5849_v63 }
 0x48a   :  { %5415 = vmatprep.subr.mxu0 %v6896_v0 }
 0x55b   :  { %v5377_v15 = vpop.f32.mrb[8].mxu0 }
 0x55c   :  { %v6045_v17 = vadd.f32 %v5377_v15, %v6443_v12  ;;  %v1214_v19 = vpop.f32.mrb[9].mxu0 }
 0x55d   :  { %v6046_v20 = vadd.f32 %v6443_v12, %v1214_v19 }
 0x55e   :  { %v1226_v21 = vmul.f32 %v6045_v17, %v6308_v30 }
 0x55f   :  { %v1225_v22 = vmul.f32 %v6046_v20, %v6303_v25 }
 0x560   :  { %v1228_v33 = vmax.f32 %v1226_v21, 0.0 }
 0x561   :  { %v1227_v31 = vmax.f32 %v1225_v22, 0.0 }
 0x563   :  { %5380 = vmatprep.mubr.msk.f32.mxu1 %vm1229_vm4, %v1227_v31 }
 0x564   :  { %5381 = vmatmul.mubr.msk.f32.vlgmr.msra.gmra.mrb[6].mxu1 %vm1229_vm4, %v1228_v33  ;;  %v2533_v33 = vsel %vm118_vm0, %v6495_v28, 0.0 }
 0x565   :  { %5840 = vmatpush3.bf16.msra.mxu1 %v6437_v9  ;;  %5391 = vmatprep.mubr.msk.f32.mxu1 %vm476_vm2, %v6391_v27 }
 0x566   :  { %5842 = vmatprep.subr.bf16.mxu1 %v6449_v34 }
 0x569   :  { %5844 = vmatpush3.bf16.msra.mxu1 %v6449_v34 }
 0x56a   :  { %5845 = vmatprep.subr.bf16.mxu1 %v6898_v11 }
 0x56c   :  { %5392 = vmatmul.mubr.msk.f32.vlgmr.msra.gmra.mrb[6].mxu1 %vm476_vm2, %v6387_v23 }
 0x56d   :  { %5847 = vmatpush3.bf16.msra.mxu1 %v5846_v58  ;;  %5398 = vmatprep.mubr.msk.f32.mxu1 %vm6198_vm5, %v6896_v0 }
 0x56e   :  { %5851 = vmatprep.subr.bf16.mxu1 %v6898_v11 }
 0x63f   :  { %v5393_v37 = vpop.f32.mrb[6].mxu1 }
 0x640   :  { %v1395_v41 = vadd.f32 %v5393_v37, %v6462_v36  ;;  %v1381_v43 = vpop.f32.mrb[7].mxu1  ;;  %v6506_v37 = vld [vmem:[%s6892_s1 + $0x18] sm:$0xff] }
 0x641   :  { %v1394_v27 = vadd.f32 %v6462_v36, %v1381_v43  ;;  %v4968_v43 = vld [vmem:[%s6893_s2 + $0x10] sm:$0xff] }
 0x642   :  { %v1399_v44 = vsel %vm1229_vm4, %v1395_v41, -inf }
 0x643   :  { %1400 = vmax.xlane.f32.xlu1 %v1399_v44  ;;  %v1396_v45 = vsel %vm1229_vm4, %v1394_v27, -inf  ;;  %v72_v44 = vld [vmem:[#allocation2 + $0x140] sm:$0xff] }
 0x644   :  { %1397 = vmax.xlane.f32.xlu0 %v1396_v45 }
 0x6d0   :  { %v1401_v46 = vpop.xlane.xlu1 %1400 }
 0x6d1   :  { %v1403_v47 = vsub.f32 %v1395_v41, %v1401_v46  ;;  %v1398_v23 = vpop.xlane.xlu0 %1397  ;;  %v2536_v41 = vsel %vm118_vm0, %v6506_v37, 0.0  ;;  %v73_v46 = vld [vmem:[#allocation2 + $0x148] sm:$0xff] }
 0x6d2   :  { %v1402_v48 = vsub.f32 %v1394_v27, %v1398_v23  ;;  %v71_v27 = vld [vmem:[#allocation2 + $0x138] sm:$0xff] }
 0x6d3   :  { %v1406_v52 = vmul.f32 1.442695, %v1403_v47  ;;  %v6513_v45 = vpack.c.bf16 %v72_v44, %v71_v27  ;;  %v74_v47 = vld [vmem:[#allocation2 + $0x150] sm:$0xff] }
 0x6d4   :  { %v1404_v53 = vmul.f32 1.442695, %v1402_v48  ;;  %v6517_v23 = vpack.c.bf16 %v74_v47, %v73_v46 }
 0x6d6   :  { %6113 = vpow2.f32 %v1404_v53  ;;  %v76_v53 = vld [vmem:[#allocation2 + $0x160] sm:$0xff] }
 0x6d7   :  { %6115 = vpow2.f32 %v1406_v52 }
 0x6e0   :  { %v6114_v55 = vpop.eup %6113 }
 0x6e1   :  { %v1408_v58 = vsel %vm1229_vm4, %v6114_v55, 0.0  ;;  %v6116_v59 = vpop.eup %6115 }
 0x6e2   :  { %1409 = vadd.xlane.f32.xlu0 %v1408_v58  ;;  %v1411_v62 = vsel %vm1229_vm4, %v6116_v59, 0.0 }
 0x6e6   :  { %1412 = vadd.xlane.f32.xlu0 %v1411_v62 }
 0x76f   :  { %v1410_v1 = vpop.xlane.xlu0 %1409 }
 0x770   :  { %6117 = vrcp.f32 %v1410_v1 }
 0x773   :  { %v1413_v3 = vpop.xlane.xlu0 %1412 }
 0x774   :  { %6119 = vrcp.f32 %v1413_v3  ;;  %v78_v3 = vld [vmem:[#allocation2 + $0x170] sm:$0xff] }
 0x77a   :  { %v6118_v16 = vpop.eup %6117 }
 0x77b   :  { %v1416_v6 = vmul.f32 %v6118_v16, %v6114_v55  ;;  %v77_v55 = vld [vmem:[#allocation2 + $0x168] sm:$0xff]  ;;  %v79_v16 = vld [vmem:[#allocation2 + $0x178] sm:$0xff] }
 0x77c   :  { %v6521_v62 = vpack.c.bf16 %v77_v55, %v76_v53  ;;  %v89_v55 = vld [vmem:[#allocation2 + $0x1c8] sm:$0xff] }
 0x77d   :  { %v1420_v15 = vmul.f32 %v1416_v6, %v6303_v25  ;;  %v6525_v6 = vpack.c.bf16 %v79_v16, %v78_v3  ;;  %v95_v16 = vld [vmem:[#allocation2 + $0x1f8] sm:$0xff] }
 0x77e   :  { %v6120_v2 = vpop.eup %6119 }
 0x77f   :  { %1422 = vxpose.xlu0.b32.start [1/2] (short) (narrow) %v1420_v15, 8  ;;  %v1417_v5 = vmul.f32 %v6120_v2, %v6116_v59 }
 0x781   :  { %v1421_v17 = vmul.f32 %v1417_v5, %v6308_v30  ;;  %v80_v5 = vld [vmem:[#allocation2 + $0x180] sm:$0xff] }
 0x783   :  { %v5852_v19 = vpack.c.bf16 %v1421_v17, %v1420_v15  ;;  %1423 = vxpose.xlu0.b32.end [2/2] (short) (narrow) %v1421_v17, 8  ;;  %v6535_v15 = vld [vmem:[#allocation2 + $0x158] ss:$0 sm:$0xff]  ;;  %v81_v17 = vld [vmem:[#allocation2 + $0x188] sm:$0xff] }
 0x7ac   :  { %6108 = vset.pattern.permute.xlu0 %v6196_v10 }
 0x7ff   :  { %v1438_v20 = vpop.trf.xlu0 }
 0x800   :  { %5399 = vmatmul.mubr.msk.f32.vlgmr.msra.gmra.mrb[8].mxu1 %vm118_vm0, %v1438_v20  ;;  %5406 = vmatmul.mubr.msk.f32.vlgmr.msra.gmra.mrb[10].mxu0 %vm118_vm0, %v1438_v20 }
 0x801   :  { %5853 = vmatpush3.bf16.msra.mxu1 %v5852_v19  ;;  %5412 = vmatprep.mubr.msk.f32.mxu1 %vm6198_vm5, %v6896_v0 }
 0x802   :  { %5417 = vmatprep.mubr.msk.f32.mxu0 %vm6198_vm5, %v6896_v0  ;;  %5854 = vmatprep.subr.bf16.mxu1 %v6898_v11 }
 0x8d3   :  { %v1523_v25 = vpop.f32.mrb[8].mxu1  ;;  %v1593_v30 = vpop.f32.mrb[10].mxu0 }
 0x8d4   :  { %v5400_v21 = vpop.f32.mrb[9].mxu1  ;;  %v5407_v22 = vpop.f32.mrb[11].mxu0  ;;  %5413 = vmatmul.mubr.msk.f32.vlgmr.msra.gmra.mrb[10].mxu1 %vm118_vm0, %v1593_v30  ;;  %5416 = vmatpush3.msk.msra.mxu0 %vm1236_vm3, %v1523_v25 }
 0x8d5   :  { %5428 = vmatprep.mubr.msk.f32.mxu1 %vm6198_vm5, %v6896_v0  ;;  %5442 = vmatprep.subr.mxu0 %v6896_v0  ;;  %v6538_v21 = vpack.c.bf16 %v81_v17, %v80_v5  ;;  %v82_v22 = vld [vmem:[#allocation2 + $0x190] sm:$0xff]  ;;  %v812_v17 = vrot.slane %v6418_v56, 4 }
 0x8d6   :  { %5856 = vmatpush3.bf16.msra.mxu1 %v6513_v45 }
 0x8d7   :  { %5857 = vmatprep.subr.bf16.mxu1 %v6898_v11 }
 0x8da   :  { %5859 = vmatpush3.bf16.msra.mxu1 %v6517_v23 }
 0x8db   :  { %5860 = vmatprep.subr.bf16.mxu1 %v6898_v11 }
 0x9a7   :  { %v1666_v10 = vpop.f32.mrb[10].mxu1 }
 0x9a8   :  { %v5414_v29 = vpop.f32.mrb[11].mxu1  ;;  %5418 = vmatmul.mubr.msk.f32.vlgmr.msra.gmra.mrb[12].mxu0 %vm1229_vm4, %v1666_v10  ;;  %v1671_v31 = vsel %vm1670_vm6, %v1666_v10, 0.0 }
 0x9a9   :  { %1672 = vadd.xlane.f32.xlu1 %v1671_v31  ;;  %5444 = vmatprep.mubr.msk.f32.mxu0 %vm6198_vm5, %v6896_v0  ;;  %v83_v29 = vld [vmem:[#allocation2 + $0x198] sm:$0xff]  ;;  %v93_v31 = vld [vmem:[#allocation2 + $0x1e8] sm:$0xff] }
 0x9ad   :  { %2534 = vadd.xlane.f32.xlu1 %v2533_v33  ;;  %v94_v33 = vld [vmem:[#allocation2 + $0x1f0] sm:$0xff] }
 0x9b1   :  { %2537 = vadd.xlane.f32.xlu1 %v2536_v41  ;;  %v6551_v41 = vpack.c.bf16 %v94_v33, %v93_v31  ;;  %v99_v31 = vld [vmem:[#allocation2 + $0x218] sm:$0xff] }
 0x9c2   :  { %2792 = vperm.xlu1 %6107, %v4968_v43   ;;  %v86_v43 = vld [vmem:[#allocation2 + $0x1b0] sm:$0xff] }
 0xa36   :  { %v1673_v48 = vpop.xlane.xlu1 %1672 }
 0xa37   :  { %v1674_v52 = vmax.f32 %v1673_v48, 1.0  ;;  %v87_v48 = vld [vmem:[#allocation2 + $0x1b8] sm:$0xff] }
 0xa39   :  { %6121 = vrcp.f32 %v1674_v52  ;;  %v88_v52 = vld [vmem:[#allocation2 + $0x1c0] sm:$0xff] }
 0xa3a   :  { %v6559_v53 = vpack.c.bf16 %v88_v52, %v87_v48  ;;  %v100_v48 = vld [vmem:[#allocation2 + $0x220] sm:$0xff]  ;;  %v101_v52 = vld [vmem:[#allocation2 + $0x228] sm:$0xff] }
 0xa43   :  { %v6122_v58 = vpop.eup %6121 }
 0xa7b   :  { %v1748_v59 = vpop.f32.mrb[12].mxu0 }
 0xa7c   :  { %v1752_v63 = vmul.f32 %v6122_v58, %v1748_v59  ;;  %v5419_v1 = vpop.f32.mrb[13].mxu0  ;;  %v90_v59 = vld [vmem:[#allocation2 + $0x1d0] sm:$0xff] }
 0xa7d   :  { %v92_v1 = vld [vmem:[#allocation2 + $0x1e0] sm:$0xff] }
 0xa7e   :  { %5429 = vmatmul.mubr.msk.f32.vlgmr.msra.gmra.mrb[12].mxu1 %vm476_vm2, %v1752_v63  ;;  %v6565_v63 = vpack.c.bf16 %v90_v59, %v89_v55 }
 0xa7f   :  { %5862 = vmatpush3.bf16.msra.mxu1 %v6521_v62  ;;  %5439 = vmatprep.mubr.msk.f32.mxu1 %vm6198_vm5, %v6896_v0 }
 0xa80   :  { %5863 = vmatprep.subr.bf16.mxu1 %v6898_v11 }
 0xa83   :  { %5865 = vmatpush3.bf16.msra.mxu1 %v6525_v6 }
 0xa84   :  { %5878 = vmatprep.subr.bf16.mxu1 %v6898_v11 }
 0xa86   :  { %5440 = vmatmul.mubr.msk.f32.vlgmr.msra.gmra.mrb[12].mxu1 %vm476_vm2, %v1523_v25  ;;  %v6544_v25 = vpack.c.bf16 %v83_v29, %v82_v22  ;;  %v6586_v22 = vld [vmem:[#allocation2 + $0x1a0] ss:$0 sm:$0xff] }
 0xa87   :  { %5477 = vmatprep.mubr.msk.f32.mxu1 %vm6198_vm5, %v6896_v0  ;;  %5880 = vmatpush3.bf16.msra.mxu1 %v6551_v41 }
 0xa88   :  { %5881 = vmatprep.subr.bf16.mxu1 %v6898_v11 }
 0xb59   :  { %v1898_v2 = vpop.f32.mrb[12].mxu1 }
 0xb5a   :  { %v6047_v19 = vadd.f32 %v6535_v15, %v1898_v2  ;;  %v5441_v20 = vpop.f32.mrb[13].mxu1  ;;  %v96_v2 = vld [vmem:[#allocation2 + $0x200] sm:$0xff] }
 0xb5b   :  { %v6580_v5 = vpack.c.bf16 %v96_v2, %v95_v16  ;;  %v102_v16 = vld [vmem:[#allocation2 + $0x230] sm:$0xff]  ;;  %v103_v2 = vld [vmem:[#allocation2 + $0x238] sm:$0xff] }
 0xb5c   :  { %v1903_v30 = vmax.f32 %v6047_v19, 0.0  ;;  %v813_v19 = vadd.f32 %v812_v17, %v6418_v56  ;;  %v6593_v56 = vpack.c.bf16 %v101_v52, %v100_v48  ;;  %v6603_v17 = vpack.c.bf16 %v103_v2, %v102_v16 }
 0xb5d   :  { %5883 = vmatpush3.bf16.msra.mxu1 %v6580_v5 }
 0xb5e   :  { %5443 = vmatpush3.msk.msra.mxu0 %vm1236_vm3, %v1903_v30  ;;  %5890 = vmatprep.subr.bf16.mxu1 %v6898_v11  ;;  %v814_v20 = vrot.slane %v813_v19, 2 }
 0xb5f   :  { %5445 = vmatmul.mubr.msk.f32.vlgmr.msra.gmra.mrb[14].mxu0 %vm1229_vm4, %v1666_v10  ;;  %5866 = vmatprep.subr.bf16.mxu0 %v6898_v11  ;;  %v85_v10 = vld [vmem:[#allocation2 + $0x1a8] sm:$0xff] }
 0xb60   :  { %5868 = vmatpush3.bf16.msra.mxu0 %v6538_v21  ;;  %5455 = vmatprep.mubr.msk.f32.mxu0 %vm6198_vm5, %v6896_v0  ;;  %v6555_v44 = vpack.c.bf16 %v86_v43, %v85_v10  ;;  %v815_v29 = vadd.f32 %v814_v20, %v813_v19  ;;  %v104_v19 = vld [vmem:[#allocation2 + $0x240] sm:$0xff]  ;;  %v105_v20 = vld [vmem:[#allocation2 + $0x248] sm:$0xff] }
 0xb61   :  { %5869 = vmatprep.subr.bf16.mxu0 %v6898_v11 }
 0xb64   :  { %5871 = vmatpush3.bf16.msra.mxu0 %v6544_v25 }
 0xb65   :  { %5872 = vmatprep.subr.bf16.mxu0 %v6898_v11 }
 0xc32   :  { %v1973_v27 = vpop.f32.mrb[14].mxu0 }
 0xc33   :  { %v1977_v46 = vmul.f32 %v6122_v58, %v1973_v27  ;;  %v5446_v47 = vpop.f32.mrb[15].mxu0  ;;  %v91_v58 = vld [vmem:[#allocation2 + $0x1d8] sm:$0xff] }
 0xc34   :  { %v6570_v3 = vpack.c.bf16 %v92_v1, %v91_v58 }
 0xc35   :  { %5456 = vmatmul.mubr.msk.f32.vlgmr.msra.gmra.mrb[16].mxu0 %vm476_vm2, %v1977_v46  ;;  %v816_v46 = vrot.slane %v815_v29, 1 }
 0xc36   :  { %5874 = vmatpush3.bf16.msra.mxu0 %v6555_v44  ;;  %5466 = vmatprep.mubr.msk.f32.mxu0 %vm6198_vm5, %v6896_v0 }
 0xc37   :  { %5875 = vmatprep.subr.bf16.mxu0 %v6898_v11  ;;  %v817_v55 = vadd.f32 %v816_v46, %v815_v29  ;;  %v6607_v29 = vpack.c.bf16 %v105_v20, %v104_v19 }
 0xc39   :  { %v819_v1 = vmul.f32 0.0625, %v817_v55 }
 0xc3a   :  { %5877 = vmatpush3.bf16.msra.mxu0 %v6559_v53 }
 0xc3b   :  { %5884 = vmatprep.subr.bf16.mxu0 %v6898_v11 }
 0xc3d   :  { %5467 = vmatmul.mubr.msk.f32.vlgmr.msra.gmra.mrb[16].mxu0 %vm476_vm2, %v1903_v30 }
 0xc3e   :  { %5886 = vmatpush3.bf16.msra.mxu0 %v6565_v63  ;;  %5488 = vmatprep.mubr.msk.f32.mxu0 %vm6198_vm5, %v6896_v0 }
 0xc3f   :  { %5887 = vmatprep.subr.bf16.mxu0 %v6898_v11 }
 0xc42   :  { %5889 = vmatpush3.bf16.msra.mxu0 %v6570_v3 }
 0xc43   :  { %5902 = vmatprep.subr.bf16.mxu0 %v6898_v11 }
 0xc45   :  { %5489 = vmatmul.mubr.msk.f32.vlgmr.msra.gmra.mrb[18].mxu0 %vm476_vm2, %v1903_v30  ;;  %v98_v30 = vld [vmem:[#allocation2 + $0x210] sm:$0xff] }
 0xc46   :  { %5521 = vmatprep.mubr.msk.f32.mxu0 %vm6198_vm5, %v6896_v0  ;;  %v6589_v27 = vpack.c.bf16 %v99_v31, %v98_v30  ;;  %v107_v30 = vld [vmem:[#allocation2 + $0x258] sm:$0xff]  ;;  %v108_v31 = vld [vmem:[#allocation2 + $0x260] sm:$0xff] }
 0xd10   :  { %v2123_v33 = vpop.f32.mrb[16].mxu0 }
 0xd11   :  { %v6048_v10 = vadd.f32 %v6586_v22, %v2123_v33  ;;  %v5468_v43 = vpop.f32.mrb[17].mxu0  ;;  %v6611_v33 = vpack.c.bf16 %v108_v31, %v107_v30  ;;  %v110_v31 = vld [vmem:[#allocation2 + $0x270] sm:$0xff] }
 0xd13   :  { %v2128_v47 = vmax.f32 %v6048_v10, 0.0  ;;  %5904 = vmatpush3.bf16.msra.mxu0 %v6611_v33  ;;  %v6615_v10 = vld [vmem:[#allocation2 + $0x208] ss:$0 sm:$0xff] }
 0xd14   :  { %5905 = vmatprep.subr.bf16.mxu0 %v6898_v11 }
 0xd15   :  { %5478 = vmatmul.mubr.msk.f32.vlgmr.msra.gmra.mrb[14].mxu1 %vm476_vm2, %v2128_v47 }
 0xd16   :  { %5892 = vmatpush3.bf16.msra.mxu1 %v6589_v27  ;;  %5499 = vmatprep.mubr.msk.f32.mxu1 %vm6198_vm5, %v6896_v0 }
 0xd17   :  { %5893 = vmatprep.subr.bf16.mxu1 %v6898_v11 }
 0xd18   :  { %v2268_v59 = vpop.f32.mrb[18].mxu0 }
 0xd19   :  { %v5490_v58 = vpop.f32.mrb[19].mxu0 }
 0xd1a   :  { %5895 = vmatpush3.bf16.msra.mxu1 %v6593_v56 }
 0xd1b   :  { %5896 = vmatprep.subr.bf16.mxu1 %v6898_v11 }
 0xd1d   :  { %5500 = vmatmul.mubr.msk.f32.vlgmr.msra.gmra.mrb[16].mxu1 %vm476_vm2, %v819_v1 }
 0xd1e   :  { %5510 = vmatprep.mubr.msk.f32.mxu1 %vm6198_vm5, %v6896_v0  ;;  %5898 = vmatpush3.bf16.msra.mxu1 %v6603_v17 }
 0xd1f   :  { %5899 = vmatprep.subr.bf16.mxu1 %v6898_v11 }
 0xd22   :  { %5901 = vmatpush3.bf16.msra.mxu1 %v6607_v29 }
 0xd23   :  { %5531 = vmatprep.subr.mxu1 %v6272_v7 }
 0xde8   :  { %v2198_v43 = vpop.f32.mrb[14].mxu1 }
 0xde9   :  { %v2269_v46 = vadd.f32 %v2268_v59, %v2198_v43  ;;  %v5479_v47 = vpop.f32.mrb[15].mxu1  ;;  %v109_v59 = vld [vmem:[#allocation2 + $0x268] sm:$0xff] }
 0xdea   :  { %v6622_v43 = vpack.c.bf16 %v110_v31, %v109_v59  ;;  %v6633_v47 = vld [vmem:[%s6891_s0 + $0x18] sm:$0xff] }
 0xdeb   :  { %v2276_v48 = vadd.f32 %v6615_v10, %v2269_v46  ;;  %v6628_v46 = vld [vmem:[%s6891_s0 + $0x10] sm:$0xff] }
 0xdec   :  { %5907 = vmatpush3.bf16.msra.mxu0 %v6622_v43 }
 0xded   :  { %v2277_v52 = vmax.f32 %v2276_v48, 0.0  ;;  %v6637_v48 = vld [vmem:[#allocation2 + $0x250] sm:$0x1] }
 0xdef   :  { %v2279_v55 = vsel %vm2278_vm7, %v2277_v52, 0.0 }
 0xdf0   :  { %v2280_v58 = vrot.slane %v2279_v55, 4 }
 0xdf2   :  { %v2281_v1 = vadd.f32 %v2280_v58, %v2279_v55 }
 0xdf4   :  { %v2282_v16 = vrot.slane %v2281_v1, 2 }
 0xdf6   :  { %v2283_v2 = vadd.f32 %v2282_v16, %v2281_v1  ;;  %v4969_v16 = vld [vmem:[%s6893_s2 + $0x18] sm:$0xff]  ;;  %s6200_s2 = smov [#allocation5]  }
 0xdf7   :  { %2797 = vperm.xlu0 %6108, %v4969_v16   ;;  %s4896_s24 = sshll.u32 %s6200_s2, 4  ;;  %s4897_s24 = int_to_ptr.vmem [resolvable:$true] %s4896_s24 }
 0xdf8   :  { %v2284_v19 = vrot.slane %v2283_v2, 1  ;;  %s6167_s25 = scalar_lea.vmem %s4897_s24, 32  ;;  %p6172_p9 = scmp.lt.s32.totalorder %s4897_s24, %s4897_s24 }
 0xdf9   :  { %p6168_p8 = scmp.ne.s32.totalorder %s4897_s24, %s6167_s25  ;;  %p6173_p10 = scmp.lt.s32.totalorder %s6167_s25, %s6167_s25 }
 0xdfa   :  { %v2285_v20 = vadd.f32 %v2284_v19, %v2283_v2  ;;  %v2535_v2 = vpop.xlane.xlu1 %2534 }
 0xdfb   :  { %p6174_p11 = por %p6173_p10, %p6172_p9 }
 0xdfc   :  { %v2287_v30 = vmul.f32 0.25, %v2285_v20 }
 0xdfd   :  { %p6175_p12 = pnand %p6174_p11, %p6168_p8 }
 0xdfe   :  { %5511 = vmatmul.mubr.msk.f32.vlgmr.msra.gmra.mrb[16].mxu1 %vm476_vm2, %v2287_v30  ;;  %v2538_v19 = vpop.xlane.xlu1 %2537  ;;  %v2539_v30 = vmax.f32 %v2535_v2, 1.0 }
 0xdff   :  { %5532 = vmatpush3.msra.mxu1 %v6272_v7  ;;  %v5908_v7 = vpack.c.bf16 %v6633_v47, %v6628_v46  ;;  %v2540_v20 = vmax.f32 %v2538_v19, 1.0 }
 0xe00   :  { %5536 = vmatprep.subr.mxu1 %v6276_v8 }
 0xe01   :  { %5909 = vmatprep.subr.bf16.mxu0 %v5908_v7  ;;  %6123 = vrcp.f32 %v2540_v20 }
 0xe02   :  { %6125 = vrcp.f32 %v2539_v30  ;;  %v6674_v30 = vpop.permute.xlu1 %2792 }
 0xe76   :  { %v6670_v2 = vpop.permute.xlu0 %2797 }
 0xed1   :  { %v2431_v52 = vpop.f32.mrb[16].mxu1 }
 0xed2   :  { %v6049_v55 = vadd.f32 %v2431_v52, %v6637_v48  ;;  %v5512_v58 = vpop.f32.mrb[17].mxu1 }
 0xed4   :  { %v2436_v1 = vmax.f32 %v6049_v55, 0.0 }
 0xed6   :  { %5522 = vmatmul.mubr.msk.f32.vlgmr.msra.gmra.mrb[20].mxu0 %vm476_vm2, %v2436_v1 }
 0xed7   :  { %5911 = vmatpush3.bf16.msra.mxu0 %v5908_v7  ;;  %5528 = vmatprep.mubr.msk.f32.mxu0 %vm118_vm0, %v6495_v28  ;;  %v6652_v7 = vpop.eup %6123 }
 0xed8   :  { %v6654_v55 = vpop.eup %6125 }
 0xeda   :  { %5529 = vmatmul.mubr.msk.f32.vlgmr.msra.gmra.mrb[22].mxu0 %vm118_vm0, %v6506_v37 }
 0xedb   :  { %5545 = vmatprep.mubr.msk.f32.mxu0 %vm118_vm0, %v6495_v28 }
 0xfa9   :  { %v6650_v59 = vpop.f32.mrb[20].mxu0 }
 0xfaa   :  { %v5523_v31 = vpop.f32.mrb[21].mxu0 }
 0xfad   :  { %v5530_v52 = vpop.f32.mrb[22].mxu0 }
 0xfae   :  { %v2615_v58 = vpop.f32.mrb[23].mxu0  ;;  %v2625_v0 = vmul.f32 %v6652_v7, %v5530_v52 }
 0xfaf   :  { %v2624_v1 = vmul.f32 %v6654_v55, %v2615_v58 }
 0xfb1   :  { %5533 = vmatprep.mubr.msk.f32.mxu1 %vm216_vm1, %v2624_v1 }
 0xfb2   :  { %5534 = vmatmul.mubr.msk.f32.vlgmr.msra.gmra.mrb[18].mxu1 %vm216_vm1, %v2625_v0 }
 0xfb3   :  { %5537 = vmatpush3.msra.mxu1 %v6276_v8  ;;  %5538 = vmatprep.mubr.msk.f32.mxu1 %vm216_vm1, %v6628_v46 }
 0xfb4   :  { %5933 = vmatprep.subr.bf16.mxu1 %v6355_v54 }
 0xfba   :  { %5539 = vmatmul.mubr.msk.f32.vlgmr.msra.gmra.mrb[18].mxu1 %vm216_vm1, %v6633_v47 }
 0xfbb   :  { %5935 = vmatpush3.bf16.msra.mxu1 %v6355_v54 }
 0xfbc   :  { %5937 = vmatprep.subr.bf16.mxu1 %v6359_v57 }
 0xfbf   :  { %5939 = vmatpush3.bf16.msra.mxu1 %v6359_v57 }
 0xfc0   :  { %5941 = vmatprep.subr.bf16.mxu1 %v6363_v60 }
0x108d   :  { %v5540_v16 = vpop.f32.mrb[18].mxu1 }
0x108e   :  { %v6050_v8 = vadd.f32 %v5540_v16, %v6305_v26  ;;  %v2779_v19 = vpop.f32.mrb[19].mxu1 }
0x108f   :  { %v6051_v20 = vadd.f32 %v6305_v26, %v2779_v19 }
0x1090   :  { %v2801_v31 = vmul.f32 %v6050_v8, %v6670_v2 }
0x1091   :  { %v2800_v54 = vmul.f32 %v6051_v20, %v6674_v30 }
0x1092   :  { %v2803_v52 = vmax.f32 %v2801_v31, 0.0 }
0x1093   :  { %v2802_v58 = vmax.f32 %v2800_v54, 0.0 }
0x1095   :  { %v5912_v11 = vpack.c.bf16 %v2803_v52, %v2802_v58 }
0x1097   :  { %5913 = vmatprep.subr.bf16.mxu0 %v5912_v11 }
0x1098   :  { %5915 = vmatpush3.bf16.msra.mxu0 %v5912_v11 }
0x1099   :  { %5917 = vmatprep.subr.bf16.mxu0 %v6299_v24 }
0x109b   :  { %5546 = vmatmul.mubr.msk.f32.vlgmr.msra.gmra.mrb[24].mxu0 %vm118_vm0, %v6506_v37 }
0x109c   :  { %5919 = vmatpush3.bf16.msra.mxu0 %v6299_v24 }
0x109d   :  { %5921 = vmatprep.subr.bf16.mxu0 %v6321_v39 }
0x10a0   :  { %5923 = vmatpush3.bf16.msra.mxu0 %v6321_v39 }
0x10a1   :  { %5925 = vmatprep.subr.bf16.mxu0 %v6325_v42 }
0x116e   :  { %v5547_v26 = vpop.f32.mrb[24].mxu0 }
0x116f   :  { %v2870_v57 = vpop.f32.mrb[25].mxu0  ;;  %v2880_v8 = vmul.f32 %v6652_v7, %v5547_v26 }
0x1170   :  { %v2879_v16 = vmul.f32 %v6654_v55, %v2870_v57 }
0x1172   :  { %5556 = vmatprep.mubr.msk.f32.mxu0 %vm476_vm2, %v2879_v16 }
0x1173   :  { %5557 = vmatmul.mubr.msk.f32.vlgmr.msra.gmra.mrb[26].mxu0 %vm476_vm2, %v2880_v8 }
0x1174   :  { %5927 = vmatpush3.bf16.msra.mxu0 %v6325_v42  ;;  %5567 = vmatprep.mubr.msk.f32.mxu0 %vm476_vm2, %v2802_v58 }
0x1175   :  { %5929 = vmatprep.subr.bf16.mxu0 %v6330_v49 }
0x1178   :  { %5931 = vmatpush3.bf16.msra.mxu0 %v6330_v49 }
0x1179   :  { %5592 = vmatprep.subr.mxu0 %v6338_v50 }
0x117b   :  { %5568 = vmatmul.mubr.msk.f32.vlgmr.msra.gmra.mrb[26].mxu0 %vm476_vm2, %v2803_v52 }
0x117c   :  { %5594 = vmatprep.mubr.msk.f32.mxu0 %vm216_vm1, %v2624_v1  ;;  %5593 = vmatpush3.msra.mxu0 %v6338_v50 }
0x117d   :  { %5597 = vmatprep.subr.mxu0 %v6342_v51 }
0x117f   :  { %5595 = vmatmul.mubr.msk.f32.vlgmr.msra.gmra.mrb[28].mxu0 %vm216_vm1, %v2625_v0 }
0x1180   :  { %5598 = vmatpush3.msra.mxu0 %v6342_v51  ;;  %5599 = vmatprep.mubr.msk.f32.mxu0 %vm216_vm1, %v6628_v46 }
0x1181   :  { %5631 = vmatprep.subr.msk.mxu0 %vm1236_vm3, %v6433_v18 }
0x1187   :  { %5600 = vmatmul.mubr.msk.f32.vlgmr.msra.gmra.mrb[28].mxu0 %vm216_vm1, %v6633_v47 }
0x1188   :  { %5632 = vmatpush3.msk.msra.mxu0 %vm1236_vm3, %v6433_v18 }
0x1189   :  { %5969 = vmatprep.subr.bf16.mxu0 %v6437_v9 }
0x124e   :  { %v5569_v24 = vpop.f32.mrb[26].mxu0 }
0x124f   :  { %v6052_v39 = vadd.f32 %v5569_v24, %v6366_v61  ;;  %v3034_v42 = vpop.f32.mrb[27].mxu0 }
0x1250   :  { %v6053_v49 = vadd.f32 %v6366_v61, %v3034_v42 }
0x1251   :  { %v3046_v50 = vmul.f32 %v6052_v39, %v6670_v2 }
0x1252   :  { %v3045_v51 = vmul.f32 %v6053_v49, %v6674_v30 }
0x1253   :  { %v3048_v0 = vmax.f32 %v3046_v50, 0.0 }
0x1254   :  { %v3047_v11 = vmax.f32 %v3045_v51, 0.0  ;;  %v6901_v51 = vmov 0.0  }
0x1256   :  { %5578 = vmatprep.mubr.msk.f32.mxu1 %vm476_vm2, %v3047_v11 }
0x1257   :  { %5579 = vmatmul.mubr.msk.f32.vlgmr.msra.gmra.mrb[20].mxu1 %vm476_vm2, %v3048_v0 }
0x1258   :  { %5943 = vmatpush3.bf16.msra.mxu1 %v6363_v60  ;;  %5589 = vmatprep.mubr.msk.f32.mxu1 %vm476_vm2, %v2802_v58 }
0x1259   :  { %5945 = vmatprep.subr.bf16.mxu1 %v6372_v13 }
0x125a   :  { %v5601_v18 = vpop.f32.mrb[28].mxu0 }
0x125b   :  { %v6054_v46 = vadd.f32 %v5601_v18, %v6379_v14  ;;  %v3360_v61 = vpop.f32.mrb[29].mxu0 }
0x125c   :  { %v6055_v47 = vadd.f32 %v6379_v14, %v3360_v61  ;;  %5947 = vmatpush3.bf16.msra.mxu1 %v6372_v13 }
0x125d   :  { %v3372_v1 = vmul.f32 %v6054_v46, %v6670_v2 }
0x125e   :  { %v3371_v19 = vmul.f32 %v6055_v47, %v6674_v30 }
0x125f   :  { %v3374_v20 = vmax.f32 %v3372_v1, 0.0  ;;  %5590 = vmatmul.mubr.msk.f32.vlgmr.msra.gmra.mrb[20].mxu1 %vm476_vm2, %v2803_v52 }
0x1260   :  { %v3373_v60 = vmax.f32 %v3371_v19, 0.0  ;;  %5606 = vmatprep.mubr.msk.f32.mxu1 %vm118_vm0, %v6495_v28 }
0x1262   :  { %v5948_v31 = vpack.c.bf16 %v3374_v20, %v3373_v60 }
0x1264   :  { %5949 = vmatprep.subr.bf16.mxu1 %v5948_v31 }
0x1265   :  { %5951 = vmatpush3.bf16.msra.mxu1 %v5948_v31 }
0x1266   :  { %5953 = vmatprep.subr.bf16.mxu1 %v6399_v32 }
0x1268   :  { %5607 = vmatmul.mubr.msk.f32.vlgmr.msra.gmra.mrb[22].mxu1 %vm118_vm0, %v6506_v37 }
0x1269   :  { %5955 = vmatpush3.bf16.msra.mxu1 %v6399_v32 }
0x126a   :  { %5957 = vmatprep.subr.bf16.mxu1 %v6403_v35 }
0x126d   :  { %5959 = vmatpush3.bf16.msra.mxu1 %v6403_v35 }
0x126e   :  { %5961 = vmatprep.subr.bf16.mxu1 %v6407_v38 }
0x1332   :  { %v5591_v13 = vpop.f32.mrb[20].mxu1 }
0x1333   :  { %v3206_v14 = vadd.f32 %v5591_v13, %v6410_v40  ;;  %v3196_v54 = vpop.f32.mrb[21].mxu1 }
0x1334   :  { %v3205_v52 = vadd.f32 %v6410_v40, %v3196_v54  ;;  %v6900_v40 = vmov 0.0|0.0  }
0x1335   :  { %v3208_v58 = vmax.f32 %v3206_v14, 0.0 }
0x1336   :  { %v3207_v26 = vmax.f32 %v3205_v52, 0.0 }
0x1337   :  { %v3210_v57 = vsel %vm476_vm2, %v3208_v58, 0.0  ;;  %v3801_v16 = vmul.f32 %v3208_v58, %v6670_v2 }
0x1338   :  { %v3209_v32 = vsel %vm476_vm2, %v3207_v26, 0.0  ;;  %v3800_v8 = vmul.f32 %v3207_v26, %v6674_v30  ;;  %v5980_v26 = vpack.c.bf16 %v6506_v37, %v6495_v28 }
0x1339   :  { %v6739_v24 = vadd.f32 %v3210_v57, %v3209_v32 }
0x133a   :  { %v5977_v35 = vpack.c.bf16 %v3801_v16, %v3800_v8 }
0x133b   :  { %v5608_v39 = vpop.f32.mrb[22].mxu1 }
0x133c   :  { %v3441_v42 = vpop.f32.mrb[23].mxu1  ;;  %v3451_v50 = vmul.f32 %v6652_v7, %v5608_v39 }
0x133d   :  { %v3450_v49 = vmul.f32 %v6654_v55, %v3441_v42 }
0x133f   :  { %5617 = vmatprep.mubr.msk.f32.mxu1 %vm476_vm2, %v3450_v49 }
0x1340   :  { %5618 = vmatmul.mubr.msk.f32.vlgmr.msra.gmra.mrb[24].mxu1 %vm476_vm2, %v3451_v50 }
0x1341   :  { %5963 = vmatpush3.bf16.msra.mxu1 %v6407_v38  ;;  %5628 = vmatprep.mubr.msk.f32.mxu1 %vm476_vm2, %v3373_v60 }
0x1342   :  { %5965 = vmatprep.subr.bf16.mxu1 %v6422_v4 }
0x1345   :  { %5967 = vmatpush3.bf16.msra.mxu1 %v6422_v4 }
0x1346   :  { %5979 = vmatprep.subr.bf16.mxu1 %v6900_v40 }
0x1348   :  { %5629 = vmatmul.mubr.msk.f32.vlgmr.msra.gmra.mrb[24].mxu1 %vm476_vm2, %v3374_v20 }
0x1349   :  { %5658 = vmatprep.mubr.msk.f32.mxu1 %vm6198_vm5, %v6901_v51  ;;  %5981 = vmatpush3.bf16.msra.mxu1 %v5980_v26 }
0x134a   :  { %5668 = vmatprep.subr.mxu1 %v6901_v51 }
0x141b   :  { %v5630_v7 = vpop.f32.mrb[24].mxu1 }
0x141c   :  { %v6056_v55 = vadd.f32 %v5630_v7, %v6443_v12  ;;  %v3605_v11 = vpop.f32.mrb[25].mxu1 }
0x141d   :  { %v6057_v0 = vadd.f32 %v6443_v12, %v3605_v11 }
0x141e   :  { %v3617_v38 = vmul.f32 %v6056_v55, %v6670_v2  ;;  %v6795_v55 = vld [vmem:[#allocation2 + $0x278] sm:$0x1] }
0x141f   :  { %v3616_v18 = vmul.f32 %v6057_v0, %v6674_v30  ;;  %v6799_v0 = vadd.f32 %v6650_v59, %v6795_v55 }
0x1420   :  { %v3619_v61 = vmax.f32 %v3617_v38, 0.0 }
0x1421   :  { %v3618_v46 = vmax.f32 %v3616_v18, 0.0 }
0x1423   :  { %5633 = vmatprep.mubr.msk.f32.mxu0 %vm1229_vm4, %v3618_v46 }
0x1424   :  { %5634 = vmatmul.mubr.msk.f32.vlgmr.msra.gmra.mrb[30].mxu0 %vm1229_vm4, %v3619_v61 }
0x1425   :  { %5971 = vmatpush3.bf16.msra.mxu0 %v6437_v9  ;;  %5644 = vmatprep.mubr.msk.f32.mxu0 %vm476_vm2, %v3373_v60 }
0x1426   :  { %5973 = vmatprep.subr.bf16.mxu0 %v6449_v34 }
0x1429   :  { %5975 = vmatpush3.bf16.msra.mxu0 %v6449_v34 }
0x142a   :  { %5976 = vmatprep.subr.bf16.mxu0 %v6900_v40 }
0x142c   :  { %5645 = vmatmul.mubr.msk.f32.vlgmr.msra.gmra.mrb[30].mxu0 %vm476_vm2, %v3374_v20 }
0x142d   :  { %5978 = vmatpush3.bf16.msra.mxu0 %v5977_v35  ;;  %5651 = vmatprep.mubr.msk.f32.mxu0 %vm6198_vm5, %v6901_v51 }
0x142e   :  { %5982 = vmatprep.subr.bf16.mxu0 %v6900_v40 }
0x14ff   :  { %v5646_v4 = vpop.f32.mrb[30].mxu0 }
0x1500   :  { %v3767_v12 = vpop.f32.mrb[31].mxu0  ;;  %v3777_v47 = vadd.f32 %v5646_v4, %v6462_v36 }
0x1501   :  { %v3776_v9 = vadd.f32 %v6462_v36, %v3767_v12 }
0x1502   :  { %v3781_v34 = vsel %vm1229_vm4, %v3777_v47, -inf }
0x1503   :  { %v3778_v1 = vsel %vm1229_vm4, %v3776_v9, -inf }
0x1504   :  { %3779 = vmax.xlane.f32.xlu1 %v3778_v1 }
0x1508   :  { %3782 = vmax.xlane.f32.xlu1 %v3781_v34 }
0x1591   :  { %v3780_v19 = vpop.xlane.xlu1 %3779 }
0x1592   :  { %v3784_v20 = vsub.f32 %v3776_v9, %v3780_v19 }
0x1594   :  { %v3786_v60 = vmul.f32 1.442695, %v3784_v20 }
0x1595   :  { %v3783_v31 = vpop.xlane.xlu1 %3782 }
0x1596   :  { %6127 = vpow2.f32 %v3786_v60  ;;  %v3785_v13 = vsub.f32 %v3777_v47, %v3783_v31 }
0x1598   :  { %v3788_v14 = vmul.f32 1.442695, %v3785_v13 }
0x159a   :  { %6129 = vpow2.f32 %v3788_v14 }
0x15a0   :  { %v6128_v54 = vpop.eup %6127 }
0x15a1   :  { %v3790_v52 = vsel %vm1229_vm4, %v6128_v54, 0.0 }
0x15a2   :  { %3791 = vadd.xlane.f32.xlu0 %v3790_v52 }
0x15a4   :  { %v6130_v58 = vpop.eup %6129 }
0x15a5   :  { %v3793_v36 = vsel %vm1229_vm4, %v6130_v58, 0.0 }
0x15a6   :  { %3794 = vadd.xlane.f32.xlu1 %v3793_v36 }
0x162f   :  { %v3792_v57 = vpop.xlane.xlu0 %3791 }
0x1630   :  { %6131 = vrcp.f32 %v3792_v57 }
0x1633   :  { %v3795_v16 = vpop.xlane.xlu1 %3794 }
0x1634   :  { %6133 = vrcp.f32 %v3795_v16 }
0x163a   :  { %v6132_v32 = vpop.eup %6131 }
0x163b   :  { %v3798_v8 = vmul.f32 %v6132_v32, %v6128_v54 }
0x163d   :  { %v3802_v35 = vmul.f32 %v3798_v8, %v6674_v30 }
0x163e   :  { %v6134_v39 = vpop.eup %6133 }
0x163f   :  { %3804 = vxpose.xlu1.b32.start [1/2] (short) (narrow) %v3802_v35, 8  ;;  %v3799_v42 = vmul.f32 %v6134_v39, %v6130_v58 }
0x1641   :  { %v3803_v49 = vmul.f32 %v3799_v42, %v6670_v2 }
0x1643   :  { %v5983_v50 = vpack.c.bf16 %v3803_v49, %v3802_v35  ;;  %3805 = vxpose.xlu1.b32.end [2/2] (short) (narrow) %v3803_v49, 8 }
0x16bf   :  { %v3820_v7 = vpop.trf.xlu1 }
0x16c0   :  { %5652 = vmatmul.mubr.msk.f32.vlgmr.msra.gmra.mrb[32].mxu0 %vm118_vm0, %v3820_v7  ;;  %5659 = vmatmul.mubr.msk.f32.vlgmr.msra.gmra.mrb[26].mxu1 %vm118_vm0, %v3820_v7 }
0x16c1   :  { %5984 = vmatpush3.bf16.msra.mxu0 %v5983_v50  ;;  %5665 = vmatprep.mubr.msk.f32.mxu0 %vm6198_vm5, %v6901_v51 }
0x16c2   :  { %5670 = vmatprep.mubr.msk.f32.mxu1 %vm6198_vm5, %v6901_v51  ;;  %5985 = vmatprep.subr.bf16.mxu0 %v6900_v40 }
0x1793   :  { %v3905_v28 = vpop.f32.mrb[32].mxu0  ;;  %v3975_v37 = vpop.f32.mrb[26].mxu1 }
0x1794   :  { %v5653_v30 = vpop.f32.mrb[33].mxu0  ;;  %v5660_v2 = vpop.f32.mrb[27].mxu1  ;;  %5666 = vmatmul.mubr.msk.f32.vlgmr.msra.gmra.mrb[34].mxu0 %vm118_vm0, %v3975_v37  ;;  %5669 = vmatpush3.msk.msra.mxu1 %vm1236_vm3, %v3905_v28 }
0x1795   :  { %5987 = vmatpush3.bf16.msra.mxu0 %v6513_v45  ;;  %5681 = vmatprep.mubr.msk.f32.mxu0 %vm6198_vm5, %v6901_v51 }
0x1796   :  { %5988 = vmatprep.subr.bf16.mxu0 %v6900_v40  ;;  %5695 = vmatprep.subr.mxu1 %v6901_v51 }
0x1799   :  { %5990 = vmatpush3.bf16.msra.mxu0 %v6517_v23  ;;  %v2511_v23 = vsel %vm2510_vm8, %v6799_v0, -inf }
0x179a   :  { %5991 = vmatprep.subr.bf16.mxu0 %v6900_v40 }
0x1867   :  { %v4048_v11 = vpop.f32.mrb[34].mxu0 }
0x1868   :  { %v5667_v38 = vpop.f32.mrb[35].mxu0  ;;  %5671 = vmatmul.mubr.msk.f32.vlgmr.msra.gmra.mrb[28].mxu1 %vm1229_vm4, %v4048_v11  ;;  %v4052_v45 = vsel %vm1670_vm6, %v4048_v11, 0.0 }
0x1869   :  { %4053 = vadd.xlane.f32.xlu0 %v4052_v45  ;;  %5697 = vmatprep.mubr.msk.f32.mxu1 %vm6198_vm5, %v6901_v51 }
0x186d   :  { %2512 = vmax.xlane.f32.xlu0 %v2511_v23 }
0x18f6   :  { %v4054_v18 = vpop.xlane.xlu0 %4053 }
0x18f7   :  { %v4055_v46 = vmax.f32 %v4054_v18, 1.0 }
0x18f9   :  { %6135 = vrcp.f32 %v4055_v46 }
0x1903   :  { %v6136_v61 = vpop.eup %6135 }
0x193b   :  { %v4129_v59 = vpop.f32.mrb[28].mxu1 }
0x193c   :  { %v4133_v4 = vmul.f32 %v6136_v61, %v4129_v59  ;;  %v5672_v12 = vpop.f32.mrb[29].mxu1 }
0x193e   :  { %5682 = vmatmul.mubr.msk.f32.vlgmr.msra.gmra.mrb[36].mxu0 %vm476_vm2, %v4133_v4 }
0x193f   :  { %5993 = vmatpush3.bf16.msra.mxu0 %v6521_v62  ;;  %5692 = vmatprep.mubr.msk.f32.mxu0 %vm6198_vm5, %v6901_v51 }
0x1940   :  { %5994 = vmatprep.subr.bf16.mxu0 %v6900_v40 }
0x1943   :  { %5996 = vmatpush3.bf16.msra.mxu0 %v6525_v6 }
0x1944   :  { %6009 = vmatprep.subr.bf16.mxu0 %v6900_v40 }
0x1946   :  { %5693 = vmatmul.mubr.msk.f32.vlgmr.msra.gmra.mrb[36].mxu0 %vm476_vm2, %v3905_v28 }
0x1947   :  { %6011 = vmatpush3.bf16.msra.mxu0 %v6551_v41  ;;  %5730 = vmatprep.mubr.msk.f32.mxu0 %vm6198_vm5, %v6901_v51 }
0x1948   :  { %6012 = vmatprep.subr.bf16.mxu0 %v6900_v40 }
0x194b   :  { %6014 = vmatpush3.bf16.msra.mxu0 %v6580_v5 }
0x194c   :  { %6021 = vmatprep.subr.bf16.mxu0 %v6900_v40 }
0x1a19   :  { %v4275_v62 = vpop.f32.mrb[36].mxu0 }
0x1a1a   :  { %v6058_v9 = vadd.f32 %v6535_v15, %v4275_v62  ;;  %v5694_v47 = vpop.f32.mrb[37].mxu0 }
0x1a1c   :  { %v4280_v6 = vmax.f32 %v6058_v9, 0.0 }
0x1a1e   :  { %5696 = vmatpush3.msk.msra.mxu1 %vm1236_vm3, %v4280_v6 }
0x1a1f   :  { %5698 = vmatmul.mubr.msk.f32.vlgmr.msra.gmra.mrb[30].mxu1 %vm1229_vm4, %v4048_v11  ;;  %5997 = vmatprep.subr.bf16.mxu1 %v6900_v40 }
0x1a20   :  { %5999 = vmatpush3.bf16.msra.mxu1 %v6538_v21  ;;  %5708 = vmatprep.mubr.msk.f32.mxu1 %vm6198_vm5, %v6901_v51  ;;  %v3212_v21 = vrot.slane %v6739_v24, 4 }
0x1a21   :  { %6000 = vmatprep.subr.bf16.mxu1 %v6900_v40 }
0x1a24   :  { %6002 = vmatpush3.bf16.msra.mxu1 %v6544_v25  ;;  %v3213_v25 = vadd.f32 %v3212_v21, %v6739_v24 }
0x1a25   :  { %6003 = vmatprep.subr.bf16.mxu1 %v6900_v40 }
0x1af2   :  { %v4350_v15 = vpop.f32.mrb[30].mxu1 }
0x1af3   :  { %v4354_v41 = vmul.f32 %v6136_v61, %v4350_v15  ;;  %v5699_v5 = vpop.f32.mrb[31].mxu1 }
0x1af5   :  { %5709 = vmatmul.mubr.msk.f32.vlgmr.msra.gmra.mrb[32].mxu1 %vm476_vm2, %v4354_v41 }
0x1af6   :  { %6005 = vmatpush3.bf16.msra.mxu1 %v6555_v44  ;;  %5719 = vmatprep.mubr.msk.f32.mxu1 %vm6198_vm5, %v6901_v51  ;;  %v3214_v44 = vrot.slane %v3213_v25, 2 }
0x1af7   :  { %6006 = vmatprep.subr.bf16.mxu1 %v6900_v40 }
0x1afa   :  { %6008 = vmatpush3.bf16.msra.mxu1 %v6559_v53  ;;  %v3215_v53 = vadd.f32 %v3214_v44, %v3213_v25 }
0x1afb   :  { %6015 = vmatprep.subr.bf16.mxu1 %v6900_v40 }
0x1afc   :  { %v3216_v34 = vrot.slane %v3215_v53, 1 }
0x1afd   :  { %5720 = vmatmul.mubr.msk.f32.vlgmr.msra.gmra.mrb[32].mxu1 %vm476_vm2, %v4280_v6 }
0x1afe   :  { %6017 = vmatpush3.bf16.msra.mxu1 %v6565_v63  ;;  %5741 = vmatprep.mubr.msk.f32.mxu1 %vm6198_vm5, %v6901_v51 }
0x1aff   :  { %6018 = vmatprep.subr.bf16.mxu1 %v6900_v40 }
0x1b02   :  { %6020 = vmatpush3.bf16.msra.mxu1 %v6570_v3 }
0x1b03   :  { %6033 = vmatprep.subr.bf16.mxu1 %v6900_v40 }
0x1b05   :  { %5742 = vmatmul.mubr.msk.f32.vlgmr.msra.gmra.mrb[34].mxu1 %vm476_vm2, %v4280_v6 }
0x1b06   :  { %6035 = vmatpush3.bf16.msra.mxu1 %v6611_v33  ;;  %5774 = vmatprep.mubr.msk.f32.mxu1 %vm6198_vm5, %v6901_v51  ;;  %v3217_v33 = vadd.f32 %v3216_v34, %v3215_v53 }
0x1b07   :  { %6036 = vmatprep.subr.bf16.mxu1 %v6900_v40 }
0x1b08   :  { %v3218_v20 = vmul.f32 0.0625, %v3217_v33 }
0x1b0a   :  { %6038 = vmatpush3.bf16.msra.mxu1 %v6622_v43 }
0x1bd0   :  { %v4496_v63 = vpop.f32.mrb[32].mxu1 }
0x1bd1   :  { %v6059_v3 = vadd.f32 %v6586_v22, %v4496_v63  ;;  %v5721_v1 = vpop.f32.mrb[33].mxu1 }
0x1bd3   :  { %v4501_v19 = vmax.f32 %v6059_v3, 0.0 }
0x1bd5   :  { %5731 = vmatmul.mubr.msk.f32.vlgmr.msra.gmra.mrb[38].mxu0 %vm476_vm2, %v4501_v19 }
0x1bd6   :  { %6023 = vmatpush3.bf16.msra.mxu0 %v6589_v27  ;;  %5752 = vmatprep.mubr.msk.f32.mxu0 %vm6198_vm5, %v6901_v51 }
0x1bd7   :  { %6024 = vmatprep.subr.bf16.mxu0 %v6900_v40 }
0x1bd8   :  { %v4641_v43 = vpop.f32.mrb[34].mxu1 }
0x1bd9   :  { %v5743_v24 = vpop.f32.mrb[35].mxu1 }
0x1bda   :  { %6026 = vmatpush3.bf16.msra.mxu0 %v6593_v56 }
0x1bdb   :  { %6027 = vmatprep.subr.bf16.mxu0 %v6900_v40 }
0x1bdd   :  { %5753 = vmatmul.mubr.msk.f32.vlgmr.msra.gmra.mrb[40].mxu0 %vm476_vm2, %v3218_v20 }
0x1bde   :  { %6029 = vmatpush3.bf16.msra.mxu0 %v6603_v17  ;;  %5763 = vmatprep.mubr.msk.f32.mxu0 %vm6198_vm5, %v6901_v51 }
0x1bdf   :  { %6030 = vmatprep.subr.bf16.mxu0 %v6900_v40 }
0x1be2   :  { %6032 = vmatpush3.bf16.msra.mxu0 %v6607_v29 }
0x1ca8   :  { %v4571_v22 = vpop.f32.mrb[38].mxu0 }
0x1ca9   :  { %v4642_v27 = vadd.f32 %v4641_v43, %v4571_v22  ;;  %v5732_v60 = vpop.f32.mrb[39].mxu0 }
0x1cab   :  { %v4645_v31 = vadd.f32 %v6615_v10, %v4642_v27  ;;  %v2513_v10 = vpop.xlane.xlu0 %2512 }
0x1cac   :  { %v2514_v16 = vsub.f32 %v6799_v0, %v2513_v10 }
0x1cad   :  { %v4646_v56 = vmax.f32 %v4645_v31, 0.0 }
0x1cae   :  { %v2515_v32 = vmul.f32 1.442695, %v2514_v16 }
0x1caf   :  { %v4647_v13 = vsel %vm2278_vm7, %v4646_v56, 0.0 }
0x1cb0   :  { %v4648_v14 = vrot.slane %v4647_v13, 4  ;;  %6137 = vpow2.f32 %v2515_v32 }
0x1cb2   :  { %v4649_v54 = vadd.f32 %v4648_v14, %v4647_v13 }
0x1cb4   :  { %v4650_v52 = vrot.slane %v4649_v54, 2 }
0x1cb6   :  { %v4651_v58 = vadd.f32 %v4650_v52, %v4649_v54 }
0x1cb8   :  { %v4652_v17 = vrot.slane %v4651_v58, 1 }
0x1cba   :  { %v4653_v36 = vadd.f32 %v4652_v17, %v4651_v58  ;;  %v6138_v49 = vpop.eup %6137 }
0x1cbb   :  { %v2517_v50 = vsel %vm2510_vm8, %v6138_v49, 0.0 }
0x1cbc   :  { %v4654_v26 = vmul.f32 0.25, %v4653_v36 }
0x1cbe   :  { %5764 = vmatmul.mubr.msk.f32.vlgmr.msra.gmra.mrb[40].mxu0 %vm476_vm2, %v4654_v26 }
0x1d91   :  { %v4798_v40 = vpop.f32.mrb[40].mxu0 }
0x1d92   :  { %v6060_v29 = vadd.f32 %v4798_v40, %v6637_v48  ;;  %v5765_v51 = vpop.f32.mrb[41].mxu0 }
0x1d94   :  { %v4803_v57 = vmax.f32 %v6060_v29, 0.0 }
0x1d96   :  { %5775 = vmatmul.mubr.msk.f32.vlgmr.msra.gmra.mrb[36].mxu1 %vm476_vm2, %v4803_v57 }
0x1e69   :  { %v4873_v8 = vpop.f32.mrb[36].mxu1 }
0x1e6a   :  { %v4874_v35 = vadd.f32 %v4873_v8, %v6795_v55  ;;  %v5776_v39 = vpop.f32.mrb[37].mxu1 }
0x1e6c   :  { %v4877_v42 = vsel %vm2510_vm8, %v4874_v35, -inf }
0x1e6d   :  { %4878 = vmax.xlane.f32.xlu0 %v4877_v42 }
0x1e71   :  { %2518 = vadd.xlane.f32.xlu0 %v2517_v50 }
0x1efa   :  { %v4879_v48 = vpop.xlane.xlu0 %4878 }
0x1efb   :  { %v4880_v7 = vsub.f32 %v4874_v35, %v4879_v48 }
0x1efd   :  { %v4881_v28 = vmul.f32 1.442695, %v4880_v7 }
0x1efe   :  { %v2519_v37 = vpop.xlane.xlu0 %2518 }
0x1eff   :  { %6139 = vpow2.f32 %v4881_v28 }
0x1f00   :  { %6141 = vlog2.f32 %v2519_v37 }
0x1f09   :  { %v6140_v30 = vpop.eup %6139 }
0x1f0a   :  { %v6142_v2 = vpop.eup %6141  ;;  %v4883_v11 = vsel %vm2510_vm8, %v6140_v30, 0.0 }
0x1f0b   :  { %v2521_v0 = vmul.f32 0.6931472, %v6142_v2  ;;  %4884 = vadd.xlane.f32.xlu0 %v4883_v11 }
0x1f0d   :  { %v2522_v55 = vsub.f32 %v2514_v16, %v2521_v0 }
0x1f0f   :  { %2523 = vst.msk [vmem:[#allocation5] sm:$0x1] %vm2510_vm8, %v2522_v55 }
0x1f98   :  { %v4885_v38 = vpop.xlane.xlu0 %4884 }
0x1f99   :  { %6143 = vlog2.f32 %v4885_v38 }
0x1fa3   :  { %v6144_v45 = vpop.eup %6143 }
0x1fa4   :  { %v4887_v23 = vmul.f32 0.6931472, %v6144_v45 }
0x1fa6   :  { %v4888_v18 = vsub.f32 %v4880_v7, %v4887_v23 }
0x1fa8   :  { %4890 = vst.msk [vmem:[#allocation5 + $0x1] sm:$0x1] %vm2510_vm8, %v4888_v18 }
0x1fa9   :  { %6178 = shalt.err (!%p6175_p12)
}
0x1faa   :  { %s6179_s28 = scalar_lea.hbm %s6895_s4, 32 }
0x1fab   :  { %p6180_p13 = scmp.ne.s32.totalorder %s6895_s4, %s6179_s28  ;;  %p6183_p0 = scmp.lt.u32.totalorder %s6179_s28, %s6895_s4 }
0x1fad   :  { %p6185_p1 = pnand %p6183_p0, %p6180_p13 }
0x1faf   :  { %6188 = shalt.err (!%p6185_p1)
}
0x1fb0   :  { %s6201_s7 = smov 16   ;;  %s6202_s8 = smov 1  }
0x1fb1   :  { %4902 = dma.vmem_to_hbm [thread:$0]  %s4897_s24, 32, %s6895_s4, [#allocation4], %s6201_s7, %s6201_s7, %s6202_s8  }
0x1fb2   :  { %6191 = dma.done.wait [#allocation4], 32  }
0x1fb3   :  { %6192 = vsyncadd [#allocation4], 4294967264 }
0x1fb4   :  { %4906 = vsyncpa [#allocation3], 1 }
0x1fb5   :  { %4907 = vsyncpa [#allocation4], 1 }

// kernel: tpu_custom_call.1
= control target key start
LH: loop header
LB: loop body
LE: loop exit
PB: predicated region body
PF: predicated region fallthrough
CT: control target
= control target key end

     0   :  { %9 = vsyncpa [#allocation3], 0  ;;  %s6891_s0 = inlined_call_operand.vmem [shape: f32[2,16,8], index: 0, kind: input, shape index: {}]   ;;  %s6892_s1 = inlined_call_operand.vmem [shape: f32[2,16,16], index: 1, kind: input, shape index: {}]   ;;  %s6893_s2 = inlined_call_operand.vmem [shape: f32[2,16,1], index: 2, kind: input, shape index: {}]   ;;  %s6894_s3 = inlined_call_operand.hbm [shape: f32[640,128], index: 3, kind: input, shape index: {}]   ;;  %s6895_s4 = inlined_call_operand.hbm [shape: f32[2,1,4], index: 4, kind: output, shape index: {}]  }
   0x1   :  { %10 = vsyncpa [#allocation4], 0  ;;  %s6193_s15 = smov [#allocation2]   ;;  %s6145_s19 = scalar_lea.hbm %s6894_s3, 10240 }
   0x2   :  { %s22_s16 = sshll.u32 %s6193_s15, 4  ;;  %p6146_p0 = scmp.ne.s32.totalorder %s6894_s3, %s6145_s19  ;;  %s23_s16 = int_to_ptr.vmem [resolvable:$true] %s22_s16 }
   0x3   :  { %p6149_p1 = scmp.lt.u32.totalorder %s6145_s19, %s6894_s3 }
   0x5   :  { %p6151_p2 = pnand %p6149_p1, %p6146_p0 }
   0x7   :  { %6154 = shalt.err (!%p6151_p2)
}
   0x8   :  { %s6155_s24 = scalar_lea.vmem %s23_s16, 10240  ;;  %p6160_p4 = scmp.lt.s32.totalorder %s23_s16, %s23_s16 }
   0x9   :  { %p6156_p3 = scmp.ne.s32.totalorder %s23_s16, %s6155_s24  ;;  %p6161_p5 = scmp.lt.s32.totalorder %s6155_s24, %s6155_s24 }
   0xb   :  { %p6162_p6 = por %p6161_p5, %p6160_p4 }
   0xd   :  { %p6163_p7 = pnand %p6162_p6, %p6156_p3 }
   0xf   :  { %6166 = shalt.err (!%p6163_p7)
}
  0x10   :  { %s6194_s25 = smov 128   ;;  %s6195_s26 = smov 8  }
  0x11   :  { %28 = dma.hbm_to_vmem [thread:$0]  %s6894_s3, 10240, %s23_s16, [#allocation3], %s6194_s25, %s6194_s25, %s6195_s26  }
  0x12   :  { %6189 = dma.done.wait [#allocation3], 10240  }
  0x13   :  { %6190 = vsyncadd [#allocation3], 4294957056  ;;  %vm118_vm0 = vcmask 130048   ;;  %v6243_v0 = vld [vmem:[%s6891_s0] sm:$0xff]  ;;  %v6248_v1 = vld [vmem:[%s6891_s0 + $0x8] sm:$0xff]  ;;  %v6196_v10 = vmov 0  }
  0x14   :  { %v6253_v2 = vld [vmem:[%s6892_s1] sm:$0xff]  ;;  %v5777_v3 = vpack.c.bf16 %v6248_v1, %v6243_v0  ;;  %v6264_v5 = vld [vmem:[%s6892_s1 + $0x8] sm:$0xff]  ;;  %v6272_v7 = vld [vmem:[#allocation2 + $0x90] sm:$0xff]  ;;  %6107 = vset.pattern.permute.xlu1 %v6196_v10  ;;  %vm216_vm1 = vcmask 64512   ;;  %vm476_vm2 = vcmask 261120   ;;  %vm1236_vm3 = vcmask 1043456  }
  0x15   :  { %5275 = vmatprep.mubr.msk.f32.mxu0 %vm118_vm0, %v6253_v2  ;;  %v119_v4 = vsel %vm118_vm0, %v6253_v2, 0.0  ;;  %v122_v6 = vsel %vm118_vm0, %v6264_v5, 0.0  ;;  %5278 = vmatprep.subr.mxu1 %v6272_v7  ;;  %v6276_v8 = vld [vmem:[#allocation2 + $0xa0] sm:$0xff]  ;;  %v117_v11 = vld [vmem:[%s6893_s2 + $0x8] sm:$0xff]  ;;  %v54_v23 = vld [vmem:[#allocation2 + $0xb0] sm:$0xff]  ;;  %vm1229_vm4 = vcmask 31744  }
  0x16   :  { %120 = vadd.xlane.f32.xlu0 %v119_v4  ;;  %5778 = vmatprep.subr.bf16.mxu0 %v5777_v3  ;;  %v116_v9 = vld [vmem:[%s6893_s2] sm:$0xff]  ;;  %v53_v22 = vld [vmem:[#allocation2 + $0xa8] sm:$0xff]  ;;  %v6305_v26 = vld [vmem:[#allocation2 + $0x98] ss:$0 sm:$0xff]  ;;  %vm6198_vm5 = vmmov 0   ;;  %vm1670_vm6 = vcmask 27648  }
  0x17   :  { %5780 = vmatpush3.bf16.msra.mxu0 %v5777_v3  ;;  %5279 = vmatpush3.msra.mxu1 %v6272_v7  ;;  %v6299_v24 = vpack.c.bf16 %v54_v23, %v53_v22  ;;  %v55_v37 = vld [vmem:[#allocation2 + $0xb8] sm:$0xff]  ;;  %v56_v38 = vld [vmem:[#allocation2 + $0xc0] sm:$0xff]  ;;  %v58_v40 = vld [vmem:[#allocation2 + $0xd0] sm:$0xff]  ;;  %vm2278_vm7 = vcmask 257024   ;;  %vm2510_vm8 = vcmask 24576  }
  0x18   :  { %5283 = vmatprep.subr.mxu1 %v6276_v8  ;;  %383 = vperm.xlu1 %6107, %v116_v9   ;;  %v6321_v39 = vpack.c.bf16 %v56_v38, %v55_v37  ;;  %v59_v41 = vld [vmem:[#allocation2 + $0xd8] sm:$0xff]  ;;  %v60_v44 = vld [vmem:[#allocation2 + $0xe0] sm:$0xff]  ;;  %v61_v45 = vld [vmem:[#allocation2 + $0xe8] sm:$0xff] }
  0x19   :  { %v6325_v42 = vpack.c.bf16 %v59_v41, %v58_v40  ;;  %v6330_v49 = vpack.c.bf16 %v61_v45, %v60_v44  ;;  %v6338_v50 = vld [vmem:[#allocation2] sm:$0xff]  ;;  %v6342_v51 = vld [vmem:[#allocation2 + $0x10] sm:$0xff]  ;;  %v67_v53 = vld [vmem:[#allocation2 + $0x118] sm:$0xff] }
  0x1a   :  { %123 = vadd.xlane.f32.xlu0 %v122_v6  ;;  %5276 = vmatmul.mubr.msk.f32.vlgmr.msra.gmra.mrb[0].mxu0 %vm118_vm0, %v6264_v5  ;;  %v66_v52 = vld [vmem:[#allocation2 + $0x110] sm:$0xff]  ;;  %v68_v55 = vld [vmem:[#allocation2 + $0x120] sm:$0xff]  ;;  %v69_v56 = vld [vmem:[#allocation2 + $0x128] sm:$0xff] }
  0x1b   :  { %5292 = vmatprep.mubr.msk.f32.mxu0 %vm118_vm0, %v6253_v2  ;;  %v6355_v54 = vpack.c.bf16 %v67_v53, %v66_v52  ;;  %v6359_v57 = vpack.c.bf16 %v69_v56, %v68_v55  ;;  %v62_v58 = vld [vmem:[#allocation2 + $0xf0] sm:$0xff]  ;;  %v63_v59 = vld [vmem:[#allocation2 + $0xf8] sm:$0xff]  ;;  %v6366_v61 = vld [vmem:[#allocation2 + $0xc8] ss:$0 sm:$0xff] }
  0x1c   :  { %388 = vperm.xlu1 %6107, %v117_v11   ;;  %v6363_v60 = vpack.c.bf16 %v63_v59, %v62_v58  ;;  %v64_v6 = vld [vmem:[#allocation2 + $0x100] sm:$0xff]  ;;  %v65_v9 = vld [vmem:[#allocation2 + $0x108] sm:$0xff]  ;;  %v6410_v40 = vld [vmem:[#allocation2 + $0x130] ss:$0 sm:$0xff] }
  0x1d   :  { %v41_v37 = vld [vmem:[#allocation2 + $0x48] sm:$0xff] }
  0x97   :  { %v6303_v25 = vpop.permute.xlu1 %383 }
  0x9b   :  { %v6308_v30 = vpop.permute.xlu1 %388 }
  0xa3   :  { %v121_v12 = vpop.xlane.xlu0 %120 }
  0xa4   :  { %v125_v15 = vmax.f32 %v121_v12, 1.0 }
  0xa7   :  { %v124_v13 = vpop.xlane.xlu0 %123 }
  0xa8   :  { %v126_v14 = vmax.f32 %v124_v13, 1.0  ;;  %v6372_v13 = vpack.c.bf16 %v65_v9, %v64_v6  ;;  %v45_v6 = vld [vmem:[#allocation2 + $0x68] sm:$0xff] }
  0xaa   :  { %6109 = vrcp.f32 %v126_v14  ;;  %v6379_v14 = vld [vmem:[#allocation2 + $0x8] ss:$0 sm:$0xff] }
  0xab   :  { %6111 = vrcp.f32 %v125_v15 }
  0xb4   :  { %v6286_v16 = vpop.eup %6109 }
  0xb5   :  { %v6288_v18 = vpop.eup %6111 }
  0xed   :  { %v5277_v17 = vpop.f32.mrb[0].mxu0 }
  0xee   :  { %v201_v19 = vpop.f32.mrb[1].mxu0  ;;  %v211_v21 = vmul.f32 %v6286_v16, %v5277_v17 }
  0xef   :  { %v210_v20 = vmul.f32 %v6288_v18, %v201_v19 }
  0xf1   :  { %5280 = vmatprep.mubr.msk.f32.mxu1 %vm216_vm1, %v210_v20 }
  0xf2   :  { %5281 = vmatmul.mubr.msk.f32.vlgmr.msra.gmra.mrb[0].mxu1 %vm216_vm1, %v211_v21 }
  0xf3   :  { %5284 = vmatpush3.msra.mxu1 %v6276_v8  ;;  %5285 = vmatprep.mubr.msk.f32.mxu1 %vm216_vm1, %v6243_v0 }
  0xf4   :  { %5786 = vmatprep.subr.bf16.mxu1 %v6299_v24 }
  0xfa   :  { %5286 = vmatmul.mubr.msk.f32.vlgmr.msra.gmra.mrb[0].mxu1 %vm216_vm1, %v6248_v1 }
  0xfb   :  { %5788 = vmatpush3.bf16.msra.mxu1 %v6299_v24 }
  0xfc   :  { %5790 = vmatprep.subr.bf16.mxu1 %v6321_v39 }
  0xff   :  { %5792 = vmatpush3.bf16.msra.mxu1 %v6321_v39 }
 0x100   :  { %5794 = vmatprep.subr.bf16.mxu1 %v6325_v42 }
 0x1cd   :  { %v5287_v27 = vpop.f32.mrb[0].mxu1 }
 0x1ce   :  { %v6039_v28 = vadd.f32 %v5287_v27, %v6305_v26  ;;  %v370_v29 = vpop.f32.mrb[1].mxu1 }
 0x1cf   :  { %v6040_v31 = vadd.f32 %v6305_v26, %v370_v29  ;;  %v35_v29 = vld [vmem:[#allocation2 + $0x18] sm:$0xff] }
 0x1d0   :  { %v392_v32 = vmul.f32 %v6039_v28, %v6308_v30 }
 0x1d1   :  { %v391_v33 = vmul.f32 %v6040_v31, %v6303_v25  ;;  %v36_v31 = vld [vmem:[#allocation2 + $0x20] sm:$0xff] }
 0x1d2   :  { %v6313_v34 = vmax.f32 %v392_v32, 0.0  ;;  %v6399_v32 = vpack.c.bf16 %v36_v31, %v35_v29  ;;  %v47_v29 = vld [vmem:[#allocation2 + $0x78] sm:$0xff] }
 0x1d3   :  { %v6315_v35 = vmax.f32 %v391_v33, 0.0  ;;  %v37_v33 = vld [vmem:[#allocation2 + $0x28] sm:$0xff] }
 0x1d5   :  { %v5781_v36 = vpack.c.bf16 %v6313_v34, %v6315_v35 }
 0x1d7   :  { %5782 = vmatprep.subr.bf16.mxu0 %v5781_v36 }
 0x1d8   :  { %5784 = vmatpush3.bf16.msra.mxu0 %v5781_v36  ;;  %v40_v36 = vld [vmem:[#allocation2 + $0x40] sm:$0xff] }
 0x1d9   :  { %5802 = vmatprep.subr.bf16.mxu0 %v6355_v54  ;;  %v6407_v38 = vpack.c.bf16 %v41_v37, %v40_v36  ;;  %v6462_v36 = vld [vmem:[#allocation2 + $0x88] ss:$0 sm:$0xff] }
 0x1db   :  { %5293 = vmatmul.mubr.msk.f32.vlgmr.msra.gmra.mrb[2].mxu0 %vm118_vm0, %v6264_v5 }
 0x1dc   :  { %5804 = vmatpush3.bf16.msra.mxu0 %v6355_v54 }
 0x1dd   :  { %5806 = vmatprep.subr.bf16.mxu0 %v6359_v57 }
 0x1e0   :  { %5808 = vmatpush3.bf16.msra.mxu0 %v6359_v57 }
 0x1e1   :  { %5810 = vmatprep.subr.bf16.mxu0 %v6363_v60 }
 0x2ae   :  { %v5294_v43 = vpop.f32.mrb[2].mxu0 }
 0x2af   :  { %v461_v46 = vpop.f32.mrb[3].mxu0  ;;  %v471_v48 = vmul.f32 %v6286_v16, %v5294_v43 }
 0x2b0   :  { %v470_v47 = vmul.f32 %v6288_v18, %v461_v46 }
 0x2b2   :  { %5303 = vmatprep.mubr.msk.f32.mxu1 %vm476_vm2, %v470_v47 }
 0x2b3   :  { %5304 = vmatmul.mubr.msk.f32.vlgmr.msra.gmra.mrb[2].mxu1 %vm476_vm2, %v471_v48 }
 0x2b4   :  { %5796 = vmatpush3.bf16.msra.mxu1 %v6325_v42  ;;  %5314 = vmatprep.mubr.msk.f32.mxu1 %vm476_vm2, %v6315_v35 }
 0x2b5   :  { %5798 = vmatprep.subr.bf16.mxu1 %v6330_v49 }
 0x2b8   :  { %5800 = vmatpush3.bf16.msra.mxu1 %v6330_v49 }
 0x2b9   :  { %5339 = vmatprep.subr.mxu1 %v6338_v50 }
 0x2bb   :  { %5315 = vmatmul.mubr.msk.f32.vlgmr.msra.gmra.mrb[2].mxu1 %vm476_vm2, %v6313_v34 }
 0x2bc   :  { %5341 = vmatprep.mubr.msk.f32.mxu1 %vm216_vm1, %v210_v20  ;;  %5340 = vmatpush3.msra.mxu1 %v6338_v50 }
 0x2bd   :  { %5344 = vmatprep.subr.mxu1 %v6342_v51 }
 0x2bf   :  { %5342 = vmatmul.mubr.msk.f32.vlgmr.msra.gmra.mrb[4].mxu1 %vm216_vm1, %v211_v21 }
 0x2c0   :  { %5345 = vmatpush3.msra.mxu1 %v6342_v51  ;;  %5346 = vmatprep.mubr.msk.f32.mxu1 %vm216_vm1, %v6243_v0 }
 0x2c7   :  { %5347 = vmatmul.mubr.msk.f32.vlgmr.msra.gmra.mrb[4].mxu1 %vm216_vm1, %v6248_v1 }
 0x38e   :  { %v5316_v62 = vpop.f32.mrb[2].mxu1 }
 0x38f   :  { %v6041_v63 = vadd.f32 %v5316_v62, %v6366_v61  ;;  %v630_v0 = vpop.f32.mrb[3].mxu1  ;;  %v42_v62 = vld [vmem:[#allocation2 + $0x50] sm:$0xff] }
 0x390   :  { %v6042_v1 = vadd.f32 %v6366_v61, %v630_v0 }
 0x391   :  { %v642_v3 = vmul.f32 %v6041_v63, %v6308_v30  ;;  %v43_v63 = vld [vmem:[#allocation2 + $0x58] sm:$0xff] }
 0x392   :  { %v641_v4 = vmul.f32 %v6042_v1, %v6303_v25 }
 0x393   :  { %v644_v12 = vmax.f32 %v642_v3, 0.0 }
 0x394   :  { %v643_v11 = vmax.f32 %v641_v4, 0.0  ;;  %v6422_v4 = vpack.c.bf16 %v43_v63, %v42_v62  ;;  %v5849_v63 = vpack.c.bf16 %v6264_v5, %v6253_v2 }
 0x396   :  { %5325 = vmatprep.mubr.msk.f32.mxu0 %vm476_vm2, %v643_v11  ;;  %v6898_v11 = vmov 0.0|0.0  }
 0x397   :  { %5326 = vmatmul.mubr.msk.f32.vlgmr.msra.gmra.mrb[4].mxu0 %vm476_vm2, %v644_v12  ;;  %v6443_v12 = vld [vmem:[#allocation2 + $0x38] ss:$0 sm:$0xff] }
 0x398   :  { %5812 = vmatpush3.bf16.msra.mxu0 %v6363_v60  ;;  %5336 = vmatprep.mubr.msk.f32.mxu0 %vm476_vm2, %v6315_v35 }
 0x399   :  { %5814 = vmatprep.subr.bf16.mxu0 %v6372_v13 }
 0x39a   :  { %v5348_v15 = vpop.f32.mrb[4].mxu1 }
 0x39b   :  { %v6043_v17 = vadd.f32 %v5348_v15, %v6379_v14  ;;  %v965_v19 = vpop.f32.mrb[5].mxu1 }
 0x39c   :  { %v6044_v20 = vadd.f32 %v6379_v14, %v965_v19  ;;  %5816 = vmatpush3.bf16.msra.mxu0 %v6372_v13 }
 0x39d   :  { %v977_v21 = vmul.f32 %v6043_v17, %v6308_v30 }
 0x39e   :  { %v976_v22 = vmul.f32 %v6044_v20, %v6303_v25 }
 0x39f   :  { %v6387_v23 = vmax.f32 %v977_v21, 0.0  ;;  %5337 = vmatmul.mubr.msk.f32.vlgmr.msra.gmra.mrb[4].mxu0 %vm476_vm2, %v6313_v34  ;;  %v38_v34 = vld [vmem:[#allocation2 + $0x30] sm:$0xff] }
 0x3a0   :  { %v6391_v27 = vmax.f32 %v976_v22, 0.0  ;;  %5353 = vmatprep.mubr.msk.f32.mxu0 %vm118_vm0, %v6253_v2  ;;  %v6403_v35 = vpack.c.bf16 %v38_v34, %v37_v33 }
 0x3a2   :  { %v5817_v28 = vpack.c.bf16 %v6387_v23, %v6391_v27 }
 0x3a4   :  { %5818 = vmatprep.subr.bf16.mxu0 %v5817_v28 }
 0x3a5   :  { %5820 = vmatpush3.bf16.msra.mxu0 %v5817_v28  ;;  %v46_v28 = vld [vmem:[#allocation2 + $0x70] sm:$0xff] }
 0x3a6   :  { %5822 = vmatprep.subr.bf16.mxu0 %v6399_v32  ;;  %v6449_v34 = vpack.c.bf16 %v47_v29, %v46_v28  ;;  %v6495_v28 = vld [vmem:[%s6892_s1 + $0x10] sm:$0xff] }
 0x3a8   :  { %5354 = vmatmul.mubr.msk.f32.vlgmr.msra.gmra.mrb[6].mxu0 %vm118_vm0, %v6264_v5 }
 0x3a9   :  { %5824 = vmatpush3.bf16.msra.mxu0 %v6399_v32 }
 0x3aa   :  { %5826 = vmatprep.subr.bf16.mxu0 %v6403_v35 }
 0x3ad   :  { %5828 = vmatpush3.bf16.msra.mxu0 %v6403_v35 }
 0x3ae   :  { %5830 = vmatprep.subr.bf16.mxu0 %v6407_v38 }
 0x472   :  { %v5338_v41 = vpop.f32.mrb[4].mxu0 }
 0x473   :  { %v806_v43 = vadd.f32 %v5338_v41, %v6410_v40  ;;  %v792_v44 = vpop.f32.mrb[5].mxu0 }
 0x474   :  { %v805_v45 = vadd.f32 %v6410_v40, %v792_v44 }
 0x475   :  { %v808_v46 = vmax.f32 %v806_v43, 0.0 }
 0x476   :  { %v807_v47 = vmax.f32 %v805_v45, 0.0 }
 0x477   :  { %v810_v48 = vsel %vm476_vm2, %v808_v46, 0.0  ;;  %v1419_v52 = vmul.f32 %v808_v46, %v6308_v30 }
 0x478   :  { %v809_v53 = vsel %vm476_vm2, %v807_v47, 0.0  ;;  %v1418_v55 = vmul.f32 %v807_v47, %v6303_v25 }
 0x479   :  { %v6418_v56 = vadd.f32 %v810_v48, %v809_v53 }
 0x47a   :  { %v5846_v58 = vpack.c.bf16 %v1419_v52, %v1418_v55 }
 0x47b   :  { %v5355_v59 = vpop.f32.mrb[6].mxu0 }
 0x47c   :  { %v1046_v0 = vpop.f32.mrb[7].mxu0  ;;  %v1056_v3 = vmul.f32 %v6286_v16, %v5355_v59  ;;  %v44_v16 = vld [vmem:[#allocation2 + $0x60] sm:$0xff] }
 0x47d   :  { %v1055_v1 = vmul.f32 %v6288_v18, %v1046_v0  ;;  %v6433_v18 = vld [vmem:[#allocation2 + $0x80] sm:$0xf]  ;;  %v6437_v9 = vpack.c.bf16 %v45_v6, %v44_v16  ;;  %v6896_v0 = vmov 0.0  }
 0x47e   :  { %5378 = vmatprep.subr.msk.mxu1 %vm1236_vm3, %v6433_v18 }
 0x47f   :  { %5364 = vmatprep.mubr.msk.f32.mxu0 %vm476_vm2, %v1055_v1  ;;  %5379 = vmatpush3.msk.msra.mxu1 %vm1236_vm3, %v6433_v18 }
 0x480   :  { %5365 = vmatmul.mubr.msk.f32.vlgmr.msra.gmra.mrb[8].mxu0 %vm476_vm2, %v1056_v3  ;;  %5838 = vmatprep.subr.bf16.mxu1 %v6437_v9 }
 0x481   :  { %5832 = vmatpush3.bf16.msra.mxu0 %v6407_v38  ;;  %5375 = vmatprep.mubr.msk.f32.mxu0 %vm476_vm2, %v6391_v27 }
 0x482   :  { %5834 = vmatprep.subr.bf16.mxu0 %v6422_v4 }
 0x485   :  { %5836 = vmatpush3.bf16.msra.mxu0 %v6422_v4 }
 0x486   :  { %5848 = vmatprep.subr.bf16.mxu0 %v6898_v11 }
 0x488   :  { %5376 = vmatmul.mubr.msk.f32.vlgmr.msra.gmra.mrb[8].mxu0 %vm476_vm2, %v6387_v23 }
 0x489   :  { %5405 = vmatprep.mubr.msk.f32.mxu0 %vm6198_vm5, %v6896_v0  ;;  %5850 = vmatpush3.bf16.msra.mxu0 %v5849_v63 }
 0x48a   :  { %5415 = vmatprep.subr.mxu0 %v6896_v0 }
 0x55b   :  { %v5377_v15 = vpop.f32.mrb[8].mxu0 }
 0x55c   :  { %v6045_v17 = vadd.f32 %v5377_v15, %v6443_v12  ;;  %v1214_v19 = vpop.f32.mrb[9].mxu0 }
 0x55d   :  { %v6046_v20 = vadd.f32 %v6443_v12, %v1214_v19 }
 0x55e   :  { %v1226_v21 = vmul.f32 %v6045_v17, %v6308_v30 }
 0x55f   :  { %v1225_v22 = vmul.f32 %v6046_v20, %v6303_v25 }
 0x560   :  { %v1228_v33 = vmax.f32 %v1226_v21, 0.0 }
 0x561   :  { %v1227_v31 = vmax.f32 %v1225_v22, 0.0 }
 0x563   :  { %5380 = vmatprep.mubr.msk.f32.mxu1 %vm1229_vm4, %v1227_v31 }
 0x564   :  { %5381 = vmatmul.mubr.msk.f32.vlgmr.msra.gmra.mrb[6].mxu1 %vm1229_vm4, %v1228_v33  ;;  %v2533_v33 = vsel %vm118_vm0, %v6495_v28, 0.0 }
 0x565   :  { %5840 = vmatpush3.bf16.msra.mxu1 %v6437_v9  ;;  %5391 = vmatprep.mubr.msk.f32.mxu1 %vm476_vm2, %v6391_v27 }
 0x566   :  { %5842 = vmatprep.subr.bf16.mxu1 %v6449_v34 }
 0x569   :  { %5844 = vmatpush3.bf16.msra.mxu1 %v6449_v34 }
 0x56a   :  { %5845 = vmatprep.subr.bf16.mxu1 %v6898_v11 }
 0x56c   :  { %5392 = vmatmul.mubr.msk.f32.vlgmr.msra.gmra.mrb[6].mxu1 %vm476_vm2, %v6387_v23 }
 0x56d   :  { %5847 = vmatpush3.bf16.msra.mxu1 %v5846_v58  ;;  %5398 = vmatprep.mubr.msk.f32.mxu1 %vm6198_vm5, %v6896_v0 }
 0x56e   :  { %5851 = vmatprep.subr.bf16.mxu1 %v6898_v11 }
 0x63f   :  { %v5393_v37 = vpop.f32.mrb[6].mxu1 }
 0x640   :  { %v1395_v41 = vadd.f32 %v5393_v37, %v6462_v36  ;;  %v1381_v43 = vpop.f32.mrb[7].mxu1  ;;  %v6506_v37 = vld [vmem:[%s6892_s1 + $0x18] sm:$0xff] }
 0x641   :  { %v1394_v27 = vadd.f32 %v6462_v36, %v1381_v43  ;;  %v4968_v43 = vld [vmem:[%s6893_s2 + $0x10] sm:$0xff] }
 0x642   :  { %v1399_v44 = vsel %vm1229_vm4, %v1395_v41, -inf }
 0x643   :  { %1400 = vmax.xlane.f32.xlu1 %v1399_v44  ;;  %v1396_v45 = vsel %vm1229_vm4, %v1394_v27, -inf  ;;  %v72_v44 = vld [vmem:[#allocation2 + $0x140] sm:$0xff] }
 0x644   :  { %1397 = vmax.xlane.f32.xlu0 %v1396_v45 }
 0x6d0   :  { %v1401_v46 = vpop.xlane.xlu1 %1400 }
 0x6d1   :  { %v1403_v47 = vsub.f32 %v1395_v41, %v1401_v46  ;;  %v1398_v23 = vpop.xlane.xlu0 %1397  ;;  %v2536_v41 = vsel %vm118_vm0, %v6506_v37, 0.0  ;;  %v73_v46 = vld [vmem:[#allocation2 + $0x148] sm:$0xff] }
 0x6d2   :  { %v1402_v48 = vsub.f32 %v1394_v27, %v1398_v23  ;;  %v71_v27 = vld [vmem:[#allocation2 + $0x138] sm:$0xff] }
 0x6d3   :  { %v1406_v52 = vmul.f32 1.442695, %v1403_v47  ;;  %v6513_v45 = vpack.c.bf16 %v72_v44, %v71_v27  ;;  %v74_v47 = vld [vmem:[#allocation2 + $0x150] sm:$0xff] }
 0x6d4   :  { %v1404_v53 = vmul.f32 1.442695, %v1402_v48  ;;  %v6517_v23 = vpack.c.bf16 %v74_v47, %v73_v46 }
 0x6d6   :  { %6113 = vpow2.f32 %v1404_v53  ;;  %v76_v53 = vld [vmem:[#allocation2 + $0x160] sm:$0xff] }
 0x6d7   :  { %6115 = vpow2.f32 %v1406_v52 }
 0x6e0   :  { %v6114_v55 = vpop.eup %6113 }
 0x6e1   :  { %v1408_v58 = vsel %vm1229_vm4, %v6114_v55, 0.0  ;;  %v6116_v59 = vpop.eup %6115 }
 0x6e2   :  { %1409 = vadd.xlane.f32.xlu0 %v1408_v58  ;;  %v1411_v62 = vsel %vm1229_vm4, %v6116_v59, 0.0 }
 0x6e6   :  { %1412 = vadd.xlane.f32.xlu0 %v1411_v62 }
 0x76f   :  { %v1410_v1 = vpop.xlane.xlu0 %1409 }
 0x770   :  { %6117 = vrcp.f32 %v1410_v1 }
 0x773   :  { %v1413_v3 = vpop.xlane.xlu0 %1412 }
 0x774   :  { %6119 = vrcp.f32 %v1413_v3  ;;  %v78_v3 = vld [vmem:[#allocation2 + $0x170] sm:$0xff] }
 0x77a   :  { %v6118_v16 = vpop.eup %6117 }
 0x77b   :  { %v1416_v6 = vmul.f32 %v6118_v16, %v6114_v55  ;;  %v77_v55 = vld [vmem:[#allocation2 + $0x168] sm:$0xff]  ;;  %v79_v16 = vld [vmem:[#allocation2 + $0x178] sm:$0xff] }
 0x77c   :  { %v6521_v62 = vpack.c.bf16 %v77_v55, %v76_v53  ;;  %v89_v55 = vld [vmem:[#allocation2 + $0x1c8] sm:$0xff] }
 0x77d   :  { %v1420_v15 = vmul.f32 %v1416_v6, %v6303_v25  ;;  %v6525_v6 = vpack.c.bf16 %v79_v16, %v78_v3  ;;  %v95_v16 = vld [vmem:[#allocation2 + $0x1f8] sm:$0xff] }
 0x77e   :  { %v6120_v2 = vpop.eup %6119 }
 0x77f   :  { %1422 = vxpose.xlu0.b32.start [1/2] (short) (narrow) %v1420_v15, 8  ;;  %v1417_v5 = vmul.f32 %v6120_v2, %v6116_v59 }
 0x781   :  { %v1421_v17 = vmul.f32 %v1417_v5, %v6308_v30  ;;  %v80_v5 = vld [vmem:[#allocation2 + $0x180] sm:$0xff] }
 0x783   :  { %v5852_v19 = vpack.c.bf16 %v1421_v17, %v1420_v15  ;;  %1423 = vxpose.xlu0.b32.end [2/2] (short) (narrow) %v1421_v17, 8  ;;  %v6535_v15 = vld [vmem:[#allocation2 + $0x158] ss:$0 sm:$0xff]  ;;  %v81_v17 = vld [vmem:[#allocation2 + $0x188] sm:$0xff] }
 0x7ac   :  { %6108 = vset.pattern.permute.xlu0 %v6196_v10 }
 0x7ff   :  { %v1438_v20 = vpop.trf.xlu0 }
 0x800   :  { %5399 = vmatmul.mubr.msk.f32.vlgmr.msra.gmra.mrb[8].mxu1 %vm118_vm0, %v1438_v20  ;;  %5406 = vmatmul.mubr.msk.f32.vlgmr.msra.gmra.mrb[10].mxu0 %vm118_vm0, %v1438_v20 }
 0x801   :  { %5853 = vmatpush3.bf16.msra.mxu1 %v5852_v19  ;;  %5412 = vmatprep.mubr.msk.f32.mxu1 %vm6198_vm5, %v6896_v0 }
 0x802   :  { %5417 = vmatprep.mubr.msk.f32.mxu0 %vm6198_vm5, %v6896_v0  ;;  %5854 = vmatprep.subr.bf16.mxu1 %v6898_v11 }
 0x8d3   :  { %v1523_v25 = vpop.f32.mrb[8].mxu1  ;;  %v1593_v30 = vpop.f32.mrb[10].mxu0 }
 0x8d4   :  { %v5400_v21 = vpop.f32.mrb[9].mxu1  ;;  %v5407_v22 = vpop.f32.mrb[11].mxu0  ;;  %5413 = vmatmul.mubr.msk.f32.vlgmr.msra.gmra.mrb[10].mxu1 %vm118_vm0, %v1593_v30  ;;  %5416 = vmatpush3.msk.msra.mxu0 %vm1236_vm3, %v1523_v25 }
 0x8d5   :  { %5428 = vmatprep.mubr.msk.f32.mxu1 %vm6198_vm5, %v6896_v0  ;;  %5442 = vmatprep.subr.mxu0 %v6896_v0  ;;  %v6538_v21 = vpack.c.bf16 %v81_v17, %v80_v5  ;;  %v82_v22 = vld [vmem:[#allocation2 + $0x190] sm:$0xff]  ;;  %v812_v17 = vrot.slane %v6418_v56, 4 }
 0x8d6   :  { %5856 = vmatpush3.bf16.msra.mxu1 %v6513_v45 }
 0x8d7   :  { %5857 = vmatprep.subr.bf16.mxu1 %v6898_v11 }
 0x8da   :  { %5859 = vmatpush3.bf16.msra.mxu1 %v6517_v23 }
 0x8db   :  { %5860 = vmatprep.subr.bf16.mxu1 %v6898_v11 }
 0x9a7   :  { %v1666_v10 = vpop.f32.mrb[10].mxu1 }
 0x9a8   :  { %v5414_v29 = vpop.f32.mrb[11].mxu1  ;;  %5418 = vmatmul.mubr.msk.f32.vlgmr.msra.gmra.mrb[12].mxu0 %vm1229_vm4, %v1666_v10  ;;  %v1671_v31 = vsel %vm1670_vm6, %v1666_v10, 0.0 }
 0x9a9   :  { %1672 = vadd.xlane.f32.xlu1 %v1671_v31  ;;  %5444 = vmatprep.mubr.msk.f32.mxu0 %vm6198_vm5, %v6896_v0  ;;  %v83_v29 = vld [vmem:[#allocation2 + $0x198] sm:$0xff]  ;;  %v93_v31 = vld [vmem:[#allocation2 + $0x1e8] sm:$0xff] }
 0x9ad   :  { %2534 = vadd.xlane.f32.xlu1 %v2533_v33  ;;  %v94_v33 = vld [vmem:[#allocation2 + $0x1f0] sm:$0xff] }
 0x9b1   :  { %2537 = vadd.xlane.f32.xlu1 %v2536_v41  ;;  %v6551_v41 = vpack.c.bf16 %v94_v33, %v93_v31  ;;  %v99_v31 = vld [vmem:[#allocation2 + $0x218] sm:$0xff] }
 0x9c2   :  { %2792 = vperm.xlu1 %6107, %v4968_v43   ;;  %v86_v43 = vld [vmem:[#allocation2 + $0x1b0] sm:$0xff] }
 0xa36   :  { %v1673_v48 = vpop.xlane.xlu1 %1672 }
 0xa37   :  { %v1674_v52 = vmax.f32 %v1673_v48, 1.0  ;;  %v87_v48 = vld [vmem:[#allocation2 + $0x1b8] sm:$0xff] }
 0xa39   :  { %6121 = vrcp.f32 %v1674_v52  ;;  %v88_v52 = vld [vmem:[#allocation2 + $0x1c0] sm:$0xff] }
 0xa3a   :  { %v6559_v53 = vpack.c.bf16 %v88_v52, %v87_v48  ;;  %v100_v48 = vld [vmem:[#allocation2 + $0x220] sm:$0xff]  ;;  %v101_v52 = vld [vmem:[#allocation2 + $0x228] sm:$0xff] }
 0xa43   :  { %v6122_v58 = vpop.eup %6121 }
 0xa7b   :  { %v1748_v59 = vpop.f32.mrb[12].mxu0 }
 0xa7c   :  { %v1752_v63 = vmul.f32 %v6122_v58, %v1748_v59  ;;  %v5419_v1 = vpop.f32.mrb[13].mxu0  ;;  %v90_v59 = vld [vmem:[#allocation2 + $0x1d0] sm:$0xff] }
 0xa7d   :  { %v92_v1 = vld [vmem:[#allocation2 + $0x1e0] sm:$0xff] }
 0xa7e   :  { %5429 = vmatmul.mubr.msk.f32.vlgmr.msra.gmra.mrb[12].mxu1 %vm476_vm2, %v1752_v63  ;;  %v6565_v63 = vpack.c.bf16 %v90_v59, %v89_v55 }
 0xa7f   :  { %5862 = vmatpush3.bf16.msra.mxu1 %v6521_v62  ;;  %5439 = vmatprep.mubr.msk.f32.mxu1 %vm6198_vm5, %v6896_v0 }
 0xa80   :  { %5863 = vmatprep.subr.bf16.mxu1 %v6898_v11 }
 0xa83   :  { %5865 = vmatpush3.bf16.msra.mxu1 %v6525_v6 }
 0xa84   :  { %5878 = vmatprep.subr.bf16.mxu1 %v6898_v11 }
 0xa86   :  { %5440 = vmatmul.mubr.msk.f32.vlgmr.msra.gmra.mrb[12].mxu1 %vm476_vm2, %v1523_v25  ;;  %v6544_v25 = vpack.c.bf16 %v83_v29, %v82_v22  ;;  %v6586_v22 = vld [vmem:[#allocation2 + $0x1a0] ss:$0 sm:$0xff] }
 0xa87   :  { %5477 = vmatprep.mubr.msk.f32.mxu1 %vm6198_vm5, %v6896_v0  ;;  %5880 = vmatpush3.bf16.msra.mxu1 %v6551_v41 }
 0xa88   :  { %5881 = vmatprep.subr.bf16.mxu1 %v6898_v11 }
 0xb59   :  { %v1898_v2 = vpop.f32.mrb[12].mxu1 }
 0xb5a   :  { %v6047_v19 = vadd.f32 %v6535_v15, %v1898_v2  ;;  %v5441_v20 = vpop.f32.mrb[13].mxu1  ;;  %v96_v2 = vld [vmem:[#allocation2 + $0x200] sm:$0xff] }
 0xb5b   :  { %v6580_v5 = vpack.c.bf16 %v96_v2, %v95_v16  ;;  %v102_v16 = vld [vmem:[#allocation2 + $0x230] sm:$0xff]  ;;  %v103_v2 = vld [vmem:[#allocation2 + $0x238] sm:$0xff] }
 0xb5c   :  { %v1903_v30 = vmax.f32 %v6047_v19, 0.0  ;;  %v813_v19 = vadd.f32 %v812_v17, %v6418_v56  ;;  %v6593_v56 = vpack.c.bf16 %v101_v52, %v100_v48  ;;  %v6603_v17 = vpack.c.bf16 %v103_v2, %v102_v16 }
 0xb5d   :  { %5883 = vmatpush3.bf16.msra.mxu1 %v6580_v5 }
 0xb5e   :  { %5443 = vmatpush3.msk.msra.mxu0 %vm1236_vm3, %v1903_v30  ;;  %5890 = vmatprep.subr.bf16.mxu1 %v6898_v11  ;;  %v814_v20 = vrot.slane %v813_v19, 2 }
 0xb5f   :  { %5445 = vmatmul.mubr.msk.f32.vlgmr.msra.gmra.mrb[14].mxu0 %vm1229_vm4, %v1666_v10  ;;  %5866 = vmatprep.subr.bf16.mxu0 %v6898_v11  ;;  %v85_v10 = vld [vmem:[#allocation2 + $0x1a8] sm:$0xff] }
 0xb60   :  { %5868 = vmatpush3.bf16.msra.mxu0 %v6538_v21  ;;  %5455 = vmatprep.mubr.msk.f32.mxu0 %vm6198_vm5, %v6896_v0  ;;  %v6555_v44 = vpack.c.bf16 %v86_v43, %v85_v10  ;;  %v815_v29 = vadd.f32 %v814_v20, %v813_v19  ;;  %v104_v19 = vld [vmem:[#allocation2 + $0x240] sm:$0xff]  ;;  %v105_v20 = vld [vmem:[#allocation2 + $0x248] sm:$0xff] }
 0xb61   :  { %5869 = vmatprep.subr.bf16.mxu0 %v6898_v11 }
 0xb64   :  { %5871 = vmatpush3.bf16.msra.mxu0 %v6544_v25 }
 0xb65   :  { %5872 = vmatprep.subr.bf16.mxu0 %v6898_v11 }
 0xc32   :  { %v1973_v27 = vpop.f32.mrb[14].mxu0 }
 0xc33   :  { %v1977_v46 = vmul.f32 %v6122_v58, %v1973_v27  ;;  %v5446_v47 = vpop.f32.mrb[15].mxu0  ;;  %v91_v58 = vld [vmem:[#allocation2 + $0x1d8] sm:$0xff] }
 0xc34   :  { %v6570_v3 = vpack.c.bf16 %v92_v1, %v91_v58 }
 0xc35   :  { %5456 = vmatmul.mubr.msk.f32.vlgmr.msra.gmra.mrb[16].mxu0 %vm476_vm2, %v1977_v46  ;;  %v816_v46 = vrot.slane %v815_v29, 1 }
 0xc36   :  { %5874 = vmatpush3.bf16.msra.mxu0 %v6555_v44  ;;  %5466 = vmatprep.mubr.msk.f32.mxu0 %vm6198_vm5, %v6896_v0 }
 0xc37   :  { %5875 = vmatprep.subr.bf16.mxu0 %v6898_v11  ;;  %v817_v55 = vadd.f32 %v816_v46, %v815_v29  ;;  %v6607_v29 = vpack.c.bf16 %v105_v20, %v104_v19 }
 0xc39   :  { %v819_v1 = vmul.f32 0.0625, %v817_v55 }
 0xc3a   :  { %5877 = vmatpush3.bf16.msra.mxu0 %v6559_v53 }
 0xc3b   :  { %5884 = vmatprep.subr.bf16.mxu0 %v6898_v11 }
 0xc3d   :  { %5467 = vmatmul.mubr.msk.f32.vlgmr.msra.gmra.mrb[16].mxu0 %vm476_vm2, %v1903_v30 }
 0xc3e   :  { %5886 = vmatpush3.bf16.msra.mxu0 %v6565_v63  ;;  %5488 = vmatprep.mubr.msk.f32.mxu0 %vm6198_vm5, %v6896_v0 }
 0xc3f   :  { %5887 = vmatprep.subr.bf16.mxu0 %v6898_v11 }
 0xc42   :  { %5889 = vmatpush3.bf16.msra.mxu0 %v6570_v3 }
 0xc43   :  { %5902 = vmatprep.subr.bf16.mxu0 %v6898_v11 }
 0xc45   :  { %5489 = vmatmul.mubr.msk.f32.vlgmr.msra.gmra.mrb[18].mxu0 %vm476_vm2, %v1903_v30  ;;  %v98_v30 = vld [vmem:[#allocation2 + $0x210] sm:$0xff] }
 0xc46   :  { %5521 = vmatprep.mubr.msk.f32.mxu0 %vm6198_vm5, %v6896_v0  ;;  %v6589_v27 = vpack.c.bf16 %v99_v31, %v98_v30  ;;  %v107_v30 = vld [vmem:[#allocation2 + $0x258] sm:$0xff]  ;;  %v108_v31 = vld [vmem:[#allocation2 + $0x260] sm:$0xff] }
 0xd10   :  { %v2123_v33 = vpop.f32.mrb[16].mxu0 }
 0xd11   :  { %v6048_v10 = vadd.f32 %v6586_v22, %v2123_v33  ;;  %v5468_v43 = vpop.f32.mrb[17].mxu0  ;;  %v6611_v33 = vpack.c.bf16 %v108_v31, %v107_v30  ;;  %v110_v31 = vld [vmem:[#allocation2 + $0x270] sm:$0xff] }
 0xd13   :  { %v2128_v47 = vmax.f32 %v6048_v10, 0.0  ;;  %5904 = vmatpush3.bf16.msra.mxu0 %v6611_v33  ;;  %v6615_v10 = vld [vmem:[#allocation2 + $0x208] ss:$0 sm:$0xff] }
 0xd14   :  { %5905 = vmatprep.subr.bf16.mxu0 %v6898_v11 }
 0xd15   :  { %5478 = vmatmul.mubr.msk.f32.vlgmr.msra.gmra.mrb[14].mxu1 %vm476_vm2, %v2128_v47 }
 0xd16   :  { %5892 = vmatpush3.bf16.msra.mxu1 %v6589_v27  ;;  %5499 = vmatprep.mubr.msk.f32.mxu1 %vm6198_vm5, %v6896_v0 }
 0xd17   :  { %5893 = vmatprep.subr.bf16.mxu1 %v6898_v11 }
 0xd18   :  { %v2268_v59 = vpop.f32.mrb[18].mxu0 }
 0xd19   :  { %v5490_v58 = vpop.f32.mrb[19].mxu0 }
 0xd1a   :  { %5895 = vmatpush3.bf16.msra.mxu1 %v6593_v56 }
 0xd1b   :  { %5896 = vmatprep.subr.bf16.mxu1 %v6898_v11 }
 0xd1d   :  { %5500 = vmatmul.mubr.msk.f32.vlgmr.msra.gmra.mrb[16].mxu1 %vm476_vm2, %v819_v1 }
 0xd1e   :  { %5510 = vmatprep.mubr.msk.f32.mxu1 %vm6198_vm5, %v6896_v0  ;;  %5898 = vmatpush3.bf16.msra.mxu1 %v6603_v17 }
 0xd1f   :  { %5899 = vmatprep.subr.bf16.mxu1 %v6898_v11 }
 0xd22   :  { %5901 = vmatpush3.bf16.msra.mxu1 %v6607_v29 }
 0xd23   :  { %5531 = vmatprep.subr.mxu1 %v6272_v7 }
 0xde8   :  { %v2198_v43 = vpop.f32.mrb[14].mxu1 }
 0xde9   :  { %v2269_v46 = vadd.f32 %v2268_v59, %v2198_v43  ;;  %v5479_v47 = vpop.f32.mrb[15].mxu1  ;;  %v109_v59 = vld [vmem:[#allocation2 + $0x268] sm:$0xff] }
 0xdea   :  { %v6622_v43 = vpack.c.bf16 %v110_v31, %v109_v59  ;;  %v6633_v47 = vld [vmem:[%s6891_s0 + $0x18] sm:$0xff] }
 0xdeb   :  { %v2276_v48 = vadd.f32 %v6615_v10, %v2269_v46  ;;  %v6628_v46 = vld [vmem:[%s6891_s0 + $0x10] sm:$0xff] }
 0xdec   :  { %5907 = vmatpush3.bf16.msra.mxu0 %v6622_v43 }
 0xded   :  { %v2277_v52 = vmax.f32 %v2276_v48, 0.0  ;;  %v6637_v48 = vld [vmem:[#allocation2 + $0x250] sm:$0x1] }
 0xdef   :  { %v2279_v55 = vsel %vm2278_vm7, %v2277_v52, 0.0 }
 0xdf0   :  { %v2280_v58 = vrot.slane %v2279_v55, 4 }
 0xdf2   :  { %v2281_v1 = vadd.f32 %v2280_v58, %v2279_v55 }
 0xdf4   :  { %v2282_v16 = vrot.slane %v2281_v1, 2 }
 0xdf6   :  { %v2283_v2 = vadd.f32 %v2282_v16, %v2281_v1  ;;  %v4969_v16 = vld [vmem:[%s6893_s2 + $0x18] sm:$0xff]  ;;  %s6200_s2 = smov [#allocation5]  }
 0xdf7   :  { %2797 = vperm.xlu0 %6108, %v4969_v16   ;;  %s4896_s24 = sshll.u32 %s6200_s2, 4  ;;  %s4897_s24 = int_to_ptr.vmem [resolvable:$true] %s4896_s24 }
 0xdf8   :  { %v2284_v19 = vrot.slane %v2283_v2, 1  ;;  %s6167_s25 = scalar_lea.vmem %s4897_s24, 32  ;;  %p6172_p9 = scmp.lt.s32.totalorder %s4897_s24, %s4897_s24 }
 0xdf9   :  { %p6168_p8 = scmp.ne.s32.totalorder %s4897_s24, %s6167_s25  ;;  %p6173_p10 = scmp.lt.s32.totalorder %s6167_s25, %s6167_s25 }
 0xdfa   :  { %v2285_v20 = vadd.f32 %v2284_v19, %v2283_v2  ;;  %v2535_v2 = vpop.xlane.xlu1 %2534 }
 0xdfb   :  { %p6174_p11 = por %p6173_p10, %p6172_p9 }
 0xdfc   :  { %v2287_v30 = vmul.f32 0.25, %v2285_v20 }
 0xdfd   :  { %p6175_p12 = pnand %p6174_p11, %p6168_p8 }
 0xdfe   :  { %5511 = vmatmul.mubr.msk.f32.vlgmr.msra.gmra.mrb[16].mxu1 %vm476_vm2, %v2287_v30  ;;  %v2538_v19 = vpop.xlane.xlu1 %2537  ;;  %v2539_v30 = vmax.f32 %v2535_v2, 1.0 }
 0xdff   :  { %5532 = vmatpush3.msra.mxu1 %v6272_v7  ;;  %v5908_v7 = vpack.c.bf16 %v6633_v47, %v6628_v46  ;;  %v2540_v20 = vmax.f32 %v2538_v19, 1.0 }
 0xe00   :  { %5536 = vmatprep.subr.mxu1 %v6276_v8 }
 0xe01   :  { %5909 = vmatprep.subr.bf16.mxu0 %v5908_v7  ;;  %6123 = vrcp.f32 %v2540_v20 }
 0xe02   :  { %6125 = vrcp.f32 %v2539_v30  ;;  %v6674_v30 = vpop.permute.xlu1 %2792 }
 0xe76   :  { %v6670_v2 = vpop.permute.xlu0 %2797 }
 0xed1   :  { %v2431_v52 = vpop.f32.mrb[16].mxu1 }
 0xed2   :  { %v6049_v55 = vadd.f32 %v2431_v52, %v6637_v48  ;;  %v5512_v58 = vpop.f32.mrb[17].mxu1 }
 0xed4   :  { %v2436_v1 = vmax.f32 %v6049_v55, 0.0 }
 0xed6   :  { %5522 = vmatmul.mubr.msk.f32.vlgmr.msra.gmra.mrb[20].mxu0 %vm476_vm2, %v2436_v1 }
 0xed7   :  { %5911 = vmatpush3.bf16.msra.mxu0 %v5908_v7  ;;  %5528 = vmatprep.mubr.msk.f32.mxu0 %vm118_vm0, %v6495_v28  ;;  %v6652_v7 = vpop.eup %6123 }
 0xed8   :  { %v6654_v55 = vpop.eup %6125 }
 0xeda   :  { %5529 = vmatmul.mubr.msk.f32.vlgmr.msra.gmra.mrb[22].mxu0 %vm118_vm0, %v6506_v37 }
 0xedb   :  { %5545 = vmatprep.mubr.msk.f32.mxu0 %vm118_vm0, %v6495_v28 }
 0xfa9   :  { %v6650_v59 = vpop.f32.mrb[20].mxu0 }
 0xfaa   :  { %v5523_v31 = vpop.f32.mrb[21].mxu0 }
 0xfad   :  { %v5530_v52 = vpop.f32.mrb[22].mxu0 }
 0xfae   :  { %v2615_v58 = vpop.f32.mrb[23].mxu0  ;;  %v2625_v0 = vmul.f32 %v6652_v7, %v5530_v52 }
 0xfaf   :  { %v2624_v1 = vmul.f32 %v6654_v55, %v2615_v58 }
 0xfb1   :  { %5533 = vmatprep.mubr.msk.f32.mxu1 %vm216_vm1, %v2624_v1 }
 0xfb2   :  { %5534 = vmatmul.mubr.msk.f32.vlgmr.msra.gmra.mrb[18].mxu1 %vm216_vm1, %v2625_v0 }
 0xfb3   :  { %5537 = vmatpush3.msra.mxu1 %v6276_v8  ;;  %5538 = vmatprep.mubr.msk.f32.mxu1 %vm216_vm1, %v6628_v46 }
 0xfb4   :  { %5933 = vmatprep.subr.bf16.mxu1 %v6355_v54 }
 0xfba   :  { %5539 = vmatmul.mubr.msk.f32.vlgmr.msra.gmra.mrb[18].mxu1 %vm216_vm1, %v6633_v47 }
 0xfbb   :  { %5935 = vmatpush3.bf16.msra.mxu1 %v6355_v54 }
 0xfbc   :  { %5937 = vmatprep.subr.bf16.mxu1 %v6359_v57 }
 0xfbf   :  { %5939 = vmatpush3.bf16.msra.mxu1 %v6359_v57 }
 0xfc0   :  { %5941 = vmatprep.subr.bf16.mxu1 %v6363_v60 }
0x108d   :  { %v5540_v16 = vpop.f32.mrb[18].mxu1 }
0x108e   :  { %v6050_v8 = vadd.f32 %v5540_v16, %v6305_v26  ;;  %v2779_v19 = vpop.f32.mrb[19].mxu1 }
0x108f   :  { %v6051_v20 = vadd.f32 %v6305_v26, %v2779_v19 }
0x1090   :  { %v2801_v31 = vmul.f32 %v6050_v8, %v6670_v2 }
0x1091   :  { %v2800_v54 = vmul.f32 %v6051_v20, %v6674_v30 }
0x1092   :  { %v2803_v52 = vmax.f32 %v2801_v31, 0.0 }
0x1093   :  { %v2802_v58 = vmax.f32 %v2800_v54, 0.0 }
0x1095   :  { %v5912_v11 = vpack.c.bf16 %v2803_v52, %v2802_v58 }
0x1097   :  { %5913 = vmatprep.subr.bf16.mxu0 %v5912_v11 }
0x1098   :  { %5915 = vmatpush3.bf16.msra.mxu0 %v5912_v11 }
0x1099   :  { %5917 = vmatprep.subr.bf16.mxu0 %v6299_v24 }
0x109b   :  { %5546 = vmatmul.mubr.msk.f32.vlgmr.msra.gmra.mrb[24].mxu0 %vm118_vm0, %v6506_v37 }
0x109c   :  { %5919 = vmatpush3.bf16.msra.mxu0 %v6299_v24 }
0x109d   :  { %5921 = vmatprep.subr.bf16.mxu0 %v6321_v39 }
0x10a0   :  { %5923 = vmatpush3.bf16.msra.mxu0 %v6321_v39 }
0x10a1   :  { %5925 = vmatprep.subr.bf16.mxu0 %v6325_v42 }
0x116e   :  { %v5547_v26 = vpop.f32.mrb[24].mxu0 }
0x116f   :  { %v2870_v57 = vpop.f32.mrb[25].mxu0  ;;  %v2880_v8 = vmul.f32 %v6652_v7, %v5547_v26 }
0x1170   :  { %v2879_v16 = vmul.f32 %v6654_v55, %v2870_v57 }
0x1172   :  { %5556 = vmatprep.mubr.msk.f32.mxu0 %vm476_vm2, %v2879_v16 }
0x1173   :  { %5557 = vmatmul.mubr.msk.f32.vlgmr.msra.gmra.mrb[26].mxu0 %vm476_vm2, %v2880_v8 }
0x1174   :  { %5927 = vmatpush3.bf16.msra.mxu0 %v6325_v42  ;;  %5567 = vmatprep.mubr.msk.f32.mxu0 %vm476_vm2, %v2802_v58 }
0x1175   :  { %5929 = vmatprep.subr.bf16.mxu0 %v6330_v49 }
0x1178   :  { %5931 = vmatpush3.bf16.msra.mxu0 %v6330_v49 }
0x1179   :  { %5592 = vmatprep.subr.mxu0 %v6338_v50 }
0x117b   :  { %5568 = vmatmul.mubr.msk.f32.vlgmr.msra.gmra.mrb[26].mxu0 %vm476_vm2, %v2803_v52 }
0x117c   :  { %5594 = vmatprep.mubr.msk.f32.mxu0 %vm216_vm1, %v2624_v1  ;;  %5593 = vmatpush3.msra.mxu0 %v6338_v50 }
0x117d   :  { %5597 = vmatprep.subr.mxu0 %v6342_v51 }
0x117f   :  { %5595 = vmatmul.mubr.msk.f32.vlgmr.msra.gmra.mrb[28].mxu0 %vm216_vm1, %v2625_v0 }
0x1180   :  { %5598 = vmatpush3.msra.mxu0 %v6342_v51  ;;  %5599 = vmatprep.mubr.msk.f32.mxu0 %vm216_vm1, %v6628_v46 }
0x1181   :  { %5631 = vmatprep.subr.msk.mxu0 %vm1236_vm3, %v6433_v18 }
0x1187   :  { %5600 = vmatmul.mubr.msk.f32.vlgmr.msra.gmra.mrb[28].mxu0 %vm216_vm1, %v6633_v47 }
0x1188   :  { %5632 = vmatpush3.msk.msra.mxu0 %vm1236_vm3, %v6433_v18 }
0x1189   :  { %5969 = vmatprep.subr.bf16.mxu0 %v6437_v9 }
0x124e   :  { %v5569_v24 = vpop.f32.mrb[26].mxu0 }
0x124f   :  { %v6052_v39 = vadd.f32 %v5569_v24, %v6366_v61  ;;  %v3034_v42 = vpop.f32.mrb[27].mxu0 }
0x1250   :  { %v6053_v49 = vadd.f32 %v6366_v61, %v3034_v42 }
0x1251   :  { %v3046_v50 = vmul.f32 %v6052_v39, %v6670_v2 }
0x1252   :  { %v3045_v51 = vmul.f32 %v6053_v49, %v6674_v30 }
0x1253   :  { %v3048_v0 = vmax.f32 %v3046_v50, 0.0 }
0x1254   :  { %v3047_v11 = vmax.f32 %v3045_v51, 0.0  ;;  %v6901_v51 = vmov 0.0  }
0x1256   :  { %5578 = vmatprep.mubr.msk.f32.mxu1 %vm476_vm2, %v3047_v11 }
0x1257   :  { %5579 = vmatmul.mubr.msk.f32.vlgmr.msra.gmra.mrb[20].mxu1 %vm476_vm2, %v3048_v0 }
0x1258   :  { %5943 = vmatpush3.bf16.msra.mxu1 %v6363_v60  ;;  %5589 = vmatprep.mubr.msk.f32.mxu1 %vm476_vm2, %v2802_v58 }
0x1259   :  { %5945 = vmatprep.subr.bf16.mxu1 %v6372_v13 }
0x125a   :  { %v5601_v18 = vpop.f32.mrb[28].mxu0 }
0x125b   :  { %v6054_v46 = vadd.f32 %v5601_v18, %v6379_v14  ;;  %v3360_v61 = vpop.f32.mrb[29].mxu0 }
0x125c   :  { %v6055_v47 = vadd.f32 %v6379_v14, %v3360_v61  ;;  %5947 = vmatpush3.bf16.msra.mxu1 %v6372_v13 }
0x125d   :  { %v3372_v1 = vmul.f32 %v6054_v46, %v6670_v2 }
0x125e   :  { %v3371_v19 = vmul.f32 %v6055_v47, %v6674_v30 }
0x125f   :  { %v3374_v20 = vmax.f32 %v3372_v1, 0.0  ;;  %5590 = vmatmul.mubr.msk.f32.vlgmr.msra.gmra.mrb[20].mxu1 %vm476_vm2, %v2803_v52 }
0x1260   :  { %v3373_v60 = vmax.f32 %v3371_v19, 0.0  ;;  %5606 = vmatprep.mubr.msk.f32.mxu1 %vm118_vm0, %v6495_v28 }
0x1262   :  { %v5948_v31 = vpack.c.bf16 %v3374_v20, %v3373_v60 }
0x1264   :  { %5949 = vmatprep.subr.bf16.mxu1 %v5948_v31 }
0x1265   :  { %5951 = vmatpush3.bf16.msra.mxu1 %v5948_v31 }
0x1266   :  { %5953 = vmatprep.subr.bf16.mxu1 %v6399_v32 }
0x1268   :  { %5607 = vmatmul.mubr.msk.f32.vlgmr.msra.gmra.mrb[22].mxu1 %vm118_vm0, %v6506_v37 }
0x1269   :  { %5955 = vmatpush3.bf16.msra.mxu1 %v6399_v32 }
0x126a   :  { %5957 = vmatprep.subr.bf16.mxu1 %v6403_v35 }
0x126d   :  { %5959 = vmatpush3.bf16.msra.mxu1 %v6403_v35 }
0x126e   :  { %5961 = vmatprep.subr.bf16.mxu1 %v6407_v38 }
0x1332   :  { %v5591_v13 = vpop.f32.mrb[20].mxu1 }
0x1333   :  { %v3206_v14 = vadd.f32 %v5591_v13, %v6410_v40  ;;  %v3196_v54 = vpop.f32.mrb[21].mxu1 }
0x1334   :  { %v3205_v52 = vadd.f32 %v6410_v40, %v3196_v54  ;;  %v6900_v40 = vmov 0.0|0.0  }
0x1335   :  { %v3208_v58 = vmax.f32 %v3206_v14, 0.0 }
0x1336   :  { %v3207_v26 = vmax.f32 %v3205_v52, 0.0 }
0x1337   :  { %v3210_v57 = vsel %vm476_vm2, %v3208_v58, 0.0  ;;  %v3801_v16 = vmul.f32 %v3208_v58, %v6670_v2 }
0x1338   :  { %v3209_v32 = vsel %vm476_vm2, %v3207_v26, 0.0  ;;  %v3800_v8 = vmul.f32 %v3207_v26, %v6674_v30  ;;  %v5980_v26 = vpack.c.bf16 %v6506_v37, %v6495_v28 }
0x1339   :  { %v6739_v24 = vadd.f32 %v3210_v57, %v3209_v32 }
0x133a   :  { %v5977_v35 = vpack.c.bf16 %v3801_v16, %v3800_v8 }
0x133b   :  { %v5608_v39 = vpop.f32.mrb[22].mxu1 }
0x133c   :  { %v3441_v42 = vpop.f32.mrb[23].mxu1  ;;  %v3451_v50 = vmul.f32 %v6652_v7, %v5608_v39 }
0x133d   :  { %v3450_v49 = vmul.f32 %v6654_v55, %v3441_v42 }
0x133f   :  { %5617 = vmatprep.mubr.msk.f32.mxu1 %vm476_vm2, %v3450_v49 }
0x1340   :  { %5618 = vmatmul.mubr.msk.f32.vlgmr.msra.gmra.mrb[24].mxu1 %vm476_vm2, %v3451_v50 }
0x1341   :  { %5963 = vmatpush3.bf16.msra.mxu1 %v6407_v38  ;;  %5628 = vmatprep.mubr.msk.f32.mxu1 %vm476_vm2, %v3373_v60 }
0x1342   :  { %5965 = vmatprep.subr.bf16.mxu1 %v6422_v4 }
0x1345   :  { %5967 = vmatpush3.bf16.msra.mxu1 %v6422_v4 }
0x1346   :  { %5979 = vmatprep.subr.bf16.mxu1 %v6900_v40 }
0x1348   :  { %5629 = vmatmul.mubr.msk.f32.vlgmr.msra.gmra.mrb[24].mxu1 %vm476_vm2, %v3374_v20 }
0x1349   :  { %5658 = vmatprep.mubr.msk.f32.mxu1 %vm6198_vm5, %v6901_v51  ;;  %5981 = vmatpush3.bf16.msra.mxu1 %v5980_v26 }
0x134a   :  { %5668 = vmatprep.subr.mxu1 %v6901_v51 }
0x141b   :  { %v5630_v7 = vpop.f32.mrb[24].mxu1 }
0x141c   :  { %v6056_v55 = vadd.f32 %v5630_v7, %v6443_v12  ;;  %v3605_v11 = vpop.f32.mrb[25].mxu1 }
0x141d   :  { %v6057_v0 = vadd.f32 %v6443_v12, %v3605_v11 }
0x141e   :  { %v3617_v38 = vmul.f32 %v6056_v55, %v6670_v2  ;;  %v6795_v55 = vld [vmem:[#allocation2 + $0x278] sm:$0x1] }
0x141f   :  { %v3616_v18 = vmul.f32 %v6057_v0, %v6674_v30  ;;  %v6799_v0 = vadd.f32 %v6650_v59, %v6795_v55 }
0x1420   :  { %v3619_v61 = vmax.f32 %v3617_v38, 0.0 }
0x1421   :  { %v3618_v46 = vmax.f32 %v3616_v18, 0.0 }
0x1423   :  { %5633 = vmatprep.mubr.msk.f32.mxu0 %vm1229_vm4, %v3618_v46 }
0x1424   :  { %5634 = vmatmul.mubr.msk.f32.vlgmr.msra.gmra.mrb[30].mxu0 %vm1229_vm4, %v3619_v61 }
0x1425   :  { %5971 = vmatpush3.bf16.msra.mxu0 %v6437_v9  ;;  %5644 = vmatprep.mubr.msk.f32.mxu0 %vm476_vm2, %v3373_v60 }
0x1426   :  { %5973 = vmatprep.subr.bf16.mxu0 %v6449_v34 }
0x1429   :  { %5975 = vmatpush3.bf16.msra.mxu0 %v6449_v34 }
0x142a   :  { %5976 = vmatprep.subr.bf16.mxu0 %v6900_v40 }
0x142c   :  { %5645 = vmatmul.mubr.msk.f32.vlgmr.msra.gmra.mrb[30].mxu0 %vm476_vm2, %v3374_v20 }
0x142d   :  { %5978 = vmatpush3.bf16.msra.mxu0 %v5977_v35  ;;  %5651 = vmatprep.mubr.msk.f32.mxu0 %vm6198_vm5, %v6901_v51 }
0x142e   :  { %5982 = vmatprep.subr.bf16.mxu0 %v6900_v40 }
0x14ff   :  { %v5646_v4 = vpop.f32.mrb[30].mxu0 }
0x1500   :  { %v3767_v12 = vpop.f32.mrb[31].mxu0  ;;  %v3777_v47 = vadd.f32 %v5646_v4, %v6462_v36 }
0x1501   :  { %v3776_v9 = vadd.f32 %v6462_v36, %v3767_v12 }
0x1502   :  { %v3781_v34 = vsel %vm1229_vm4, %v3777_v47, -inf }
0x1503   :  { %v3778_v1 = vsel %vm1229_vm4, %v3776_v9, -inf }
0x1504   :  { %3779 = vmax.xlane.f32.xlu1 %v3778_v1 }
0x1508   :  { %3782 = vmax.xlane.f32.xlu1 %v3781_v34 }
0x1591   :  { %v3780_v19 = vpop.xlane.xlu1 %3779 }
0x1592   :  { %v3784_v20 = vsub.f32 %v3776_v9, %v3780_v19 }
0x1594   :  { %v3786_v60 = vmul.f32 1.442695, %v3784_v20 }
0x1595   :  { %v3783_v31 = vpop.xlane.xlu1 %3782 }
0x1596   :  { %6127 = vpow2.f32 %v3786_v60  ;;  %v3785_v13 = vsub.f32 %v3777_v47, %v3783_v31 }
0x1598   :  { %v3788_v14 = vmul.f32 1.442695, %v3785_v13 }
0x159a   :  { %6129 = vpow2.f32 %v3788_v14 }
0x15a0   :  { %v6128_v54 = vpop.eup %6127 }
0x15a1   :  { %v3790_v52 = vsel %vm1229_vm4, %v6128_v54, 0.0 }
0x15a2   :  { %3791 = vadd.xlane.f32.xlu0 %v3790_v52 }
0x15a4   :  { %v6130_v58 = vpop.eup %6129 }
0x15a5   :  { %v3793_v36 = vsel %vm1229_vm4, %v6130_v58, 0.0 }
0x15a6   :  { %3794 = vadd.xlane.f32.xlu1 %v3793_v36 }
0x162f   :  { %v3792_v57 = vpop.xlane.xlu0 %3791 }
0x1630   :  { %6131 = vrcp.f32 %v3792_v57 }
0x1633   :  { %v3795_v16 = vpop.xlane.xlu1 %3794 }
0x1634   :  { %6133 = vrcp.f32 %v3795_v16 }
0x163a   :  { %v6132_v32 = vpop.eup %6131 }
0x163b   :  { %v3798_v8 = vmul.f32 %v6132_v32, %v6128_v54 }
0x163d   :  { %v3802_v35 = vmul.f32 %v3798_v8, %v6674_v30 }
0x163e   :  { %v6134_v39 = vpop.eup %6133 }
0x163f   :  { %3804 = vxpose.xlu1.b32.start [1/2] (short) (narrow) %v3802_v35, 8  ;;  %v3799_v42 = vmul.f32 %v6134_v39, %v6130_v58 }
0x1641   :  { %v3803_v49 = vmul.f32 %v3799_v42, %v6670_v2 }
0x1643   :  { %v5983_v50 = vpack.c.bf16 %v3803_v49, %v3802_v35  ;;  %3805 = vxpose.xlu1.b32.end [2/2] (short) (narrow) %v3803_v49, 8 }
0x16bf   :  { %v3820_v7 = vpop.trf.xlu1 }
0x16c0   :  { %5652 = vmatmul.mubr.msk.f32.vlgmr.msra.gmra.mrb[32].mxu0 %vm118_vm0, %v3820_v7  ;;  %5659 = vmatmul.mubr.msk.f32.vlgmr.msra.gmra.mrb[26].mxu1 %vm118_vm0, %v3820_v7 }
0x16c1   :  { %5984 = vmatpush3.bf16.msra.mxu0 %v5983_v50  ;;  %5665 = vmatprep.mubr.msk.f32.mxu0 %vm6198_vm5, %v6901_v51 }
0x16c2   :  { %5670 = vmatprep.mubr.msk.f32.mxu1 %vm6198_vm5, %v6901_v51  ;;  %5985 = vmatprep.subr.bf16.mxu0 %v6900_v40 }
0x1793   :  { %v3905_v28 = vpop.f32.mrb[32].mxu0  ;;  %v3975_v37 = vpop.f32.mrb[26].mxu1 }
0x1794   :  { %v5653_v30 = vpop.f32.mrb[33].mxu0  ;;  %v5660_v2 = vpop.f32.mrb[27].mxu1  ;;  %5666 = vmatmul.mubr.msk.f32.vlgmr.msra.gmra.mrb[34].mxu0 %vm118_vm0, %v3975_v37  ;;  %5669 = vmatpush3.msk.msra.mxu1 %vm1236_vm3, %v3905_v28 }
0x1795   :  { %5987 = vmatpush3.bf16.msra.mxu0 %v6513_v45  ;;  %5681 = vmatprep.mubr.msk.f32.mxu0 %vm6198_vm5, %v6901_v51 }
0x1796   :  { %5988 = vmatprep.subr.bf16.mxu0 %v6900_v40  ;;  %5695 = vmatprep.subr.mxu1 %v6901_v51 }
0x1799   :  { %5990 = vmatpush3.bf16.msra.mxu0 %v6517_v23  ;;  %v2511_v23 = vsel %vm2510_vm8, %v6799_v0, -inf }
0x179a   :  { %5991 = vmatprep.subr.bf16.mxu0 %v6900_v40 }
0x1867   :  { %v4048_v11 = vpop.f32.mrb[34].mxu0 }
0x1868   :  { %v5667_v38 = vpop.f32.mrb[35].mxu0  ;;  %5671 = vmatmul.mubr.msk.f32.vlgmr.msra.gmra.mrb[28].mxu1 %vm1229_vm4, %v4048_v11  ;;  %v4052_v45 = vsel %vm1670_vm6, %v4048_v11, 0.0 }
0x1869   :  { %4053 = vadd.xlane.f32.xlu0 %v4052_v45  ;;  %5697 = vmatprep.mubr.msk.f32.mxu1 %vm6198_vm5, %v6901_v51 }
0x186d   :  { %2512 = vmax.xlane.f32.xlu0 %v2511_v23 }
0x18f6   :  { %v4054_v18 = vpop.xlane.xlu0 %4053 }
0x18f7   :  { %v4055_v46 = vmax.f32 %v4054_v18, 1.0 }
0x18f9   :  { %6135 = vrcp.f32 %v4055_v46 }
0x1903   :  { %v6136_v61 = vpop.eup %6135 }
0x193b   :  { %v4129_v59 = vpop.f32.mrb[28].mxu1 }
0x193c   :  { %v4133_v4 = vmul.f32 %v6136_v61, %v4129_v59  ;;  %v5672_v12 = vpop.f32.mrb[29].mxu1 }
0x193e   :  { %5682 = vmatmul.mubr.msk.f32.vlgmr.msra.gmra.mrb[36].mxu0 %vm476_vm2, %v4133_v4 }
0x193f   :  { %5993 = vmatpush3.bf16.msra.mxu0 %v6521_v62  ;;  %5692 = vmatprep.mubr.msk.f32.mxu0 %vm6198_vm5, %v6901_v51 }
0x1940   :  { %5994 = vmatprep.subr.bf16.mxu0 %v6900_v40 }
0x1943   :  { %5996 = vmatpush3.bf16.msra.mxu0 %v6525_v6 }
0x1944   :  { %6009 = vmatprep.subr.bf16.mxu0 %v6900_v40 }
0x1946   :  { %5693 = vmatmul.mubr.msk.f32.vlgmr.msra.gmra.mrb[36].mxu0 %vm476_vm2, %v3905_v28 }
0x1947   :  { %6011 = vmatpush3.bf16.msra.mxu0 %v6551_v41  ;;  %5730 = vmatprep.mubr.msk.f32.mxu0 %vm6198_vm5, %v6901_v51 }
0x1948   :  { %6012 = vmatprep.subr.bf16.mxu0 %v6900_v40 }
0x194b   :  { %6014 = vmatpush3.bf16.msra.mxu0 %v6580_v5 }
0x194c   :  { %6021 = vmatprep.subr.bf16.mxu0 %v6900_v40 }
0x1a19   :  { %v4275_v62 = vpop.f32.mrb[36].mxu0 }
0x1a1a   :  { %v6058_v9 = vadd.f32 %v6535_v15, %v4275_v62  ;;  %v5694_v47 = vpop.f32.mrb[37].mxu0 }
0x1a1c   :  { %v4280_v6 = vmax.f32 %v6058_v9, 0.0 }
0x1a1e   :  { %5696 = vmatpush3.msk.msra.mxu1 %vm1236_vm3, %v4280_v6 }
0x1a1f   :  { %5698 = vmatmul.mubr.msk.f32.vlgmr.msra.gmra.mrb[30].mxu1 %vm1229_vm4, %v4048_v11  ;;  %5997 = vmatprep.subr.bf16.mxu1 %v6900_v40 }
0x1a20   :  { %5999 = vmatpush3.bf16.msra.mxu1 %v6538_v21  ;;  %5708 = vmatprep.mubr.msk.f32.mxu1 %vm6198_vm5, %v6901_v51  ;;  %v3212_v21 = vrot.slane %v6739_v24, 4 }
0x1a21   :  { %6000 = vmatprep.subr.bf16.mxu1 %v6900_v40 }
0x1a24   :  { %6002 = vmatpush3.bf16.msra.mxu1 %v6544_v25  ;;  %v3213_v25 = vadd.f32 %v3212_v21, %v6739_v24 }
0x1a25   :  { %6003 = vmatprep.subr.bf16.mxu1 %v6900_v40 }
0x1af2   :  { %v4350_v15 = vpop.f32.mrb[30].mxu1 }
0x1af3   :  { %v4354_v41 = vmul.f32 %v6136_v61, %v4350_v15  ;;  %v5699_v5 = vpop.f32.mrb[31].mxu1 }
0x1af5   :  { %5709 = vmatmul.mubr.msk.f32.vlgmr.msra.gmra.mrb[32].mxu1 %vm476_vm2, %v4354_v41 }
0x1af6   :  { %6005 = vmatpush3.bf16.msra.mxu1 %v6555_v44  ;;  %5719 = vmatprep.mubr.msk.f32.mxu1 %vm6198_vm5, %v6901_v51  ;;  %v3214_v44 = vrot.slane %v3213_v25, 2 }
0x1af7   :  { %6006 = vmatprep.subr.bf16.mxu1 %v6900_v40 }
0x1afa   :  { %6008 = vmatpush3.bf16.msra.mxu1 %v6559_v53  ;;  %v3215_v53 = vadd.f32 %v3214_v44, %v3213_v25 }
0x1afb   :  { %6015 = vmatprep.subr.bf16.mxu1 %v6900_v40 }
0x1afc   :  { %v3216_v34 = vrot.slane %v3215_v53, 1 }
0x1afd   :  { %5720 = vmatmul.mubr.msk.f32.vlgmr.msra.gmra.mrb[32].mxu1 %vm476_vm2, %v4280_v6 }
0x1afe   :  { %6017 = vmatpush3.bf16.msra.mxu1 %v6565_v63  ;;  %5741 = vmatprep.mubr.msk.f32.mxu1 %vm6198_vm5, %v6901_v51 }
0x1aff   :  { %6018 = vmatprep.subr.bf16.mxu1 %v6900_v40 }
0x1b02   :  { %6020 = vmatpush3.bf16.msra.mxu1 %v6570_v3 }
0x1b03   :  { %6033 = vmatprep.subr.bf16.mxu1 %v6900_v40 }
0x1b05   :  { %5742 = vmatmul.mubr.msk.f32.vlgmr.msra.gmra.mrb[34].mxu1 %vm476_vm2, %v4280_v6 }
0x1b06   :  { %6035 = vmatpush3.bf16.msra.mxu1 %v6611_v33  ;;  %5774 = vmatprep.mubr.msk.f32.mxu1 %vm6198_vm5, %v6901_v51  ;;  %v3217_v33 = vadd.f32 %v3216_v34, %v3215_v53 }
0x1b07   :  { %6036 = vmatprep.subr.bf16.mxu1 %v6900_v40 }
0x1b08   :  { %v3218_v20 = vmul.f32 0.0625, %v3217_v33 }
0x1b0a   :  { %6038 = vmatpush3.bf16.msra.mxu1 %v6622_v43 }
0x1bd0   :  { %v4496_v63 = vpop.f32.mrb[32].mxu1 }
0x1bd1   :  { %v6059_v3 = vadd.f32 %v6586_v22, %v4496_v63  ;;  %v5721_v1 = vpop.f32.mrb[33].mxu1 }
0x1bd3   :  { %v4501_v19 = vmax.f32 %v6059_v3, 0.0 }
0x1bd5   :  { %5731 = vmatmul.mubr.msk.f32.vlgmr.msra.gmra.mrb[38].mxu0 %vm476_vm2, %v4501_v19 }
0x1bd6   :  { %6023 = vmatpush3.bf16.msra.mxu0 %v6589_v27  ;;  %5752 = vmatprep.mubr.msk.f32.mxu0 %vm6198_vm5, %v6901_v51 }
0x1bd7   :  { %6024 = vmatprep.subr.bf16.mxu0 %v6900_v40 }
0x1bd8   :  { %v4641_v43 = vpop.f32.mrb[34].mxu1 }
0x1bd9   :  { %v5743_v24 = vpop.f32.mrb[35].mxu1 }
0x1bda   :  { %6026 = vmatpush3.bf16.msra.mxu0 %v6593_v56 }
0x1bdb   :  { %6027 = vmatprep.subr.bf16.mxu0 %v6900_v40 }
0x1bdd   :  { %5753 = vmatmul.mubr.msk.f32.vlgmr.msra.gmra.mrb[40].mxu0 %vm476_vm2, %v3218_v20 }
0x1bde   :  { %6029 = vmatpush3.bf16.msra.mxu0 %v6603_v17  ;;  %5763 = vmatprep.mubr.msk.f32.mxu0 %vm6198_vm5, %v6901_v51 }
0x1bdf   :  { %6030 = vmatprep.subr.bf16.mxu0 %v6900_v40 }
0x1be2   :  { %6032 = vmatpush3.bf16.msra.mxu0 %v6607_v29 }
0x1ca8   :  { %v4571_v22 = vpop.f32.mrb[38].mxu0 }
0x1ca9   :  { %v4642_v27 = vadd.f32 %v4641_v43, %v4571_v22  ;;  %v5732_v60 = vpop.f32.mrb[39].mxu0 }
0x1cab   :  { %v4645_v31 = vadd.f32 %v6615_v10, %v4642_v27  ;;  %v2513_v10 = vpop.xlane.xlu0 %2512 }
0x1cac   :  { %v2514_v16 = vsub.f32 %v6799_v0, %v2513_v10 }
0x1cad   :  { %v4646_v56 = vmax.f32 %v4645_v31, 0.0 }
0x1cae   :  { %v2515_v32 = vmul.f32 1.442695, %v2514_v16 }
0x1caf   :  { %v4647_v13 = vsel %vm2278_vm7, %v4646_v56, 0.0 }
0x1cb0   :  { %v4648_v14 = vrot.slane %v4647_v13, 4  ;;  %6137 = vpow2.f32 %v2515_v32 }
0x1cb2   :  { %v4649_v54 = vadd.f32 %v4648_v14, %v4647_v13 }
0x1cb4   :  { %v4650_v52 = vrot.slane %v4649_v54, 2 }
0x1cb6   :  { %v4651_v58 = vadd.f32 %v4650_v52, %v4649_v54 }
0x1cb8   :  { %v4652_v17 = vrot.slane %v4651_v58, 1 }
0x1cba   :  { %v4653_v36 = vadd.f32 %v4652_v17, %v4651_v58  ;;  %v6138_v49 = vpop.eup %6137 }
0x1cbb   :  { %v2517_v50 = vsel %vm2510_vm8, %v6138_v49, 0.0 }
0x1cbc   :  { %v4654_v26 = vmul.f32 0.25, %v4653_v36 }
0x1cbe   :  { %5764 = vmatmul.mubr.msk.f32.vlgmr.msra.gmra.mrb[40].mxu0 %vm476_vm2, %v4654_v26 }
0x1d91   :  { %v4798_v40 = vpop.f32.mrb[40].mxu0 }
0x1d92   :  { %v6060_v29 = vadd.f32 %v4798_v40, %v6637_v48  ;;  %v5765_v51 = vpop.f32.mrb[41].mxu0 }
0x1d94   :  { %v4803_v57 = vmax.f32 %v6060_v29, 0.0 }
0x1d96   :  { %5775 = vmatmul.mubr.msk.f32.vlgmr.msra.gmra.mrb[36].mxu1 %vm476_vm2, %v4803_v57 }
0x1e69   :  { %v4873_v8 = vpop.f32.mrb[36].mxu1 }
0x1e6a   :  { %v4874_v35 = vadd.f32 %v4873_v8, %v6795_v55  ;;  %v5776_v39 = vpop.f32.mrb[37].mxu1 }
0x1e6c   :  { %v4877_v42 = vsel %vm2510_vm8, %v4874_v35, -inf }
0x1e6d   :  { %4878 = vmax.xlane.f32.xlu0 %v4877_v42 }
0x1e71   :  { %2518 = vadd.xlane.f32.xlu0 %v2517_v50 }
0x1efa   :  { %v4879_v48 = vpop.xlane.xlu0 %4878 }
0x1efb   :  { %v4880_v7 = vsub.f32 %v4874_v35, %v4879_v48 }
0x1efd   :  { %v4881_v28 = vmul.f32 1.442695, %v4880_v7 }
0x1efe   :  { %v2519_v37 = vpop.xlane.xlu0 %2518 }
0x1eff   :  { %6139 = vpow2.f32 %v4881_v28 }
0x1f00   :  { %6141 = vlog2.f32 %v2519_v37 }
0x1f09   :  { %v6140_v30 = vpop.eup %6139 }
0x1f0a   :  { %v6142_v2 = vpop.eup %6141  ;;  %v4883_v11 = vsel %vm2510_vm8, %v6140_v30, 0.0 }
0x1f0b   :  { %v2521_v0 = vmul.f32 0.6931472, %v6142_v2  ;;  %4884 = vadd.xlane.f32.xlu0 %v4883_v11 }
0x1f0d   :  { %v2522_v55 = vsub.f32 %v2514_v16, %v2521_v0 }
0x1f0f   :  { %2523 = vst.msk [vmem:[#allocation5] sm:$0x1] %vm2510_vm8, %v2522_v55 }
0x1f98   :  { %v4885_v38 = vpop.xlane.xlu0 %4884 }
0x1f99   :  { %6143 = vlog2.f32 %v4885_v38 }
0x1fa3   :  { %v6144_v45 = vpop.eup %6143 }
0x1fa4   :  { %v4887_v23 = vmul.f32 0.6931472, %v6144_v45 }
0x1fa6   :  { %v4888_v18 = vsub.f32 %v4880_v7, %v4887_v23 }
0x1fa8   :  { %4890 = vst.msk [vmem:[#allocation5 + $0x1] sm:$0x1] %vm2510_vm8, %v4888_v18 }
0x1fa9   :  { %6178 = shalt.err (!%p6175_p12)
}
0x1faa   :  { %s6179_s28 = scalar_lea.hbm %s6895_s4, 32 }
0x1fab   :  { %p6180_p13 = scmp.ne.s32.totalorder %s6895_s4, %s6179_s28  ;;  %p6183_p0 = scmp.lt.u32.totalorder %s6179_s28, %s6895_s4 }
0x1fad   :  { %p6185_p1 = pnand %p6183_p0, %p6180_p13 }
0x1faf   :  { %6188 = shalt.err (!%p6185_p1)
}
0x1fb0   :  { %s6201_s7 = smov 16   ;;  %s6202_s8 = smov 1  }
0x1fb1   :  { %4902 = dma.vmem_to_hbm [thread:$0]  %s4897_s24, 32, %s6895_s4, [#allocation4], %s6201_s7, %s6201_s7, %s6202_s8  }
0x1fb2   :  { %6191 = dma.done.wait [#allocation4], 32  }
0x1fb3   :  { %6192 = vsyncadd [#allocation4], 4294967264 }
0x1fb4   :  { %4906 = vsyncpa [#allocation3], 1 }
0x1fb5   :  { %4907 = vsyncpa [#allocation4], 1 }

</bundles_post_ra>
